<compile_context>
chip_gen: v6e
topology: v6e:2x2x1
jax: 0.10.0
libtpu: 0.0.40
codegen_flags: <defaults>
</compile_context>

<pallas_src>
import functools

import jax
import jax.numpy as jnp
from jax.experimental import pallas as pl
from jax.experimental.pallas import tpu as pltpu


def _bottleneck_kernel(x_ref, w1_ref, s1_ref, b1_ref,
                       w2_ref, s2_ref, b2_ref,
                       w3_ref, s3_ref, b3_ref,
                       o_ref, mid_ref, patch_ref,
                       *, H, W, Cin, Cmid, Cout):
    f32 = jnp.float32
    bf16 = jnp.bfloat16

    # ---- load input tile as a (H*W, Cin) matrix (lane-dense: Cin is a multiple of 128)
    x2d = x_ref[0].reshape(H * W, Cin)                      # f32

    # ---- conv1: 1x1 (Cin -> Cmid) on the MXU (bf16 operands, f32 accumulate) ----
    out1 = jnp.dot(x2d.astype(bf16), w1_ref[...], preferred_element_type=f32)
    # bn1 (folded eval-mode) + relu, in f32
    out1 = jnp.maximum(out1 * s1_ref[...] + b1_ref[...], 0.0)

    # ---- stage conv1 output into a zero-bordered VMEM scratch for the 3x3 conv ----
    # Only the 1-wide border is zeroed (interior is fully overwritten every step),
    # so this stays megacore-safe and avoids a full-buffer zero fill.
    zrow = jnp.zeros((1, W + 2, Cmid), f32)
    zcol = jnp.zeros((H + 2, 1, Cmid), f32)
    mid_ref[0:1, :, :] = zrow
    mid_ref[H + 1:H + 2, :, :] = zrow
    mid_ref[:, 0:1, :] = zcol
    mid_ref[:, W + 1:W + 2, :] = zcol
    mid_ref[1:1 + H, 1:1 + W, :] = out1.reshape(H, W, Cmid)

    # ---- im2col: build the (H*W, 9*Cmid) patch matrix (bf16) in VMEM ----
    for kh in range(3):
        for kw in range(3):
            t = kh * 3 + kw
            tap = mid_ref[kh:kh + H, kw:kw + W, :].reshape(H * W, Cmid)
            patch_ref[:, t * Cmid:(t + 1) * Cmid] = tap.astype(bf16)

    # ---- conv2: 3x3 stride 1 pad 1 as ONE fused matmul, K = 9*Cmid ----
    out2 = jnp.dot(patch_ref[...], w2_ref[...], preferred_element_type=f32)
    # bn2 + relu
    out2 = jnp.maximum(out2 * s2_ref[...] + b2_ref[...], 0.0)

    # ---- conv3: 1x1 (Cmid -> Cout = 4*planes) ----
    out3 = jnp.dot(out2.astype(bf16), w3_ref[...], preferred_element_type=f32)
    # bn3
    out3 = out3 * s3_ref[...] + b3_ref[...]

    # ---- residual add (downsample=None => stride=1, Cin == Cout) + relu ----
    out = jnp.maximum(out3 + x2d, 0.0)
    # Lane-dense store: last dim Cout is a multiple of 128.
    o_ref[...] = out.reshape(1, H, W, Cout).astype(o_ref.dtype)


def bottleneck_pallas(x, w1, g1, be1, m1, v1,
                      w2, g2, be2, m2, v2,
                      w3, g3, be3, m3, v3, *, eps=1e-5):
    """Eval-mode Bottleneck (stride=1, downsample=None).

    x:  (N, H, W, Cin) float32, NHWC.
    w1: (1, 1, Cin,  Cmid) HWIO   w2: (3, 3, Cmid, Cmid) HWIO   w3: (1, 1, Cmid, Cout) HWIO
    BN params g/be/m/v: per-channel vectors of the matching conv output width.
    """
    N, H, W, Cin = x.shape
    Cmid = w1.shape[-1]
    Cout = w3.shape[-1]
    # TODO(synk): stride>1 / downsample path not implemented (module default is
    # stride=1, downsample=None, which forces Cin == Cout for the residual add).
    assert Cin == Cout, "Bottleneck with downsample=None requires inplanes == planes*4"

    # Fold BN (eval mode): y = x*scale + bias.
    # TODO(synk): training-mode BatchNorm (batch statistics) not implemented.
    def fold(g, b, m, v):
        s = g / jnp.sqrt(v + eps)
        return (s.reshape(1, -1).astype(jnp.float32),
                (b - m * s).reshape(1, -1).astype(jnp.float32))

    s1, b1 = fold(g1, be1, m1, v1)
    s2, b2 = fold(g2, be2, m2, v2)
    s3, b3 = fold(g3, be3, m3, v3)

    # MXU-side weights in bf16 (halves weight DMA, bf16-native MXU).
    w1f = w1.reshape(Cin, Cmid).astype(jnp.bfloat16)            # 1x1
    w2f = w2.reshape(9 * Cmid, Cmid).astype(jnp.bfloat16)       # (kh,kw,ci) rows -> im2col K
    w3f = w3.reshape(Cmid, Cout).astype(jnp.bfloat16)           # 1x1

    kernel = functools.partial(_bottleneck_kernel, H=H, W=W,
                               Cin=Cin, Cmid=Cmid, Cout=Cout)

    flops = 2 * N * H * W * (Cin * Cmid + 9 * Cmid * Cmid + Cmid * Cout)
    bytes_accessed = (x.size + N * H * W * Cout) * 4 + (w1f.size + w2f.size + w3f.size) * 2

    return pl.pallas_call(
        kernel,
        out_shape=jax.ShapeDtypeStruct((N, H, W, Cout), jnp.float32),
        grid=(N,),
        in_specs=[
            pl.BlockSpec((1, H, W, Cin), lambda n: (n, 0, 0, 0)),
            pl.BlockSpec((Cin, Cmid), lambda n: (0, 0)),
            pl.BlockSpec((1, Cmid), lambda n: (0, 0)),
            pl.BlockSpec((1, Cmid), lambda n: (0, 0)),
            pl.BlockSpec((9 * Cmid, Cmid), lambda n: (0, 0)),
            pl.BlockSpec((1, Cmid), lambda n: (0, 0)),
            pl.BlockSpec((1, Cmid), lambda n: (0, 0)),
            pl.BlockSpec((Cmid, Cout), lambda n: (0, 0)),
            pl.BlockSpec((1, Cout), lambda n: (0, 0)),
            pl.BlockSpec((1, Cout), lambda n: (0, 0)),
        ],
        out_specs=pl.BlockSpec((1, H, W, Cout), lambda n: (n, 0, 0, 0)),
        scratch_shapes=[
            pltpu.VMEM((H + 2, W + 2, Cmid), jnp.float32),       # padded conv1 output
            pltpu.VMEM((H * W, 9 * Cmid), jnp.bfloat16),         # im2col patch matrix
        ],
        compiler_params=pltpu.CompilerParams(dimension_semantics=("parallel",)),
        cost_estimate=pl.CostEstimate(flops=flops, transcendentals=0,
                                      bytes_accessed=bytes_accessed),
    )(x, w1f, s1, b1, w2f, s2, b2, w3f, s3, b3)


def bottleneck_reference(x, w1, g1, be1, m1, v1,
                         w2, g2, be2, m2, v2,
                         w3, g3, be3, m3, v3, *, eps=1e-5):
    """Pure-JAX f32 reference (NHWC, HWIO) for the same eval-mode Bottleneck."""
    dn = ("NHWC", "HWIO", "NHWC")

    def bn(y, g, b, m, v):
        return (y - m) * (g / jnp.sqrt(v + eps)) + b

    out = jax.lax.conv_general_dilated(x, w1, (1, 1), [(0, 0), (0, 0)], dimension_numbers=dn)
    out = jnp.maximum(bn(out, g1, be1, m1, v1), 0.0)
    out = jax.lax.conv_general_dilated(out, w2, (1, 1), [(1, 1), (1, 1)], dimension_numbers=dn)
    out = jnp.maximum(bn(out, g2, be2, m2, v2), 0.0)
    out = jax.lax.conv_general_dilated(out, w3, (1, 1), [(0, 0), (0, 0)], dimension_numbers=dn)
    out = bn(out, g3, be3, m3, v3) + x
    return jnp.maximum(out, 0.0)


if __name__ == "__main__":
    # Smallest "real" Bottleneck config (ResNet-50 layer1): inplanes=256, planes=64.
    N, H, W = 2, 16, 16
    planes = 64
    Cin = Cout = 4 * planes        # 256
    Cmid = planes                  # 64

    key = jax.random.PRNGKey(0)
    ks = jax.random.split(key, 16)

    x = jax.random.normal(ks[0], (N, H, W, Cin), jnp.float32)                      # NHWC
    w1 = jax.random.normal(ks[1], (1, 1, Cin, Cmid), jnp.float32) / jnp.sqrt(Cin)
    w2 = jax.random.normal(ks[2], (3, 3, Cmid, Cmid), jnp.float32) / jnp.sqrt(9 * Cmid)
    w3 = jax.random.normal(ks[3], (1, 1, Cmid, Cout), jnp.float32) / jnp.sqrt(Cmid)

    def bn_params(k0, k1, k2, k3, c):
        g = 1.0 + 0.1 * jax.random.normal(k0, (c,), jnp.float32)
        b = 0.1 * jax.random.normal(k1, (c,), jnp.float32)
        m = 0.1 * jax.random.normal(k2, (c,), jnp.float32)
        v = jnp.abs(jax.random.normal(k3, (c,), jnp.float32)) + 0.5
        return g, b, m, v

    g1, be1, m1, v1 = bn_params(ks[4], ks[5], ks[6], ks[7], Cmid)
    g2, be2, m2, v2 = bn_params(ks[8], ks[9], ks[10], ks[11], Cmid)
    g3, be3, m3, v3 = bn_params(ks[12], ks[13], ks[14], ks[15], Cout)

    out = bottleneck_pallas(x, w1, g1, be1, m1, v1,
                            w2, g2, be2, m2, v2,
                            w3, g3, be3, m3, v3)
    out = jax.block_until_ready(out)

    ref = bottleneck_reference(x, w1, g1, be1, m1, v1,
                               w2, g2, be2, m2, v2,
                               w3, g3, be3, m3, v3)

    assert out.shape == (N, H, W, Cout)
    # bf16 MXU operands (f32 accumulation) -> relaxed tolerance vs the f32 reference.
    assert jnp.allclose(out, ref, rtol=5e-2, atol=5e-2), float(jnp.max(jnp.abs(out - ref)))

    print("KERNEL_OK")
</pallas_src>

<mosaic_0001>
module attributes {stable_mosaic.version = 11 : i64} {
  func.func @_bottleneck_kernel(%arg0: i32, %arg1: memref<1x16x16x256xf32, #tpu.memory_space<vmem>>, %arg2: memref<256x64xbf16, #tpu.memory_space<vmem>>, %arg3: memref<1x64xf32, #tpu.memory_space<vmem>>, %arg4: memref<1x64xf32, #tpu.memory_space<vmem>>, %arg5: memref<576x64xbf16, #tpu.memory_space<vmem>>, %arg6: memref<1x64xf32, #tpu.memory_space<vmem>>, %arg7: memref<1x64xf32, #tpu.memory_space<vmem>>, %arg8: memref<64x256xbf16, #tpu.memory_space<vmem>>, %arg9: memref<1x256xf32, #tpu.memory_space<vmem>>, %arg10: memref<1x256xf32, #tpu.memory_space<vmem>>, %arg11: memref<1x16x16x256xf32, #tpu.memory_space<vmem>>, %arg12: memref<18x18x64xf32, #tpu.memory_space<vmem>>, %arg13: memref<256x576xbf16, #tpu.memory_space<vmem>>) attributes {dimension_semantics = [#tpu.dimension_semantics<parallel>], iteration_bounds = array<i64: 2>, scalar_prefetch = 0 : i64, scratch_operands = 2 : i64, tpu.core_type = #tpu.core_type<tc>, window_params = [{transform_indices = @transform_0, window_bounds = array<i64: 1, 16, 16, 256>}, {pipeline_mode = #tpu.pipeline_mode<synchronous>, transform_indices = @transform_1, window_bounds = array<i64: 256, 64>}, {pipeline_mode = #tpu.pipeline_mode<synchronous>, transform_indices = @transform_2, window_bounds = array<i64: 1, 64>}, {pipeline_mode = #tpu.pipeline_mode<synchronous>, transform_indices = @transform_3, window_bounds = array<i64: 1, 64>}, {pipeline_mode = #tpu.pipeline_mode<synchronous>, transform_indices = @transform_4, window_bounds = array<i64: 576, 64>}, {pipeline_mode = #tpu.pipeline_mode<synchronous>, transform_indices = @transform_5, window_bounds = array<i64: 1, 64>}, {pipeline_mode = #tpu.pipeline_mode<synchronous>, transform_indices = @transform_6, window_bounds = array<i64: 1, 64>}, {pipeline_mode = #tpu.pipeline_mode<synchronous>, transform_indices = @transform_7, window_bounds = array<i64: 64, 256>}, {pipeline_mode = #tpu.pipeline_mode<synchronous>, transform_indices = @transform_8, window_bounds = array<i64: 1, 256>}, {pipeline_mode = #tpu.pipeline_mode<synchronous>, transform_indices = @transform_9, window_bounds = array<i64: 1, 256>}, {transform_indices = @transform_10, window_bounds = array<i64: 1, 16, 16, 256>}]} {
    %c0 = arith.constant 0 : index
    %c0_0 = arith.constant 0 : index
    %c0_1 = arith.constant 0 : index
    %c0_2 = arith.constant 0 : index
    %0 = vector.load %arg1[%c0, %c0_0, %c0_1, %c0_2] : memref<1x16x16x256xf32, #tpu.memory_space<vmem>>, vector<1x16x16x256xf32>
    %1 = vector.shape_cast %0 : vector<1x16x16x256xf32> to vector<16x16x256xf32>
    %2 = vector.shape_cast %1 : vector<16x16x256xf32> to vector<256x256xf32>
    %3 = arith.truncf %2 : vector<256x256xf32> to vector<256x256xbf16>
    %c0_3 = arith.constant 0 : index
    %c0_4 = arith.constant 0 : index
    %4 = vector.load %arg2[%c0_3, %c0_4] : memref<256x64xbf16, #tpu.memory_space<vmem>>, vector<256x64xbf16>
    %cst = arith.constant dense<0.000000e+00> : vector<256x64xf32>
    %5 = tpu.matmul %3, %4, %cst {dimension_numbers = #tpu.dot_dimension_numbers<[1], [0], [0], [1], [0, 0, 1, 1], [], []>} : vector<256x256xbf16>, vector<256x64xbf16>, vector<256x64xf32> -> vector<256x64xf32>
    %c0_5 = arith.constant 0 : index
    %c0_6 = arith.constant 0 : index
    %6 = vector.load %arg3[%c0_5, %c0_6] : memref<1x64xf32, #tpu.memory_space<vmem>>, vector<1x64xf32>
    %7 = vector.broadcast %6 : vector<1x64xf32> to vector<256x64xf32>
    %8 = arith.mulf %5, %7 : vector<256x64xf32>
    %c0_7 = arith.constant 0 : index
    %c0_8 = arith.constant 0 : index
    %9 = vector.load %arg4[%c0_7, %c0_8] : memref<1x64xf32, #tpu.memory_space<vmem>>, vector<1x64xf32>
    %10 = vector.broadcast %9 : vector<1x64xf32> to vector<256x64xf32>
    %11 = arith.addf %8, %10 : vector<256x64xf32>
    %cst_9 = arith.constant 0.000000e+00 : f32
    %12 = vector.broadcast %cst_9 : f32 to vector<256x64xf32>
    %13 = arith.maximumf %11, %12 : vector<256x64xf32>
    %cst_10 = arith.constant 0.000000e+00 : f32
    %14 = vector.broadcast %cst_10 : f32 to vector<1x18x64xf32>
    %cst_11 = arith.constant 0.000000e+00 : f32
    %15 = vector.broadcast %cst_11 : f32 to vector<18x1x64xf32>
    %c0_12 = arith.constant 0 : index
    %c0_13 = arith.constant 0 : index
    %c0_14 = arith.constant 0 : index
    %16 = vector.load %arg12[%c0_12, %c0_13, %c0_14] : memref<18x18x64xf32, #tpu.memory_space<vmem>>, vector<1x18x64xf32>
    tpu.vector_store %arg12[%c0_12, %c0_13, %c0_14], %14 {strides = array<i32>} : memref<18x18x64xf32, #tpu.memory_space<vmem>>, vector<1x18x64xf32>,
    %c17 = arith.constant 17 : index
    %c0_15 = arith.constant 0 : index
    %c0_16 = arith.constant 0 : index
    %17 = vector.load %arg12[%c17, %c0_15, %c0_16] : memref<18x18x64xf32, #tpu.memory_space<vmem>>, vector<1x18x64xf32>
    tpu.vector_store %arg12[%c17, %c0_15, %c0_16], %14 {strides = array<i32>} : memref<18x18x64xf32, #tpu.memory_space<vmem>>, vector<1x18x64xf32>,
    %c0_17 = arith.constant 0 : index
    %c0_18 = arith.constant 0 : index
    %c0_19 = arith.constant 0 : index
    %18 = vector.load %arg12[%c0_17, %c0_18, %c0_19] : memref<18x18x64xf32, #tpu.memory_space<vmem>>, vector<18x1x64xf32>
    tpu.vector_store %arg12[%c0_17, %c0_18, %c0_19], %15 {strides = array<i32>} : memref<18x18x64xf32, #tpu.memory_space<vmem>>, vector<18x1x64xf32>,
    %c0_20 = arith.constant 0 : index
    %c17_21 = arith.constant 17 : index
    %c0_22 = arith.constant 0 : index
    %19 = vector.load %arg12[%c0_20, %c17_21, %c0_22] : memref<18x18x64xf32, #tpu.memory_space<vmem>>, vector<18x1x64xf32>
    tpu.vector_store %arg12[%c0_20, %c17_21, %c0_22], %15 {strides = array<i32>} : memref<18x18x64xf32, #tpu.memory_space<vmem>>, vector<18x1x64xf32>,
    %20 = vector.shape_cast %13 : vector<256x64xf32> to vector<16x16x64xf32>
    %c1 = arith.constant 1 : index
    %c1_23 = arith.constant 1 : index
    %c0_24 = arith.constant 0 : index
    %21 = vector.load %arg12[%c1, %c1_23, %c0_24] : memref<18x18x64xf32, #tpu.memory_space<vmem>>, vector<16x16x64xf32>
    tpu.vector_store %arg12[%c1, %c1_23, %c0_24], %20 {strides = array<i32>} : memref<18x18x64xf32, #tpu.memory_space<vmem>>, vector<16x16x64xf32>,
    %c0_25 = arith.constant 0 : index
    %c0_26 = arith.constant 0 : index
    %c0_27 = arith.constant 0 : index
    %22 = vector.load %arg12[%c0_25, %c0_26, %c0_27] : memref<18x18x64xf32, #tpu.memory_space<vmem>>, vector<16x16x64xf32>
    %23 = vector.shape_cast %22 : vector<16x16x64xf32> to vector<256x64xf32>
    %24 = arith.truncf %23 : vector<256x64xf32> to vector<256x64xbf16>
    %c0_28 = arith.constant 0 : index
    %c0_29 = arith.constant 0 : index
    %25 = vector.load %arg13[%c0_28, %c0_29] : memref<256x576xbf16, #tpu.memory_space<vmem>>, vector<256x64xbf16>
    tpu.vector_store %arg13[%c0_28, %c0_29], %24 {strides = array<i32>} : memref<256x576xbf16, #tpu.memory_space<vmem>>, vector<256x64xbf16>,
    %c0_30 = arith.constant 0 : index
    %c1_31 = arith.constant 1 : index
    %c0_32 = arith.constant 0 : index
    %26 = vector.load %arg12[%c0_30, %c1_31, %c0_32] : memref<18x18x64xf32, #tpu.memory_space<vmem>>, vector<16x16x64xf32>
    %27 = vector.shape_cast %26 : vector<16x16x64xf32> to vector<256x64xf32>
    %28 = arith.truncf %27 : vector<256x64xf32> to vector<256x64xbf16>
    %c0_33 = arith.constant 0 : index
    %c64 = arith.constant 64 : index
    %29 = vector.load %arg13[%c0_33, %c64] : memref<256x576xbf16, #tpu.memory_space<vmem>>, vector<256x64xbf16>
    tpu.vector_store %arg13[%c0_33, %c64], %28 {strides = array<i32>} : memref<256x576xbf16, #tpu.memory_space<vmem>>, vector<256x64xbf16>,
    %c0_34 = arith.constant 0 : index
    %c2 = arith.constant 2 : index
    %c0_35 = arith.constant 0 : index
    %30 = vector.load %arg12[%c0_34, %c2, %c0_35] : memref<18x18x64xf32, #tpu.memory_space<vmem>>, vector<16x16x64xf32>
    %31 = vector.shape_cast %30 : vector<16x16x64xf32> to vector<256x64xf32>
    %32 = arith.truncf %31 : vector<256x64xf32> to vector<256x64xbf16>
    %c0_36 = arith.constant 0 : index
    %c128 = arith.constant 128 : index
    %33 = vector.load %arg13[%c0_36, %c128] : memref<256x576xbf16, #tpu.memory_space<vmem>>, vector<256x64xbf16>
    tpu.vector_store %arg13[%c0_36, %c128], %32 {strides = array<i32>} : memref<256x576xbf16, #tpu.memory_space<vmem>>, vector<256x64xbf16>,
    %c1_37 = arith.constant 1 : index
    %c0_38 = arith.constant 0 : index
    %c0_39 = arith.constant 0 : index
    %34 = vector.load %arg12[%c1_37, %c0_38, %c0_39] : memref<18x18x64xf32, #tpu.memory_space<vmem>>, vector<16x16x64xf32>
    %35 = vector.shape_cast %34 : vector<16x16x64xf32> to vector<256x64xf32>
    %36 = arith.truncf %35 : vector<256x64xf32> to vector<256x64xbf16>
    %c0_40 = arith.constant 0 : index
    %c192 = arith.constant 192 : index
    %37 = vector.load %arg13[%c0_40, %c192] : memref<256x576xbf16, #tpu.memory_space<vmem>>, vector<256x64xbf16>
    tpu.vector_store %arg13[%c0_40, %c192], %36 {strides = array<i32>} : memref<256x576xbf16, #tpu.memory_space<vmem>>, vector<256x64xbf16>,
    %c1_41 = arith.constant 1 : index
    %c1_42 = arith.constant 1 : index
    %c0_43 = arith.constant 0 : index
    %38 = vector.load %arg12[%c1_41, %c1_42, %c0_43] : memref<18x18x64xf32, #tpu.memory_space<vmem>>, vector<16x16x64xf32>
    %39 = vector.shape_cast %38 : vector<16x16x64xf32> to vector<256x64xf32>
    %40 = arith.truncf %39 : vector<256x64xf32> to vector<256x64xbf16>
    %c0_44 = arith.constant 0 : index
    %c256 = arith.constant 256 : index
    %41 = vector.load %arg13[%c0_44, %c256] : memref<256x576xbf16, #tpu.memory_space<vmem>>, vector<256x64xbf16>
    tpu.vector_store %arg13[%c0_44, %c256], %40 {strides = array<i32>} : memref<256x576xbf16, #tpu.memory_space<vmem>>, vector<256x64xbf16>,
    %c1_45 = arith.constant 1 : index
    %c2_46 = arith.constant 2 : index
    %c0_47 = arith.constant 0 : index
    %42 = vector.load %arg12[%c1_45, %c2_46, %c0_47] : memref<18x18x64xf32, #tpu.memory_space<vmem>>, vector<16x16x64xf32>
    %43 = vector.shape_cast %42 : vector<16x16x64xf32> to vector<256x64xf32>
    %44 = arith.truncf %43 : vector<256x64xf32> to vector<256x64xbf16>
    %c0_48 = arith.constant 0 : index
    %c320 = arith.constant 320 : index
    %45 = vector.load %arg13[%c0_48, %c320] : memref<256x576xbf16, #tpu.memory_space<vmem>>, vector<256x64xbf16>
    tpu.vector_store %arg13[%c0_48, %c320], %44 {strides = array<i32>} : memref<256x576xbf16, #tpu.memory_space<vmem>>, vector<256x64xbf16>,
    %c2_49 = arith.constant 2 : index
    %c0_50 = arith.constant 0 : index
    %c0_51 = arith.constant 0 : index
    %46 = vector.load %arg12[%c2_49, %c0_50, %c0_51] : memref<18x18x64xf32, #tpu.memory_space<vmem>>, vector<16x16x64xf32>
    %47 = vector.shape_cast %46 : vector<16x16x64xf32> to vector<256x64xf32>
    %48 = arith.truncf %47 : vector<256x64xf32> to vector<256x64xbf16>
    %c0_52 = arith.constant 0 : index
    %c384 = arith.constant 384 : index
    %49 = vector.load %arg13[%c0_52, %c384] : memref<256x576xbf16, #tpu.memory_space<vmem>>, vector<256x64xbf16>
    tpu.vector_store %arg13[%c0_52, %c384], %48 {strides = array<i32>} : memref<256x576xbf16, #tpu.memory_space<vmem>>, vector<256x64xbf16>,
    %c2_53 = arith.constant 2 : index
    %c1_54 = arith.constant 1 : index
    %c0_55 = arith.constant 0 : index
    %50 = vector.load %arg12[%c2_53, %c1_54, %c0_55] : memref<18x18x64xf32, #tpu.memory_space<vmem>>, vector<16x16x64xf32>
    %51 = vector.shape_cast %50 : vector<16x16x64xf32> to vector<256x64xf32>
    %52 = arith.truncf %51 : vector<256x64xf32> to vector<256x64xbf16>
    %c0_56 = arith.constant 0 : index
    %c448 = arith.constant 448 : index
    %53 = vector.load %arg13[%c0_56, %c448] : memref<256x576xbf16, #tpu.memory_space<vmem>>, vector<256x64xbf16>
    tpu.vector_store %arg13[%c0_56, %c448], %52 {strides = array<i32>} : memref<256x576xbf16, #tpu.memory_space<vmem>>, vector<256x64xbf16>,
    %c2_57 = arith.constant 2 : index
    %c2_58 = arith.constant 2 : index
    %c0_59 = arith.constant 0 : index
    %54 = vector.load %arg12[%c2_57, %c2_58, %c0_59] : memref<18x18x64xf32, #tpu.memory_space<vmem>>, vector<16x16x64xf32>
    %55 = vector.shape_cast %54 : vector<16x16x64xf32> to vector<256x64xf32>
    %56 = arith.truncf %55 : vector<256x64xf32> to vector<256x64xbf16>
    %c0_60 = arith.constant 0 : index
    %c512 = arith.constant 512 : index
    %57 = vector.load %arg13[%c0_60, %c512] : memref<256x576xbf16, #tpu.memory_space<vmem>>, vector<256x64xbf16>
    tpu.vector_store %arg13[%c0_60, %c512], %56 {strides = array<i32>} : memref<256x576xbf16, #tpu.memory_space<vmem>>, vector<256x64xbf16>,
    %c0_61 = arith.constant 0 : index
    %c0_62 = arith.constant 0 : index
    %58 = vector.load %arg13[%c0_61, %c0_62] : memref<256x576xbf16, #tpu.memory_space<vmem>>, vector<256x576xbf16>
    %c0_63 = arith.constant 0 : index
    %c0_64 = arith.constant 0 : index
    %59 = vector.load %arg5[%c0_63, %c0_64] : memref<576x64xbf16, #tpu.memory_space<vmem>>, vector<576x64xbf16>
    %cst_65 = arith.constant dense<0.000000e+00> : vector<256x64xf32>
    %60 = tpu.matmul %58, %59, %cst_65 {dimension_numbers = #tpu.dot_dimension_numbers<[1], [0], [0], [1], [0, 0, 1, 1], [], []>} : vector<256x576xbf16>, vector<576x64xbf16>, vector<256x64xf32> -> vector<256x64xf32>
    %c0_66 = arith.constant 0 : index
    %c0_67 = arith.constant 0 : index
    %61 = vector.load %arg6[%c0_66, %c0_67] : memref<1x64xf32, #tpu.memory_space<vmem>>, vector<1x64xf32>
    %62 = vector.broadcast %61 : vector<1x64xf32> to vector<256x64xf32>
    %63 = arith.mulf %60, %62 : vector<256x64xf32>
    %c0_68 = arith.constant 0 : index
    %c0_69 = arith.constant 0 : index
    %64 = vector.load %arg7[%c0_68, %c0_69] : memref<1x64xf32, #tpu.memory_space<vmem>>, vector<1x64xf32>
    %65 = vector.broadcast %64 : vector<1x64xf32> to vector<256x64xf32>
    %66 = arith.addf %63, %65 : vector<256x64xf32>
    %cst_70 = arith.constant 0.000000e+00 : f32
    %67 = vector.broadcast %cst_70 : f32 to vector<256x64xf32>
    %68 = arith.maximumf %66, %67 : vector<256x64xf32>
    %69 = arith.truncf %68 : vector<256x64xf32> to vector<256x64xbf16>
    %c0_71 = arith.constant 0 : index
    %c0_72 = arith.constant 0 : index
    %70 = vector.load %arg8[%c0_71, %c0_72] : memref<64x256xbf16, #tpu.memory_space<vmem>>, vector<64x256xbf16>
    %cst_73 = arith.constant dense<0.000000e+00> : vector<256x256xf32>
    %71 = tpu.matmul %69, %70, %cst_73 {dimension_numbers = #tpu.dot_dimension_numbers<[1], [0], [0], [1], [0, 0, 1, 1], [], []>} : vector<256x64xbf16>, vector<64x256xbf16>, vector<256x256xf32> -> vector<256x256xf32>
    %c0_74 = arith.constant 0 : index
    %c0_75 = arith.constant 0 : index
    %72 = vector.load %arg9[%c0_74, %c0_75] : memref<1x256xf32, #tpu.memory_space<vmem>>, vector<1x256xf32>
    %73 = vector.broadcast %72 : vector<1x256xf32> to vector<256x256xf32>
    %74 = arith.mulf %71, %73 : vector<256x256xf32>
    %c0_76 = arith.constant 0 : index
    %c0_77 = arith.constant 0 : index
    %75 = vector.load %arg10[%c0_76, %c0_77] : memref<1x256xf32, #tpu.memory_space<vmem>>, vector<1x256xf32>
    %76 = vector.broadcast %75 : vector<1x256xf32> to vector<256x256xf32>
    %77 = arith.addf %74, %76 : vector<256x256xf32>
    %78 = arith.addf %77, %2 : vector<256x256xf32>
    %cst_78 = arith.constant 0.000000e+00 : f32
    %79 = vector.broadcast %cst_78 : f32 to vector<256x256xf32>
    %80 = arith.maximumf %78, %79 : vector<256x256xf32>
    %81 = vector.shape_cast %80 : vector<256x256xf32> to vector<1x16x16x256xf32>
    %c0_79 = arith.constant 0 : index
    %c0_80 = arith.constant 0 : index
    %c0_81 = arith.constant 0 : index
    %c0_82 = arith.constant 0 : index
    %82 = vector.load %arg11[%c0_79, %c0_80, %c0_81, %c0_82] : memref<1x16x16x256xf32, #tpu.memory_space<vmem>>, vector<1x16x16x256xf32>
    tpu.vector_store %arg11[%c0_79, %c0_80, %c0_81, %c0_82], %81 {strides = array<i32>} : memref<1x16x16x256xf32, #tpu.memory_space<vmem>>, vector<1x16x16x256xf32>,
    return
  }
  func.func @transform_0(%arg0: i32) -> (i32, i32, i32, i32) {
    %c0_i32 = arith.constant 0 : i32
    %c0_i32_0 = arith.constant 0 : i32
    %c0_i32_1 = arith.constant 0 : i32
    %c0_i32_2 = arith.constant 0 : i32
    return %arg0, %c0_i32, %c0_i32_0, %c0_i32_1 : i32, i32, i32, i32
  }
  func.func @transform_1(%arg0: i32) -> (i32, i32) {
    %c0_i32 = arith.constant 0 : i32
    %c0_i32_0 = arith.constant 0 : i32
    %c0_i32_1 = arith.constant 0 : i32
    return %c0_i32, %c0_i32_0 : i32, i32
  }
  func.func @transform_2(%arg0: i32) -> (i32, i32) {
    %c0_i32 = arith.constant 0 : i32
    %c0_i32_0 = arith.constant 0 : i32
    %c0_i32_1 = arith.constant 0 : i32
    return %c0_i32, %c0_i32_0 : i32, i32
  }
  func.func @transform_3(%arg0: i32) -> (i32, i32) {
    %c0_i32 = arith.constant 0 : i32
    %c0_i32_0 = arith.constant 0 : i32
    %c0_i32_1 = arith.constant 0 : i32
    return %c0_i32, %c0_i32_0 : i32, i32
  }
  func.func @transform_4(%arg0: i32) -> (i32, i32) {
    %c0_i32 = arith.constant 0 : i32
    %c0_i32_0 = arith.constant 0 : i32
    %c0_i32_1 = arith.constant 0 : i32
    return %c0_i32, %c0_i32_0 : i32, i32
  }
  func.func @transform_5(%arg0: i32) -> (i32, i32) {
    %c0_i32 = arith.constant 0 : i32
    %c0_i32_0 = arith.constant 0 : i32
    %c0_i32_1 = arith.constant 0 : i32
    return %c0_i32, %c0_i32_0 : i32, i32
  }
  func.func @transform_6(%arg0: i32) -> (i32, i32) {
    %c0_i32 = arith.constant 0 : i32
    %c0_i32_0 = arith.constant 0 : i32
    %c0_i32_1 = arith.constant 0 : i32
    return %c0_i32, %c0_i32_0 : i32, i32
  }
  func.func @transform_7(%arg0: i32) -> (i32, i32) {
    %c0_i32 = arith.constant 0 : i32
    %c0_i32_0 = arith.constant 0 : i32
    %c0_i32_1 = arith.constant 0 : i32
    return %c0_i32, %c0_i32_0 : i32, i32
  }
  func.func @transform_8(%arg0: i32) -> (i32, i32) {
    %c0_i32 = arith.constant 0 : i32
    %c0_i32_0 = arith.constant 0 : i32
    %c0_i32_1 = arith.constant 0 : i32
    return %c0_i32, %c0_i32_0 : i32, i32
  }
  func.func @transform_9(%arg0: i32) -> (i32, i32) {
    %c0_i32 = arith.constant 0 : i32
    %c0_i32_0 = arith.constant 0 : i32
    %c0_i32_1 = arith.constant 0 : i32
    return %c0_i32, %c0_i32_0 : i32, i32
  }
  func.func @transform_10(%arg0: i32) -> (i32, i32, i32, i32) {
    %c0_i32 = arith.constant 0 : i32
    %c0_i32_0 = arith.constant 0 : i32
    %c0_i32_1 = arith.constant 0 : i32
    %c0_i32_2 = arith.constant 0 : i32
    return %arg0, %c0_i32, %c0_i32_0, %c0_i32_1 : i32, i32, i32, i32
  }
}

</mosaic_0001>

<bundles_post_ra>
// kernel: tpu_custom_call.1
= control target key start
LH: loop header
LB: loop body
LE: loop exit
PB: predicated region body
PF: predicated region fallthrough
CT: control target
= control target key end

     0   :  { %15 = vsyncpa [#allocation5], 0  ;;  %s8373_s0 = inlined_call_operand.hbm [shape: f32[2,16,16,256], index: 0, kind: input, shape index: {}]   ;;  %s8374_s1 = inlined_call_operand.vmem [shape: bf16[256,64], index: 1, kind: input, shape index: {}]   ;;  %s8375_s2 = inlined_call_operand.vmem [shape: f32[1,64], index: 2, kind: input, shape index: {}]   ;;  %s8376_s3 = inlined_call_operand.vmem [shape: f32[1,64], index: 3, kind: input, shape index: {}]   ;;  %s8377_s4 = inlined_call_operand.vmem [shape: bf16[576,64], index: 4, kind: input, shape index: {}]   ;;  %s8378_s5 = inlined_call_operand.vmem [shape: f32[1,64], index: 5, kind: input, shape index: {}]   ;;  %s8379_s6 = inlined_call_operand.vmem [shape: f32[1,64], index: 6, kind: input, shape index: {}]   ;;  %s8380_s7 = inlined_call_operand.vmem [shape: bf16[64,256], index: 7, kind: input, shape index: {}]   ;;  %s8381_s8 = inlined_call_operand.vmem [shape: f32[1,256], index: 8, kind: input, shape index: {}]   ;;  %s8382_s9 = inlined_call_operand.vmem [shape: f32[1,256], index: 9, kind: input, shape index: {}]   ;;  %s8383_s10 = inlined_call_operand.hbm [shape: f32[2,16,16,256], index: 10, kind: output, shape index: {}]  }
   0x1   :  { %17 = vsyncpa [#allocation5 + $0x1], 0 }
   0x2   :  { %18 = vsyncpa [#allocation6], 0 }
   0x3   :  { %20 = vsyncpa [#allocation6 + $0x1], 0  ;;  %s6714_s13 = smov 0   ;;  %s6716_s14 = smov 0  }
   0x4   :  { %s6718_s15 = smov 0   ;;  %s6720_s16 = smov 0  }
   0x5 LB: > { %8391 = sst [smem:[#allocation10_spill]] %s6644_s15  ;;  %s6735_s17 = sadd.s32 4294967295, %s6648_s16   ;;  %s6648_s16 = sphi %s6720_s16, %s8412_s16   ;;  %s6644_s15 = sphi %s6718_s15, %s8414_s15   ;;  %s6640_s14 = sphi %s6716_s14, %s8416_s14   ;;  %s6636_s13 = sphi %s6714_s13, %s8415_s13  }
   0x6   : > { %s5101_s18 = sadd.s32 4294967294, %s6648_s16   ;;  %s6739_s19 = sadd.s32 1, %s6648_s16  }
   0x7   : > { %8392 = sst [smem:[#allocation11_spill]] %s6739_s19  ;;  %s33_s20 = sadd.s32 1, %s6644_s15 }
   0x8   : > { %s30_s21 = ssub.s32 %s6648_s16, %s6739_s19  ;;  %p40_p0 = scmp.ne.s32.totalorder %s6644_s15, %s6640_s14 }
   0x9   : > { %p31_p1 = scmp.eq.s32.totalorder %s30_s21, 0  ;;  %p41_p2 = scmp.eq.s32.totalorder %s6648_s16, 0 }
   0xa   : > { %p46_p3 = scmp.ne.s32.totalorder %s6640_s14, %s6636_s13  ;;  %p47_p4 = scmp.eq.s32.totalorder %s6735_s17, 0 }
   0xb   : > { %s6751_s22 = scalar_select %p31_p1, %s6644_s15, %s33_s20  }
   0xc   : > { %p6753_p5 = por %p41_p2, %p40_p0  ;;  %p6757_p6 = por %p47_p4, %p46_p3 }
   0xd   : > { %8393 = sst [smem:[#allocation12_spill]] %s6751_s22  ;;  %p259_p7 = scmp.eq.s32.totalorder %s6735_s17, 1 }
   0xe   : > { %s8395_s24 = scalar_select %p6757_p6, 1, 0 }
   0xf   : > { %p265_p8 = scmp.eq.s32.totalorder %s5101_s18, 1  ;;  %p6293_p10 = scmp.lt.s32.totalorder %s6648_s16, 2 }
  0x10   : > { %p6764_p11 = por %p259_p7, %p40_p0  ;;  %s312_s27 = sand.u32 1, %s6644_s15  }
  0x11   : > { %p6768_p12 = por %p265_p8, %p46_p3  ;;  %s5579_s28 = sshll.u32 %s6648_s16, 13 }
  0x12   : > { %s8396_s25 = scalar_select %p6764_p11, 1, 0 }
  0x13   : > { %s8397_s26 = scalar_select %p6768_p12, 1, 0 }
  0x14   : > { %s5104_s29 = sshll.u32 %s312_s27, 9  ;;  %s6777_s12 = scalar_lea.hbm %s8373_s0, %s5579_s28 }
  0x15   : > { %s316_s18 = scalar_lea.vmem [#allocation4], %s5104_s29  ;;  %p6781_p13 = pnand %p6293_p10, %p6753_p5 }
  0x16   : > { %s323_s20 = sshll.u32 %s316_s18, 4  ;;  %s6787_s22 = scalar_lea.sflag [#allocation5], %s312_s27  ;;  %s6785_s20 = int_to_ptr.vmem [resolvable:$true] %s323_s20 }
  0x17   : > { %s6556_s15 = scalar_lea.hbm %s6777_s12, 8192  ;;  %p6558_p1 = pneg %p6781_p13 }
  0x18   : > { %p6557_p0 = scmp.ne.s32.totalorder %s6777_s12, %s6556_s15  ;;  %s6561_s29 = scalar_lea.hbm %s8373_s0, 16384 }
  0x19   : > { %p6562_p4 = scmp.lt.s32.totalorder %s6777_s12, %s8373_s0  ;;  %p6563_p5 = scmp.lt.s32.totalorder %s6561_s29, %s6556_s15 }
  0x1a   : > { %p6559_p2 = pnand %p6558_p1, %p6557_p0 }
  0x1b   : > { %p6564_p7 = por %p6563_p5, %p6562_p4 }
  0x1c   : > { %p6560_p3 = pneg %p6559_p2 }
  0x1e   : > { %p6565_p8 = pnand %p6564_p7, %p6560_p3 }
  0x20   : > { %6568 = shalt.err (!%p6565_p8)
}
  0x21   : > { %s6569_s27 = scalar_lea.vmem %s6785_s20, 8192  ;;  %s6650_s18 = smov [#allocation4]  }
  0x22   : > { %p6570_p10 = scmp.ne.s32.totalorder %s6785_s20, %s6569_s27  ;;  %s6574_s19 = sshll.u32 %s6650_s18, 4  ;;  %s6575_s19 = int_to_ptr.vmem [resolvable:$false] %s6574_s19 }
  0x23   : > { %s6576_s28 = scalar_lea.vmem %s6575_s19, 16384  ;;  %p6577_p2 = scmp.lt.s32.totalorder %s6785_s20, %s6575_s19 }
  0x24   : > { %p6572_p9 = pnand %p6570_p10, %p6558_p1  ;;  %p6578_p12 = scmp.lt.s32.totalorder %s6576_s28, %s6569_s27 }
  0x26   : > { %p6573_p0 = pneg %p6572_p9  ;;  %p6579_p11 = por %p6578_p12, %p6577_p2 }
  0x28   : > { %p6580_p6 = pnand %p6579_p11, %p6573_p0 }
  0x2a   : > { %6583 = shalt.err (!%p6580_p6)
}
  0x2b   : > { %s6651_s15 = smov 256   ;;  %s6652_s30 = smov 16  }
  0x2c   : > { %6288 = dma.hbm_to_vmem [thread:$0]  (!%p6781_p13), %s6777_s12, 8192, %s6785_s20, %s6787_s22, %s6651_s15, %s6651_s15, %s6652_s30  }
  0x2d   : > { %p5107_p9 = scmp.ge.s32.totalorder %s6648_s16, 1  ;;  %p331_p1 = scmp.lt.s32.totalorder %s6648_s16, 3 }
  0x2f   : > { %p332_p3 = pnand %p5107_p9, %p331_p1 }
  0x31   : > { %335 = sbr.rel (%p332_p3) target bundleno = 1117 (0x45d), region = 60 }
  0x36   : > { %s6811_s19 = sand.u32 1, %s6640_s14   ;;  %p8399_p6 = scmp.ne.s32.totalorder %s8395_s24, 0 }
  0x37   : > { %s5108_s29 = sshll.u32 %s6811_s19, 9  ;;  %s338_s23 = scalar_lea.sflag [#allocation5], %s6811_s19 }
  0x38   : > { %s6817_s11 = scalar_lea.vmem [#allocation4], %s5108_s29 }
  0x39   : > { %6627 = dma.done.wait (%p8399_p6), %s338_s23, 8192  }
  0x3a   : > { %6629 = vsyncadd (%p8399_p6), %s338_s23, 4294959104  ;;  %v6334_v0 = vld [vmem:[%s8374_s1 + $0x78] sm:$0xff]   ;;  %v6336_v2 = vld [vmem:[%s8374_s1 + $0x70] sm:$0xff]   ;;  %vm874_vm0 = vcmask 523264   ;;  %vm883_vm1 = vcmask 516096   ;;  %vm877_vm2 = vcmask 517120  }
  0x3b   : > { %v6335_v1 = vld [vmem:[%s8374_s1 + $0x38] sm:$0xff]   ;;  %5869 = vmatprep.subr.bf16.mxu0 %v6334_v0  ;;  %v6337_v3 = vld [vmem:[%s8374_s1 + $0x30] sm:$0xff]   ;;  %v6338_v4 = vld [vmem:[%s8374_s1 + $0x68] sm:$0xff]   ;;  %s6654_s23 = smov 64   ;;  %vm1113_vm3 = vcmask 519168   ;;  %vm1370_vm4 = vcmask 1043968  }
  0x3c   : > { %5870 = vmatpush3.bf16.msra.mxu0 %v6335_v1  ;;  %v6339_v5 = vld [vmem:[%s8374_s1 + $0x28] sm:$0xff]   ;;  %v6340_v6 = vld [vmem:[%s8374_s1 + $0x60] sm:$0xff]   ;;  %v6342_v8 = vld [vmem:[%s8374_s1 + $0x58] sm:$0xff]   ;;  %s8074_s21 = scalar_lea.vmem [#allocation7], %s5108_s29  ;;  %s5868_s29 = sshll.u32 %s6735_s17, 13 }
  0x3d   : > { %5871 = vmatprep.subr.bf16.mxu0 %v6336_v2  ;;  %v6341_v7 = vld [vmem:[%s8374_s1 + $0x20] sm:$0xff]   ;;  %v6343_v9 = vld [vmem:[%s8374_s1 + $0x18] sm:$0xff]   ;;  %v6344_v10 = vld [vmem:[%s8374_s1 + $0x50] sm:$0xff]   ;;  %s5028_s27 = sshll.u32 %s8074_s21, 4  ;;  %s8326_s15 = scalar_lea.hbm %s8383_s10, %s5868_s29  ;;  %s8328_s27 = int_to_ptr.vmem [resolvable:$true] %s5028_s27 }
  0x3e   : > { %v380_v11 = vld [vmem:[%s6817_s11 + $0x8] sm:$0xff]  ;;  %v382_v12 = vld [vmem:[%s6817_s11 + $0x18] sm:$0xff]  ;;  %v6345_v14 = vld [vmem:[%s8374_s1 + $0x10] sm:$0xff]   ;;  %s5015_s24 = scalar_lea.sflag [#allocation6], %s6811_s19  ;;  %s6584_s17 = scalar_lea.vmem %s8328_s27, 8192 }
  0x3f   : > { %v444_v13 = vpack.c.bf16 %v382_v12, %v380_v11  ;;  %v6346_v15 = vld [vmem:[%s8374_s1 + $0x48] sm:$0xff]   ;;  %v6348_v17 = vld [vmem:[%s8374_s1 + $0x40] sm:$0xff]   ;;  %v379_v19 = vld [vmem:[%s6817_s11] sm:$0xff]  ;;  %p6585_p11 = scmp.ne.s32.totalorder %s8328_s27, %s6584_s17  ;;  %p8409_p12 = scmp.ne.s32.totalorder %s8396_s25, 0 }
  0x40   : > { %5872 = vmatpush3.bf16.msra.mxu0 %v6337_v3  ;;  %v6347_v16 = vld [vmem:[%s8374_s1 + $0x8] sm:$0xff]   ;;  %v6349_v18 = vld [vmem:[%s8374_s1] sm:$0xff]   ;;  %v384_v21 = vld [vmem:[%s6817_s11 + $0x28] sm:$0xff] }
  0x41   : > { %5873 = vmatprep.subr.bf16.mxu0 %v6338_v4  ;;  %635 = vmatprep.mubr.bf16.mxu0 %v444_v13  ;;  %v381_v20 = vld [vmem:[%s6817_s11 + $0x10] sm:$0xff]  ;;  %v386_v22 = vld [vmem:[%s6817_s11 + $0x38] sm:$0xff]  ;;  %v383_v25 = vld [vmem:[%s6817_s11 + $0x20] sm:$0xff]  ;;  %p6586_p13 = pnand %p6585_p11, %p8409_p12 }
  0x42   : > { %v443_v23 = vpack.c.bf16 %v381_v20, %v379_v19  ;;  %v446_v24 = vpack.c.bf16 %v386_v22, %v384_v21  ;;  %v385_v26 = vld [vmem:[%s6817_s11 + $0x30] sm:$0xff]  ;;  %v388_v27 = vld [vmem:[%s6817_s11 + $0x48] sm:$0xff]  ;;  %v390_v28 = vld [vmem:[%s6817_s11 + $0x58] sm:$0xff] }
  0x43   : > { %v445_v29 = vpack.c.bf16 %v385_v26, %v383_v25  ;;  %v448_v30 = vpack.c.bf16 %v390_v28, %v388_v27  ;;  %v387_v31 = vld [vmem:[%s6817_s11 + $0x40] sm:$0xff]  ;;  %v389_v32 = vld [vmem:[%s6817_s11 + $0x50] sm:$0xff]  ;;  %v392_v33 = vld [vmem:[%s6817_s11 + $0x68] sm:$0xff]  ;;  %p6587_p4 = pneg %p6586_p13 }
  0x44   : > { %5874 = vmatpush3.bf16.msra.mxu0 %v6339_v5  ;;  %v394_v34 = vld [vmem:[%s6817_s11 + $0x78] sm:$0xff]  ;;  %v447_v35 = vpack.c.bf16 %v389_v32, %v387_v31  ;;  %v391_v37 = vld [vmem:[%s6817_s11 + $0x60] sm:$0xff]  ;;  %v393_v38 = vld [vmem:[%s6817_s11 + $0x70] sm:$0xff] }
  0x45   : > { %5875 = vmatprep.subr.bf16.mxu0 %v6340_v6  ;;  %v450_v36 = vpack.c.bf16 %v394_v34, %v392_v33  ;;  %v396_v39 = vld [vmem:[%s6817_s11 + $0x88] sm:$0xff]  ;;  %v398_v40 = vld [vmem:[%s6817_s11 + $0x98] sm:$0xff]  ;;  %v449_v41 = vpack.c.bf16 %v393_v38, %v391_v37  ;;  %v395_v43 = vld [vmem:[%s6817_s11 + $0x80] sm:$0xff] }
  0x46   : > { %v452_v42 = vpack.c.bf16 %v398_v40, %v396_v39  ;;  %v397_v44 = vld [vmem:[%s6817_s11 + $0x90] sm:$0xff]  ;;  %v400_v45 = vld [vmem:[%s6817_s11 + $0xa8] sm:$0xff]  ;;  %v402_v46 = vld [vmem:[%s6817_s11 + $0xb8] sm:$0xff] }
  0x47   : > { %v451_v47 = vpack.c.bf16 %v397_v44, %v395_v43  ;;  %v454_v48 = vpack.c.bf16 %v402_v46, %v400_v45  ;;  %v399_v49 = vld [vmem:[%s6817_s11 + $0xa0] sm:$0xff]  ;;  %v401_v50 = vld [vmem:[%s6817_s11 + $0xb0] sm:$0xff]  ;;  %v404_v51 = vld [vmem:[%s6817_s11 + $0xc8] sm:$0xff] }
  0x48   : > { %5876 = vmatpush3.bf16.msra.mxu0 %v6341_v7  ;;  %v406_v52 = vld [vmem:[%s6817_s11 + $0xd8] sm:$0xff]  ;;  %v453_v53 = vpack.c.bf16 %v401_v50, %v399_v49  ;;  %v403_v55 = vld [vmem:[%s6817_s11 + $0xc0] sm:$0xff]  ;;  %v405_v56 = vld [vmem:[%s6817_s11 + $0xd0] sm:$0xff] }
  0x49   : > { %5877 = vmatprep.subr.bf16.mxu0 %v6342_v8  ;;  %v456_v54 = vpack.c.bf16 %v406_v52, %v404_v51  ;;  %v408_v57 = vld [vmem:[%s6817_s11 + $0xe8] sm:$0xff]  ;;  %v410_v58 = vld [vmem:[%s6817_s11 + $0xf8] sm:$0xff]  ;;  %v455_v59 = vpack.c.bf16 %v405_v56, %v403_v55  ;;  %v407_v61 = vld [vmem:[%s6817_s11 + $0xe0] sm:$0xff] }
  0x4a   : > { %v458_v60 = vpack.c.bf16 %v410_v58, %v408_v57  ;;  %v409_v62 = vld [vmem:[%s6817_s11 + $0xf0] sm:$0xff]  ;;  %v412_v63 = vld [vmem:[%s6817_s11 + $0x108] sm:$0xff]  ;;  %v414_v0 = vld [vmem:[%s6817_s11 + $0x118] sm:$0xff] }
  0x4b   : > { %v457_v1 = vpack.c.bf16 %v409_v62, %v407_v61  ;;  %v460_v2 = vpack.c.bf16 %v414_v0, %v412_v63  ;;  %v411_v3 = vld [vmem:[%s6817_s11 + $0x100] sm:$0xff]  ;;  %v413_v4 = vld [vmem:[%s6817_s11 + $0x110] sm:$0xff]  ;;  %v416_v5 = vld [vmem:[%s6817_s11 + $0x128] sm:$0xff] }
  0x4c   : > { %5878 = vmatpush3.bf16.msra.mxu0 %v6343_v9  ;;  %v418_v6 = vld [vmem:[%s6817_s11 + $0x138] sm:$0xff]  ;;  %v459_v7 = vpack.c.bf16 %v413_v4, %v411_v3  ;;  %v415_v9 = vld [vmem:[%s6817_s11 + $0x120] sm:$0xff]  ;;  %v420_v11 = vld [vmem:[%s6817_s11 + $0x148] sm:$0xff] }
  0x4d   : > { %5879 = vmatprep.subr.bf16.mxu0 %v6344_v10  ;;  %v462_v8 = vpack.c.bf16 %v418_v6, %v416_v5  ;;  %v417_v10 = vld [vmem:[%s6817_s11 + $0x130] sm:$0xff]  ;;  %v422_v12 = vld [vmem:[%s6817_s11 + $0x158] sm:$0xff]  ;;  %v428_v26 = vld [vmem:[%s6817_s11 + $0x188] sm:$0xff] }
  0x4e   : > { %v461_v13 = vpack.c.bf16 %v417_v10, %v415_v9  ;;  %v426_v19 = vld [vmem:[%s6817_s11 + $0x178] sm:$0xff]  ;;  %v425_v25 = vld [vmem:[%s6817_s11 + $0x170] sm:$0xff]  ;;  %v427_v32 = vld [vmem:[%s6817_s11 + $0x180] sm:$0xff] }
  0x4f   : > { %v430_v27 = vld [vmem:[%s6817_s11 + $0x198] sm:$0xff]  ;;  %v429_v33 = vld [vmem:[%s6817_s11 + $0x190] sm:$0xff]  ;;  %v432_v34 = vld [vmem:[%s6817_s11 + $0x1a8] sm:$0xff] }
  0x50   : > { %5880 = vmatpush3.bf16.msra.mxu0 %v6345_v14  ;;  %v464_v14 = vpack.c.bf16 %v422_v12, %v420_v11  ;;  %v468_v31 = vpack.c.bf16 %v430_v27, %v428_v26  ;;  %v431_v38 = vld [vmem:[%s6817_s11 + $0x1a0] sm:$0xff]  ;;  %v433_v39 = vld [vmem:[%s6817_s11 + $0x1b0] sm:$0xff]  ;;  %v436_v40 = vld [vmem:[%s6817_s11 + $0x1c8] sm:$0xff] }
  0x51   : > { %5881 = vmatprep.subr.bf16.mxu0 %v6346_v15  ;;  %v6653_v15 = vmov 0.0   ;;  %v435_v44 = vld [vmem:[%s6817_s11 + $0x1c0] sm:$0xff]  ;;  %v437_v45 = vld [vmem:[%s6817_s11 + $0x1d0] sm:$0xff]  ;;  %v440_v46 = vld [vmem:[%s6817_s11 + $0x1e8] sm:$0xff] }
  0x52   : > { %875 = vst.msk [vmem:[#allocation2] sm:$0xff] %vm874_vm0, %v6653_v15  ;;  %876 = vst.msk [vmem:[#allocation2 + $0x8] sm:$0xff] %vm874_vm0, %v6653_v15  ;;  %v439_v50 = vld [vmem:[%s6817_s11 + $0x1e0] sm:$0xff]  ;;  %v441_v51 = vld [vmem:[%s6817_s11 + $0x1f0] sm:$0xff] }
  0x53   : > { %880 = vst.msk [vmem:[#allocation2 + $0x198] sm:$0xff] %vm874_vm0, %v6653_v15  ;;  %881 = vst.msk [vmem:[#allocation2 + $0x1a0] sm:$0xff] %vm874_vm0, %v6653_v15  ;;  %v473_v52 = vpack.c.bf16 %v441_v51, %v439_v50  ;;  %v6352_v55 = vld [vmem:[%s8377_s4 + $0x70] sm:$0xff]   ;;  %v6354_v57 = vld [vmem:[%s8377_s4 + $0x68] sm:$0xff]  }
  0x54   : > { %5882 = vmatpush3.bf16.msra.mxu0 %v6347_v16  ;;  %v419_v16 = vld [vmem:[%s6817_s11 + $0x140] sm:$0xff]  ;;  %884 = vst.msk [vmem:[#allocation2] sm:$0x1] %vm883_vm1, %v6653_v15  ;;  %885 = vst.msk [vmem:[#allocation2 + $0x18] sm:$0x1] %vm883_vm1, %v6653_v15  ;;  %v6355_v58 = vld [vmem:[%s8377_s4 + $0x28] sm:$0xff]  }
  0x55   : > { %5883 = vmatprep.subr.bf16.mxu0 %v6348_v17  ;;  %v421_v17 = vld [vmem:[%s6817_s11 + $0x150] sm:$0xff]  ;;  %886 = vst.msk [vmem:[#allocation2 + $0x30] sm:$0x1] %vm883_vm1, %v6653_v15  ;;  %887 = vst.msk [vmem:[#allocation2 + $0x48] sm:$0x1] %vm883_vm1, %v6653_v15  ;;  %v6353_v56 = vld [vmem:[%s8377_s4 + $0x30] sm:$0xff]  }
  0x56   : > { %888 = vst.msk [vmem:[#allocation2 + $0x60] sm:$0x1] %vm883_vm1, %v6653_v15  ;;  %889 = vst.msk [vmem:[#allocation2 + $0x78] sm:$0x1] %vm883_vm1, %v6653_v15  ;;  %v463_v20 = vpack.c.bf16 %v421_v17, %v419_v16  ;;  %v7003_v62 = vld [vmem:[%s8375_s2] ss:$0 sm:$0xff] }
  0x57   : > { %890 = vst.msk [vmem:[#allocation2 + $0x90] sm:$0x1] %vm883_vm1, %v6653_v15  ;;  %891 = vst.msk [vmem:[#allocation2 + $0xa8] sm:$0x1] %vm883_vm1, %v6653_v15  ;;  %v6357_v63 = vld [vmem:[%s8377_s4 + $0x20] sm:$0xff]   ;;  %v6358_v6 = vld [vmem:[%s8377_s4 + $0x58] sm:$0xff]  }
  0x58   : > { %5884 = vmatpush3.bf16.msra.mxu0 %v6349_v18  ;;  %v424_v18 = vld [vmem:[%s6817_s11 + $0x168] sm:$0xff]  ;;  %892 = vst.msk [vmem:[#allocation2 + $0xc0] sm:$0x1] %vm883_vm1, %v6653_v15  ;;  %893 = vst.msk [vmem:[#allocation2 + $0xd8] sm:$0x1] %vm883_vm1, %v6653_v15 }
  0x59   : > { %894 = vst.msk [vmem:[#allocation2 + $0xf0] sm:$0x1] %vm883_vm1, %v6653_v15  ;;  %895 = vst.msk [vmem:[#allocation2 + $0x108] sm:$0x1] %vm883_vm1, %v6653_v15  ;;  %v466_v21 = vpack.c.bf16 %v426_v19, %v424_v18  ;;  %v1146_v22 = vld [vmem:[#allocation2 + $0x1] sm:$0xff]  ;;  %v6359_v11 = vld [vmem:[%s8377_s4 + $0x18] sm:$0xff]  }
  0x5a   : > { %896 = vst.msk [vmem:[#allocation2 + $0x120] sm:$0x1] %vm883_vm1, %v6653_v15  ;;  %897 = vst.msk [vmem:[#allocation2 + $0x138] sm:$0x1] %vm883_vm1, %v6653_v15  ;;  %v954_v5 = vld [vmem:[#allocation2 + $0x8] sm:$0xff] }
  0x5b   : > { %636 = vmatmul.mubr.bf16.vlgmr.msra.gmra.mxu0 %v443_v23  ;;  %898 = vst.msk [vmem:[#allocation2 + $0x150] sm:$0x1] %vm883_vm1, %v6653_v15  ;;  %899 = vst.msk [vmem:[#allocation2 + $0x168] sm:$0x1] %vm883_vm1, %v6653_v15  ;;  %v5612_v23 = vpack.c.bf16 %v1146_v22, %v1146_v22  ;;  %v953_v4 = vld [vmem:[#allocation2] sm:$0xff]  ;;  %v5581_v9 = vpack.c.bf16 %v954_v5, %v954_v5 }
  0x5c   : > { %643 = vmatprep.mubr.bf16.mxu0 %v446_v24  ;;  %900 = vst.msk [vmem:[#allocation2 + $0x180] sm:$0x1] %vm883_vm1, %v6653_v15  ;;  %903 = vst.msk [vmem:[#allocation2 + $0x29] sm:$0x1] %vm883_vm1, %v6653_v15  ;;  %v423_v24 = vld [vmem:[%s6817_s11 + $0x160] sm:$0xff]  ;;  %v1403_v10 = vld [vmem:[#allocation2 + $0x2] sm:$0xff] }
  0x5d   : > { %904 = vst.msk [vmem:[#allocation2 + $0x41] sm:$0x1] %vm883_vm1, %v6653_v15  ;;  %905 = vst.msk [vmem:[#allocation2 + $0x59] sm:$0x1] %vm883_vm1, %v6653_v15  ;;  %1274 = vrot.lane.b32.xlu0 %v5612_v23, %s6654_s23 }
  0x5e   : > { %906 = vst.msk [vmem:[#allocation2 + $0x71] sm:$0x1] %vm883_vm1, %v6653_v15  ;;  %907 = vst.msk [vmem:[#allocation2 + $0x89] sm:$0x1] %vm883_vm1, %v6653_v15 }
  0x5f   : > { %908 = vst.msk [vmem:[#allocation2 + $0xa1] sm:$0x1] %vm883_vm1, %v6653_v15  ;;  %909 = vst.msk [vmem:[#allocation2 + $0xb9] sm:$0x1] %vm883_vm1, %v6653_v15 }
  0x60   : > { %910 = vst.msk [vmem:[#allocation2 + $0xd1] sm:$0x1] %vm883_vm1, %v6653_v15  ;;  %911 = vst.msk [vmem:[#allocation2 + $0xe9] sm:$0x1] %vm883_vm1, %v6653_v15 }
  0x61   : > { %912 = vst.msk [vmem:[#allocation2 + $0x101] sm:$0x1] %vm883_vm1, %v6653_v15  ;;  %913 = vst.msk [vmem:[#allocation2 + $0x119] sm:$0x1] %vm883_vm1, %v6653_v15 }
  0x62   : > { %914 = vst.msk [vmem:[#allocation2 + $0x131] sm:$0x1] %vm883_vm1, %v6653_v15  ;;  %915 = vst.msk [vmem:[#allocation2 + $0x149] sm:$0x1] %vm883_vm1, %v6653_v15 }
  0x63   : > { %644 = vmatmul.mubr.bf16.gmra.mxu0 %v445_v29  ;;  %916 = vst.msk [vmem:[#allocation2 + $0x161] sm:$0x1] %vm883_vm1, %v6653_v15  ;;  %917 = vst.msk [vmem:[#allocation2 + $0x179] sm:$0x1] %vm883_vm1, %v6653_v15 }
  0x64   : > { %651 = vmatprep.mubr.bf16.mxu0 %v448_v30  ;;  %918 = vst.msk [vmem:[#allocation2 + $0x191] sm:$0x1] %vm883_vm1, %v6653_v15  ;;  %901 = vst.msk [vmem:[#allocation2 + $0x198] sm:$0x1] %vm883_vm1, %v6653_v15  ;;  %v465_v30 = vpack.c.bf16 %v425_v25, %v423_v24  ;;  %v6361_v24 = vld [vmem:[%s8377_s4 + $0x10] sm:$0xff]  }
  0x65   : > { %878 = vst.msk [vmem:[#allocation2 + $0x10] sm:$0x3] %vm877_vm2, %v6653_v15  ;;  %882 = vst.msk [vmem:[#allocation2 + $0x1a8] sm:$0x3] %vm877_vm2, %v6653_v15 }
  0x66   : > { %902 = vst.msk [vmem:[#allocation2 + $0x11] sm:$0x1] %vm883_vm1, %v6653_v15  ;;  %919 = vst.msk [vmem:[#allocation2 + $0x1a9] sm:$0x1] %vm883_vm1, %v6653_v15  ;;  %v5644_v15 = vpack.c.bf16 %v1403_v10, %v1403_v10 }
  0x67   : > { %1115 = vst.msk [vmem:[#allocation3 + $0x14] sm:$0xf] %vm1113_vm3, %v5581_v9 }
  0x68   : > { %1563 = vst.msk [vmem:[#allocation3 + $0x4] sm:$0xf] %vm1113_vm3, %v5644_v15 }
  0x6b   : > { %652 = vmatmul.mubr.bf16.gmra.mxu0 %v447_v35  ;;  %v434_v35 = vld [vmem:[%s6817_s11 + $0x1b8] sm:$0xff] }
  0x6c   : > { %659 = vmatprep.mubr.bf16.mxu0 %v450_v36  ;;  %v1147_v28 = vld [vmem:[#allocation2 + $0x9] sm:$0xff]  ;;  %v467_v36 = vpack.c.bf16 %v429_v33, %v427_v32  ;;  %v470_v37 = vpack.c.bf16 %v434_v35, %v432_v34 }
  0x6d   : > { %v5613_v29 = vpack.c.bf16 %v1147_v28, %v1147_v28  ;;  %v6363_v32 = vld [vmem:[%s8377_s4 + $0x8] sm:$0xff]  }
  0x6f   : > { %1276 = vrot.lane.b32.xlu1 %v5613_v29, %s6654_s23 }
  0x73   : > { %660 = vmatmul.mubr.bf16.gmra.mxu0 %v449_v41  ;;  %v438_v41 = vld [vmem:[%s6817_s11 + $0x1d8] sm:$0xff] }
  0x74   : > { %667 = vmatprep.mubr.bf16.mxu0 %v452_v42  ;;  %v469_v42 = vpack.c.bf16 %v433_v39, %v431_v38  ;;  %v472_v43 = vpack.c.bf16 %v438_v41, %v436_v40  ;;  %v6364_v38 = vld [vmem:[%s8377_s4 + $0x40] sm:$0xff]  }
  0x7b   : > { %668 = vmatmul.mubr.bf16.gmra.mxu0 %v451_v47  ;;  %v442_v47 = vld [vmem:[%s6817_s11 + $0x1f8] sm:$0xff] }
  0x7c   : > { %675 = vmatprep.mubr.bf16.mxu0 %v454_v48  ;;  %v471_v48 = vpack.c.bf16 %v437_v45, %v435_v44  ;;  %v474_v49 = vpack.c.bf16 %v442_v47, %v440_v46 }
  0x83   : > { %676 = vmatmul.mubr.bf16.gmra.mxu0 %v453_v53  ;;  %v6350_v53 = vld [vmem:[%s8377_s4 + $0x78] sm:$0xff]  }
  0x84   : > { %683 = vmatprep.mubr.bf16.mxu0 %v456_v54  ;;  %v6351_v54 = vld [vmem:[%s8377_s4 + $0x38] sm:$0xff]   ;;  %5981 = vmatprep.subr.bf16.mxu0 %v6350_v53 }
  0x85   : > { %6265 = vmatprep.subr.bf16.mxu1 %v6350_v53  ;;  %5982 = vmatpush3.bf16.msra.mxu0 %v6351_v54 }
  0x86   : > { %6273 = vmatpush3.bf16.msra.mxu1 %v6351_v54  ;;  %5983 = vmatprep.subr.bf16.mxu0 %v6352_v55 }
  0x87   : > { %6266 = vmatprep.subr.bf16.mxu1 %v6352_v55 }
  0x89   : > { %5984 = vmatpush3.bf16.msra.mxu0 %v6353_v56 }
  0x8a   : > { %6274 = vmatpush3.bf16.msra.mxu1 %v6353_v56  ;;  %5985 = vmatprep.subr.bf16.mxu0 %v6354_v57 }
  0x8b   : > { %684 = vmatmul.mubr.bf16.gmra.mxu0 %v455_v59  ;;  %6267 = vmatprep.subr.bf16.mxu1 %v6354_v57 }
  0x8c   : > { %691 = vmatprep.mubr.bf16.mxu0 %v458_v60  ;;  %v6356_v60 = vld [vmem:[%s8377_s4 + $0x60] sm:$0xff]  }
  0x8d   : > { %5986 = vmatpush3.bf16.msra.mxu0 %v6355_v58 }
  0x8e   : > { %6275 = vmatpush3.bf16.msra.mxu1 %v6355_v58  ;;  %5987 = vmatprep.subr.bf16.mxu0 %v6356_v60 }
  0x8f   : > { %6268 = vmatprep.subr.bf16.mxu1 %v6356_v60 }
  0x91   : > { %5988 = vmatpush3.bf16.msra.mxu0 %v6357_v63 }
  0x92   : > { %6276 = vmatpush3.bf16.msra.mxu1 %v6357_v63  ;;  %5989 = vmatprep.subr.bf16.mxu0 %v6358_v6 }
  0x93   : > { %692 = vmatmul.mubr.bf16.gmra.mxu0 %v457_v1  ;;  %v7011_v1 = vld [vmem:[%s8376_s3] ss:$0 sm:$0xff]  ;;  %6269 = vmatprep.subr.bf16.mxu1 %v6358_v6 }
  0x94   : > { %699 = vmatprep.mubr.bf16.mxu0 %v460_v2 }
  0x95   : > { %5990 = vmatpush3.bf16.msra.mxu0 %v6359_v11 }
  0x96   : > { %6277 = vmatpush3.bf16.msra.mxu1 %v6359_v11 }
  0x9b   : > { %700 = vmatmul.mubr.bf16.gmra.mxu0 %v459_v7 }
  0x9c   : > { %707 = vmatprep.mubr.bf16.mxu0 %v462_v8  ;;  %v5580_v8 = vpack.c.bf16 %v953_v4, %v953_v4 }
  0x9e   : > { %1114 = vst.msk [vmem:[#allocation3] sm:$0xf] %vm1113_vm3, %v5580_v8 }
  0xa3   : > { %708 = vmatmul.mubr.bf16.gmra.mxu0 %v461_v13 }
  0xa4   : > { %715 = vmatprep.mubr.bf16.mxu0 %v464_v14 }
  0xab   : > { %716 = vmatmul.mubr.bf16.gmra.mxu0 %v463_v20  ;;  %v6360_v20 = vld [vmem:[%s8377_s4 + $0x50] sm:$0xff]  }
  0xac   : > { %723 = vmatprep.mubr.bf16.mxu0 %v466_v21  ;;  %v1404_v21 = vld [vmem:[#allocation2 + $0xa] sm:$0xff]  ;;  %5991 = vmatprep.subr.bf16.mxu0 %v6360_v20 }
  0xad   : > { %v5645_v23 = vpack.c.bf16 %v1404_v21, %v1404_v21  ;;  %6270 = vmatprep.subr.bf16.mxu1 %v6360_v20  ;;  %5992 = vmatpush3.bf16.msra.mxu0 %v6361_v24 }
  0xae   : > { %6278 = vmatpush3.bf16.msra.mxu1 %v6361_v24 }
  0xaf   : > { %1564 = vst.msk [vmem:[#allocation3 + $0x18] sm:$0xf] %vm1113_vm3, %v5645_v23 }
  0xb3   : > { %724 = vmatmul.mubr.bf16.gmra.mxu0 %v465_v30  ;;  %v6362_v30 = vld [vmem:[%s8377_s4 + $0x48] sm:$0xff]  }
  0xb4   : > { %731 = vmatprep.mubr.bf16.mxu0 %v468_v31  ;;  %5993 = vmatprep.subr.bf16.mxu0 %v6362_v30 }
  0xb5   : > { %6271 = vmatprep.subr.bf16.mxu1 %v6362_v30  ;;  %5994 = vmatpush3.bf16.msra.mxu0 %v6363_v32 }
  0xb6   : > { %6279 = vmatpush3.bf16.msra.mxu1 %v6363_v32  ;;  %5995 = vmatprep.subr.bf16.mxu0 %v6364_v38 }
  0xb7   : > { %6272 = vmatprep.subr.bf16.mxu1 %v6364_v38 }
  0xbb   : > { %732 = vmatmul.mubr.bf16.gmra.mxu0 %v467_v36 }
  0xbc   : > { %739 = vmatprep.mubr.bf16.mxu0 %v470_v37 }
  0xc3   : > { %740 = vmatmul.mubr.bf16.gmra.mxu0 %v469_v42  ;;  %v6365_v42 = vld [vmem:[%s8377_s4] sm:$0xff]  }
  0xc4   : > { %747 = vmatprep.mubr.bf16.mxu0 %v472_v43  ;;  %5996 = vmatpush3.bf16.msra.mxu0 %v6365_v42 }
  0xc5   : > { %6280 = vmatpush3.bf16.msra.mxu1 %v6365_v42 }
  0xcb   : > { %748 = vmatmul.mubr.bf16.gmra.mxu0 %v471_v48 }
  0xcc   : > { %755 = vmatprep.mubr.bf16.mxu0 %v474_v49 }
  0xcf   : > { %v1275_v14 = vpop.permute.xlu0 %1274 }
  0xd0   : > { %1371 = vst.msk [vmem:[#allocation3] sm:$0xf] %vm1370_vm4, %v1275_v14 }
  0xd3   : > { %756 = vmatmul.mubr.bf16.gmra.mxu0 %v473_v52 }
  0xe1   : > { %v1277_v17 = vpop.permute.xlu1 %1276 }
  0xe2   : > { %1372 = vst.msk [vmem:[#allocation3 + $0x14] sm:$0xf] %vm1370_vm4, %v1277_v17 }
 0x11b   : > { %v5885_v59 = vpop.f32.mrf.mxu0 }
 0x11d   : > { %v5886_v61 = vpop.f32.mrf.mxu0 }
 0x11e   : > { %v5887_v0 = vadd.f32 %v5886_v61, %v5885_v59 }
 0x11f   : > { %v5888_v2 = vpop.f32.mrf.mxu0 }
 0x120   : > { %v771_v3 = vmul.f32 %v5887_v0, %v7003_v62 }
 0x121   : > { %v5889_v7 = vpop.f32.mrf.mxu0 }
 0x122   : > { %v810_v12 = vadd.f32 %v7011_v1, %v771_v3  ;;  %v5890_v13 = vadd.f32 %v5889_v7, %v5888_v2 }
 0x123   : > { %v5891_v16 = vpop.f32.mrf.mxu0 }
 0x124   : > { %v842_v18 = vmax.f32 %v810_v12, 0.0  ;;  %v772_v19 = vmul.f32 %v5890_v13, %v7003_v62 }
 0x125   : > { %v5892_v22 = vpop.f32.mrf.mxu0 }
 0x126   : > { %921 = vst.msk [vmem:[#allocation2 + $0x19] sm:$0xff] %vm874_vm0, %v842_v18  ;;  %v811_v25 = vadd.f32 %v7011_v1, %v772_v19  ;;  %v5893_v26 = vadd.f32 %v5892_v22, %v5891_v16 }
 0x127   : > { %v5894_v27 = vpop.f32.mrf.mxu0 }
 0x128   : > { %v843_v28 = vmax.f32 %v811_v25, 0.0  ;;  %v773_v29 = vmul.f32 %v5893_v26, %v7003_v62 }
 0x129   : > { %v5895_v31 = vpop.f32.mrf.mxu0 }
 0x12a   : > { %922 = vst.msk [vmem:[#allocation2 + $0x21] sm:$0xff] %vm874_vm0, %v843_v28  ;;  %v812_v33 = vadd.f32 %v7011_v1, %v773_v29  ;;  %v5896_v34 = vadd.f32 %v5895_v31, %v5894_v27 }
 0x12b   : > { %v5897_v35 = vpop.f32.mrf.mxu0 }
 0x12c   : > { %v844_v36 = vmax.f32 %v812_v33, 0.0  ;;  %v774_v37 = vmul.f32 %v5896_v34, %v7003_v62 }
 0x12d   : > { %v5898_v39 = vpop.f32.mrf.mxu0  ;;  %v1595_v40 = vld [vmem:[#allocation2 + $0x18] sm:$0xff] }
 0x12e   : > { %v1148_v41 = vld [vmem:[#allocation2 + $0x19] sm:$0xff]  ;;  %923 = vst.msk [vmem:[#allocation2 + $0x31] sm:$0xff] %vm874_vm0, %v844_v36  ;;  %v813_v43 = vadd.f32 %v7011_v1, %v774_v37  ;;  %v5899_v44 = vadd.f32 %v5898_v39, %v5897_v35  ;;  %v5676_v45 = vpack.c.bf16 %v1595_v40, %v1595_v40 }
 0x12f   : > { %v5614_v46 = vpack.c.bf16 %v1148_v41, %v1148_v41  ;;  %v5900_v47 = vpop.f32.mrf.mxu0 }
 0x130   : > { %v845_v48 = vmax.f32 %v813_v43, 0.0  ;;  %v775_v49 = vmul.f32 %v5899_v44, %v7003_v62  ;;  %1723 = vrot.lane.b32.xlu0 %v5676_v45, %s6654_s23  ;;  %1116 = vst.msk [vmem:[#allocation3 + $0x28] sm:$0xf] %vm1113_vm3, %v5676_v45 }
 0x131   : > { %2011 = vst.msk [vmem:[#allocation3 + $0x8] sm:$0xf] %vm1113_vm3, %v5614_v46  ;;  %v5901_v50 = vpop.f32.mrf.mxu0  ;;  %v1596_v51 = vld [vmem:[#allocation2 + $0x20] sm:$0xff] }
 0x132   : > { %v1149_v52 = vld [vmem:[#allocation2 + $0x21] sm:$0xff]  ;;  %924 = vst.msk [vmem:[#allocation2 + $0x39] sm:$0xff] %vm874_vm0, %v845_v48  ;;  %v814_v54 = vadd.f32 %v7011_v1, %v775_v49  ;;  %v5902_v55 = vadd.f32 %v5901_v50, %v5900_v47  ;;  %v5677_v56 = vpack.c.bf16 %v1596_v51, %v1596_v51 }
 0x133   : > { %v2043_v53 = vld [vmem:[#allocation2 + $0x1a] sm:$0xff]  ;;  %v5615_v57 = vpack.c.bf16 %v1149_v52, %v1149_v52  ;;  %v2044_v58 = vld [vmem:[#allocation2 + $0x22] sm:$0xff]  ;;  %v5903_v59 = vpop.f32.mrf.mxu0 }
 0x134   : > { %v5740_v60 = vpack.c.bf16 %v2043_v53, %v2043_v53  ;;  %v5741_v61 = vpack.c.bf16 %v2044_v58, %v2044_v58  ;;  %v846_v63 = vmax.f32 %v814_v54, 0.0  ;;  %v776_v0 = vmul.f32 %v5902_v55, %v7003_v62  ;;  %1725 = vrot.lane.b32.xlu1 %v5677_v56, %s6654_s23  ;;  %1278 = vrot.lane.b32.xlu0 %v5614_v46, %s6654_s23 }
 0x135   : > { %1117 = vst.msk [vmem:[#allocation3 + $0x3c] sm:$0xf] %vm1113_vm3, %v5677_v56  ;;  %2012 = vst.msk [vmem:[#allocation3 + $0x1c] sm:$0xf] %vm1113_vm3, %v5615_v57  ;;  %v5904_v2 = vpop.f32.mrf.mxu0  ;;  %v1597_v3 = vld [vmem:[#allocation2 + $0x30] sm:$0xff] }
 0x136   : > { %1565 = vst.msk [vmem:[#allocation3 + $0x2c] sm:$0xf] %vm1113_vm3, %v5740_v60  ;;  %1566 = vst.msk [vmem:[#allocation3 + $0x40] sm:$0xf] %vm1113_vm3, %v5741_v61  ;;  %v2300_v4 = vld [vmem:[#allocation2 + $0x30] sm:$0xff]  ;;  %v815_v5 = vadd.f32 %v7011_v1, %v776_v0  ;;  %v5905_v6 = vadd.f32 %v5904_v2, %v5903_v59  ;;  %v5678_v7 = vpack.c.bf16 %v1597_v3, %v1597_v3 }
 0x137   : > { %925 = vst.msk [vmem:[#allocation2 + $0x49] sm:$0xff] %vm874_vm0, %v846_v63  ;;  %v1853_v8 = vld [vmem:[#allocation2 + $0x31] sm:$0xff]  ;;  %v5906_v9 = vpop.f32.mrf.mxu0  ;;  %v5772_v10 = vpack.c.bf16 %v2300_v4, %v2300_v4 }
 0x138   : > { %v5710_v11 = vpack.c.bf16 %v1853_v8, %v1853_v8  ;;  %v847_v12 = vmax.f32 %v815_v5, 0.0  ;;  %v777_v13 = vmul.f32 %v5905_v6, %v7003_v62  ;;  %1280 = vrot.lane.b32.xlu1 %v5615_v57, %s6654_s23  ;;  %2171 = vrot.lane.b32.xlu0 %v5740_v60, %s6654_s23  ;;  %1118 = vst.msk [vmem:[#allocation3 + $0x50] sm:$0xf] %vm1113_vm3, %v5678_v7  ;;  %v1150_v25 = vld [vmem:[#allocation2 + $0x31] sm:$0xff] }
 0x139   : > { %v2748_v14 = vld [vmem:[#allocation2 + $0x32] sm:$0xff]  ;;  %v5907_v15 = vpop.f32.mrf.mxu0  ;;  %2460 = vst.msk [vmem:[#allocation3 + $0xc] sm:$0xf] %vm1113_vm3, %v5772_v10  ;;  %v2046_v22 = vld [vmem:[#allocation2 + $0x3a] sm:$0xff]  ;;  %v7093_v40 = vpack.c.bf16 %v1150_v25, %v1150_v25 }
 0x13a   : > { %v1598_v16 = vld [vmem:[#allocation2 + $0x38] sm:$0xff]  ;;  %2013 = vst.msk [vmem:[#allocation3 + $0x30] sm:$0xf] %vm1113_vm3, %v5710_v11  ;;  %v5836_v17 = vpack.c.bf16 %v2748_v14, %v2748_v14  ;;  %v816_v18 = vadd.f32 %v7011_v1, %v777_v13  ;;  %v5908_v19 = vadd.f32 %v5907_v15, %v5906_v9  ;;  %v7079_v27 = vpack.c.bf16 %v2046_v22, %v2046_v22 }
 0x13b   : > { %926 = vst.msk [vmem:[#allocation2 + $0x51] sm:$0xff] %vm874_vm0, %v847_v12  ;;  %v5679_v20 = vpack.c.bf16 %v1598_v16, %v1598_v16  ;;  %v2045_v21 = vld [vmem:[#allocation2 + $0x32] sm:$0xff]  ;;  %v5909_v24 = vpop.f32.mrf.mxu0  ;;  %v2749_v30 = vld [vmem:[#allocation2 + $0x3a] sm:$0xff] }
 0x13c   : > { %v2301_v23 = vld [vmem:[#allocation2 + $0x38] sm:$0xff]  ;;  %v7077_v26 = vpack.c.bf16 %v2045_v21, %v2045_v21  ;;  %2908 = vst.msk [vmem:[#allocation3 + $0x10] sm:$0xf] %vm1113_vm3, %v5836_v17  ;;  %v848_v31 = vmax.f32 %v816_v18, 0.0  ;;  %v778_v32 = vmul.f32 %v5908_v19, %v7003_v62  ;;  %2173 = vrot.lane.b32.xlu1 %v5741_v61, %s6654_s23  ;;  %1727 = vrot.lane.b32.xlu0 %v5678_v7, %s6654_s23  ;;  %1568 = vst.msk [vmem:[#allocation3 + $0x68] sm:$0xf] %vm1113_vm3, %v7079_v27 }
 0x13d   : > { %v5773_v28 = vpack.c.bf16 %v2301_v23, %v2301_v23  ;;  %v1854_v29 = vld [vmem:[#allocation2 + $0x39] sm:$0xff]  ;;  %1119 = vst.msk [vmem:[#allocation3 + $0x64] sm:$0xf] %vm1113_vm3, %v5679_v20  ;;  %v5837_v34 = vpack.c.bf16 %v2749_v30, %v2749_v30  ;;  %v5910_v35 = vpop.f32.mrf.mxu0 }
 0x13e   : > { %v5711_v33 = vpack.c.bf16 %v1854_v29, %v1854_v29  ;;  %v1599_v36 = vld [vmem:[#allocation2 + $0x48] sm:$0xff]  ;;  %1567 = vst.msk [vmem:[#allocation3 + $0x54] sm:$0xf] %vm1113_vm3, %v7077_v26  ;;  %v817_v38 = vadd.f32 %v7011_v1, %v778_v32  ;;  %v5911_v39 = vadd.f32 %v5910_v35, %v5909_v24  ;;  %v1151_v44 = vld [vmem:[#allocation2 + $0x39] sm:$0xff] }
 0x13f   : > { %2461 = vst.msk [vmem:[#allocation3 + $0x20] sm:$0xf] %vm1113_vm3, %v5773_v28  ;;  %v2302_v37 = vld [vmem:[#allocation2 + $0x48] sm:$0xff]  ;;  %v5680_v41 = vpack.c.bf16 %v1599_v36, %v1599_v36  ;;  %2909 = vst.msk [vmem:[#allocation3 + $0x24] sm:$0xf] %vm1113_vm3, %v5837_v34  ;;  %v5912_v43 = vpop.f32.mrf.mxu0  ;;  %v7106_v56 = vpack.c.bf16 %v1151_v44, %v1151_v44 }
 0x140   : > { %927 = vst.msk [vmem:[#allocation2 + $0x61] sm:$0xff] %vm874_vm0, %v848_v31  ;;  %v1855_v42 = vld [vmem:[#allocation2 + $0x49] sm:$0xff]  ;;  %v5774_v45 = vpack.c.bf16 %v2302_v37, %v2302_v37  ;;  %v849_v47 = vmax.f32 %v817_v38, 0.0  ;;  %v779_v48 = vmul.f32 %v5911_v39, %v7003_v62  ;;  %1729 = vrot.lane.b32.xlu1 %v5679_v20, %s6654_s23  ;;  %1282 = vrot.lane.b32.xlu0 %v7093_v40, %s6654_s23 }
 0x141   : > { %2014 = vst.msk [vmem:[#allocation3 + $0x44] sm:$0xf] %vm1113_vm3, %v5711_v33  ;;  %v5712_v46 = vpack.c.bf16 %v1855_v42, %v1855_v42  ;;  %1120 = vst.msk [vmem:[#allocation3 + $0x78] sm:$0xf] %vm1113_vm3, %v5680_v41  ;;  %v5913_v50 = vpop.f32.mrf.mxu0  ;;  %v1152_v52 = vld [vmem:[#allocation2 + $0x49] sm:$0xff] }
 0x142   : > { %v2750_v49 = vld [vmem:[#allocation2 + $0x4a] sm:$0xff]  ;;  %2462 = vst.msk [vmem:[#allocation3 + $0x34] sm:$0xf] %vm1113_vm3, %v5774_v45  ;;  %v818_v54 = vadd.f32 %v7011_v1, %v779_v48  ;;  %v5914_v55 = vadd.f32 %v5913_v50, %v5912_v43  ;;  %v2048_v59 = vld [vmem:[#allocation2 + $0x52] sm:$0xff]  ;;  %v7117_v10 = vpack.c.bf16 %v1152_v52, %v1152_v52 }
 0x143   : > { %v1600_v51 = vld [vmem:[#allocation2 + $0x50] sm:$0xff]  ;;  %2015 = vst.msk [vmem:[#allocation3 + $0x58] sm:$0xf] %vm1113_vm3, %v5712_v46  ;;  %v5838_v53 = vpack.c.bf16 %v2750_v49, %v2750_v49  ;;  %v5915_v60 = vpop.f32.mrf.mxu0  ;;  %v7110_v0 = vpack.c.bf16 %v2048_v59, %v2048_v59 }
 0x144   : > { %928 = vst.msk [vmem:[#allocation2 + $0x69] sm:$0xff] %vm874_vm0, %v849_v47  ;;  %v2047_v57 = vld [vmem:[#allocation2 + $0x4a] sm:$0xff]  ;;  %v850_v4 = vmax.f32 %v818_v54, 0.0  ;;  %v780_v5 = vmul.f32 %v5914_v55, %v7003_v62  ;;  %1284 = vrot.lane.b32.xlu1 %v7106_v56, %s6654_s23  ;;  %1731 = vrot.lane.b32.xlu0 %v5680_v41, %s6654_s23  ;;  %v2751_v8 = vld [vmem:[#allocation2 + $0x52] sm:$0xff]  ;;  %v5681_v15 = vpack.c.bf16 %v1600_v51, %v1600_v51 }
 0x145   : > { %v960_v58 = vld [vmem:[#allocation2 + $0x50] sm:$0xff]  ;;  %v7108_v61 = vpack.c.bf16 %v2047_v57, %v2047_v57  ;;  %2910 = vst.msk [vmem:[#allocation3 + $0x38] sm:$0xf] %vm1113_vm3, %v5838_v53  ;;  %v5916_v9 = vpop.f32.mrf.mxu0  ;;  %1570 = vst.msk [vmem:[#allocation3 + $0x90] sm:$0xf] %vm1113_vm3, %v7110_v0  ;;  %v5839_v12 = vpack.c.bf16 %v2751_v8, %v2751_v8 }
 0x146   : > { %v5587_v63 = vpack.c.bf16 %v960_v58, %v960_v58  ;;  %v2303_v2 = vld [vmem:[#allocation2 + $0x50] sm:$0xff]  ;;  %929 = vst.msk [vmem:[#allocation2 + $0x79] sm:$0xff] %vm874_vm0, %v850_v4  ;;  %v819_v13 = vadd.f32 %v7011_v1, %v780_v5  ;;  %v5917_v14 = vadd.f32 %v5916_v9, %v5915_v60 }
 0x147   : > { %v1856_v3 = vld [vmem:[#allocation2 + $0x51] sm:$0xff]  ;;  %v5775_v6 = vpack.c.bf16 %v2303_v2, %v2303_v2  ;;  %v1601_v11 = vld [vmem:[#allocation2 + $0x60] sm:$0xff]  ;;  %1569 = vst.msk [vmem:[#allocation3 + $0x7c] sm:$0xf] %vm1113_vm3, %v7108_v61  ;;  %v5918_v20 = vpop.f32.mrf.mxu0  ;;  %2911 = vst.msk [vmem:[#allocation3 + $0x4c] sm:$0xf] %vm1113_vm3, %v5839_v12 }
 0x148   : > { %v5713_v7 = vpack.c.bf16 %v1856_v3, %v1856_v3  ;;  %1121 = vst.msk [vmem:[#allocation3 + $0x8c] sm:$0xf] %vm1113_vm3, %v5587_v63  ;;  %v1153_v16 = vld [vmem:[#allocation2 + $0x51] sm:$0xff]  ;;  %v7126_v17 = vpack.c.bf16 %v1601_v11, %v1601_v11  ;;  %v2304_v18 = vld [vmem:[#allocation2 + $0x60] sm:$0xff]  ;;  %v851_v24 = vmax.f32 %v819_v13, 0.0  ;;  %v781_v25 = vmul.f32 %v5917_v14, %v7003_v62  ;;  %1733 = vrot.lane.b32.xlu1 %v5681_v15, %s6654_s23 }
 0x149   : > { %2463 = vst.msk [vmem:[#allocation3 + $0x48] sm:$0xf] %vm1113_vm3, %v5775_v6  ;;  %v1857_v19 = vld [vmem:[#allocation2 + $0x61] sm:$0xff]  ;;  %v5776_v22 = vpack.c.bf16 %v2304_v18, %v2304_v18  ;;  %1286 = vrot.lane.b32.xlu0 %v7117_v10, %s6654_s23  ;;  %v5919_v29 = vpop.f32.mrf.mxu0  ;;  %v7137_v30 = vpack.c.bf16 %v1153_v16, %v1153_v16 }
 0x14a   : > { %2016 = vst.msk [vmem:[#allocation3 + $0x6c] sm:$0xf] %vm1113_vm3, %v5713_v7  ;;  %v1154_v21 = vld [vmem:[#allocation2 + $0x61] sm:$0xff]  ;;  %v5714_v23 = vpack.c.bf16 %v1857_v19, %v1857_v19  ;;  %1122 = vst.msk [vmem:[#allocation3 + $0xa0] sm:$0xf] %vm1113_vm3, %v7126_v17  ;;  %v820_v33 = vadd.f32 %v7011_v1, %v781_v25  ;;  %v5920_v34 = vadd.f32 %v5919_v29, %v5918_v20 }
 0x14b   : > { %v2752_v28 = vld [vmem:[#allocation2 + $0x62] sm:$0xff]  ;;  %2464 = vst.msk [vmem:[#allocation3 + $0x5c] sm:$0xf] %vm1113_vm3, %v5776_v22  ;;  %v7143_v35 = vpack.c.bf16 %v1154_v21, %v1154_v21  ;;  %v2050_v38 = vld [vmem:[#allocation2 + $0x6a] sm:$0xff]  ;;  %v5921_v39 = vpop.f32.mrf.mxu0 }
 0x14c   : > { %v1602_v31 = vld [vmem:[#allocation2 + $0x68] sm:$0xff]  ;;  %2017 = vst.msk [vmem:[#allocation3 + $0x80] sm:$0xf] %vm1113_vm3, %v5714_v23  ;;  %v5840_v32 = vpack.c.bf16 %v2752_v28, %v2752_v28  ;;  %v7147_v43 = vpack.c.bf16 %v2050_v38, %v2050_v38  ;;  %v852_v46 = vmax.f32 %v820_v33, 0.0  ;;  %v782_v47 = vmul.f32 %v5920_v34, %v7003_v62  ;;  %1288 = vrot.lane.b32.xlu1 %v7137_v30, %s6654_s23 }
 0x14d   : > { %930 = vst.msk [vmem:[#allocation2 + $0x81] sm:$0xff] %vm874_vm0, %v851_v24  ;;  %v2049_v36 = vld [vmem:[#allocation2 + $0x62] sm:$0xff]  ;;  %v2753_v45 = vld [vmem:[#allocation2 + $0x6a] sm:$0xff]  ;;  %1290 = vrot.lane.b32.xlu0 %v7143_v35, %s6654_s23  ;;  %v5922_v51 = vpop.f32.mrf.mxu0  ;;  %v963_v52 = vld [vmem:[#allocation2 + $0x78] sm:$0xff]  ;;  %v5683_v57 = vpack.c.bf16 %v1602_v31, %v1602_v31 }
 0x14e   : > { %v962_v37 = vld [vmem:[#allocation2 + $0x68] sm:$0xff]  ;;  %v7145_v41 = vpack.c.bf16 %v2049_v36, %v2049_v36  ;;  %2912 = vst.msk [vmem:[#allocation3 + $0x60] sm:$0xf] %vm1113_vm3, %v5840_v32  ;;  %v5841_v49 = vpack.c.bf16 %v2753_v45, %v2753_v45  ;;  %1572 = vst.msk [vmem:[#allocation3 + $0xb8] sm:$0xf] %vm1113_vm3, %v7147_v43  ;;  %v821_v54 = vadd.f32 %v7011_v1, %v782_v47  ;;  %v2306_v59 = vld [vmem:[#allocation2 + $0x78] sm:$0xff] }
 0x14f   : > { %v5589_v42 = vpack.c.bf16 %v962_v37, %v962_v37  ;;  %v2305_v44 = vld [vmem:[#allocation2 + $0x68] sm:$0xff]  ;;  %931 = vst.msk [vmem:[#allocation2 + $0x91] sm:$0xff] %vm874_vm0, %v852_v46  ;;  %v5923_v55 = vadd.f32 %v5922_v51, %v5921_v39  ;;  %v5924_v60 = vpop.f32.mrf.mxu0  ;;  %v1603_v63 = vld [vmem:[#allocation2 + $0x78] sm:$0xff]  ;;  %v5590_v2 = vpack.c.bf16 %v963_v52, %v963_v52  ;;  %v5778_v3 = vpack.c.bf16 %v2306_v59, %v2306_v59 }
 0x150   : > { %v5777_v48 = vpack.c.bf16 %v2305_v44, %v2305_v44  ;;  %v1858_v50 = vld [vmem:[#allocation2 + $0x69] sm:$0xff]  ;;  %1571 = vst.msk [vmem:[#allocation3 + $0xa4] sm:$0xf] %vm1113_vm3, %v7145_v41  ;;  %2913 = vst.msk [vmem:[#allocation3 + $0x74] sm:$0xf] %vm1113_vm3, %v5841_v49  ;;  %v1859_v4 = vld [vmem:[#allocation2 + $0x79] sm:$0xff]  ;;  %1737 = vrot.lane.b32.xlu1 %v5683_v57, %s6654_s23  ;;  %v5684_v16 = vpack.c.bf16 %v1603_v63, %v1603_v63 }
 0x151   : > { %1123 = vst.msk [vmem:[#allocation3 + $0xb4] sm:$0xf] %vm1113_vm3, %v5589_v42  ;;  %v5715_v53 = vpack.c.bf16 %v1858_v50, %v1858_v50  ;;  %v1155_v58 = vld [vmem:[#allocation2 + $0x69] sm:$0xff]  ;;  %v853_v5 = vmax.f32 %v821_v54, 0.0  ;;  %v783_v6 = vmul.f32 %v5923_v55, %v7003_v62  ;;  %1735 = vrot.lane.b32.xlu0 %v7126_v17, %s6654_s23  ;;  %v5716_v7 = vpack.c.bf16 %v1859_v4, %v1859_v4  ;;  %v5925_v9 = vpop.f32.mrf.mxu0  ;;  %v1156_v12 = vld [vmem:[#allocation2 + $0x79] sm:$0xff] }
 0x152   : > { %2465 = vst.msk [vmem:[#allocation3 + $0x70] sm:$0xf] %vm1113_vm3, %v5777_v48  ;;  %v7169_v11 = vpack.c.bf16 %v1155_v58, %v1155_v58  ;;  %1124 = vst.msk [vmem:[#allocation3 + $0xc8] sm:$0xf] %vm1113_vm3, %v5590_v2  ;;  %v5926_v15 = vadd.f32 %v5925_v9, %v5924_v60  ;;  %v7190_v45 = vpack.c.bf16 %v1156_v12, %v1156_v12  ;;  %v6378_v47 = vld [vmem:[%s8377_s4 + $0x118] sm:$0xff]  }
 0x153   : > { %2018 = vst.msk [vmem:[#allocation3 + $0x94] sm:$0xf] %vm1113_vm3, %v5715_v53  ;;  %2466 = vst.msk [vmem:[#allocation3 + $0x84] sm:$0xf] %vm1113_vm3, %v5778_v3  ;;  %v822_v14 = vadd.f32 %v7011_v1, %v783_v6  ;;  %v5927_v20 = vpop.f32.mrf.mxu0  ;;  %6225 = vmatprep.subr.bf16.mxu1 %v6378_v47 }
 0x154   : > { %v2754_v8 = vld [vmem:[#allocation2 + $0x7a] sm:$0xff]  ;;  %932 = vst.msk [vmem:[#allocation2 + $0x99] sm:$0xff] %vm874_vm0, %v853_v5  ;;  %v2052_v23 = vld [vmem:[#allocation2 + $0x82] sm:$0xff]  ;;  %v784_v28 = vmul.f32 %v5926_v15, %v7003_v62  ;;  %1739 = vrot.lane.b32.xlu1 %v5684_v16, %s6654_s23 }
 0x155   : > { %v5842_v13 = vpack.c.bf16 %v2754_v8, %v2754_v8  ;;  %v1604_v18 = vld [vmem:[#allocation2 + $0x80] sm:$0xff]  ;;  %2019 = vst.msk [vmem:[#allocation3 + $0xa8] sm:$0xf] %vm1113_vm3, %v5716_v7  ;;  %v854_v25 = vmax.f32 %v822_v14, 0.0  ;;  %1292 = vrot.lane.b32.xlu0 %v7169_v11, %s6654_s23  ;;  %v7183_v29 = vpack.c.bf16 %v2052_v23, %v2052_v23  ;;  %v5928_v34 = vpop.f32.mrf.mxu0 }
 0x156   : > { %v2051_v19 = vld [vmem:[#allocation2 + $0x7a] sm:$0xff]  ;;  %v2755_v32 = vld [vmem:[#allocation2 + $0x82] sm:$0xff]  ;;  %v823_v39 = vadd.f32 %v7011_v1, %v784_v28  ;;  %v5929_v42 = vadd.f32 %v5928_v34, %v5927_v20  ;;  %v5685_v44 = vpack.c.bf16 %v1604_v18, %v1604_v18  ;;  %v965_v46 = vld [vmem:[#allocation2 + $0x90] sm:$0xff] }
 0x157   : > { %v964_v17 = vld [vmem:[#allocation2 + $0x80] sm:$0xff]  ;;  %v7176_v21 = vpack.c.bf16 %v2051_v19, %v2051_v19  ;;  %2914 = vst.msk [vmem:[#allocation3 + $0x88] sm:$0xf] %vm1113_vm3, %v5842_v13  ;;  %v5843_v37 = vpack.c.bf16 %v2755_v32, %v2755_v32  ;;  %1574 = vst.msk [vmem:[#allocation3 + $0xe0] sm:$0xf] %vm1113_vm3, %v7183_v29  ;;  %v5930_v48 = vpop.f32.mrf.mxu0  ;;  %v1605_v49 = vld [vmem:[#allocation2 + $0x90] sm:$0xff]  ;;  %v5592_v50 = vpack.c.bf16 %v965_v46, %v965_v46 }
 0x158   : > { %v5591_v22 = vpack.c.bf16 %v964_v17, %v964_v17  ;;  %v2307_v24 = vld [vmem:[#allocation2 + $0x80] sm:$0xff]  ;;  %933 = vst.msk [vmem:[#allocation2 + $0xa9] sm:$0xff] %vm874_vm0, %v854_v25  ;;  %v2308_v51 = vld [vmem:[#allocation2 + $0x90] sm:$0xff]  ;;  %v855_v53 = vmax.f32 %v823_v39, 0.0  ;;  %v785_v54 = vmul.f32 %v5929_v42, %v7003_v62  ;;  %1741 = vrot.lane.b32.xlu1 %v5685_v44, %s6654_s23  ;;  %v5686_v5 = vpack.c.bf16 %v1605_v49, %v1605_v49 }
 0x159   : > { %v5779_v31 = vpack.c.bf16 %v2307_v24, %v2307_v24  ;;  %v1860_v33 = vld [vmem:[#allocation2 + $0x81] sm:$0xff]  ;;  %1573 = vst.msk [vmem:[#allocation3 + $0xcc] sm:$0xf] %vm1113_vm3, %v7176_v21  ;;  %2915 = vst.msk [vmem:[#allocation3 + $0x9c] sm:$0xf] %vm1113_vm3, %v5843_v37  ;;  %v1861_v52 = vld [vmem:[#allocation2 + $0x91] sm:$0xff]  ;;  %1294 = vrot.lane.b32.xlu0 %v7190_v45, %s6654_s23  ;;  %v5780_v55 = vpack.c.bf16 %v2308_v51, %v2308_v51  ;;  %v5931_v59 = vpop.f32.mrf.mxu0 }
 0x15a   : > { %v1157_v36 = vld [vmem:[#allocation2 + $0x81] sm:$0xff]  ;;  %1125 = vst.msk [vmem:[#allocation3 + $0xdc] sm:$0xf] %vm1113_vm3, %v5591_v22  ;;  %v5717_v38 = vpack.c.bf16 %v1860_v33, %v1860_v33  ;;  %v5718_v57 = vpack.c.bf16 %v1861_v52, %v1861_v52  ;;  %v1158_v63 = vld [vmem:[#allocation2 + $0x91] sm:$0xff]  ;;  %1126 = vst.msk [vmem:[#allocation3 + $0xf0] sm:$0xf] %vm1113_vm3, %v5592_v50  ;;  %v824_v3 = vadd.f32 %v7011_v1, %v785_v54 }
 0x15b   : > { %2467 = vst.msk [vmem:[#allocation3 + $0x98] sm:$0xf] %vm1113_vm3, %v5779_v31  ;;  %v2756_v58 = vld [vmem:[#allocation2 + $0x92] sm:$0xff]  ;;  %v5623_v60 = vpack.c.bf16 %v1157_v36, %v1157_v36  ;;  %v5932_v4 = vadd.f32 %v5931_v59, %v5930_v48  ;;  %2468 = vst.msk [vmem:[#allocation3 + $0xac] sm:$0xf] %vm1113_vm3, %v5780_v55  ;;  %v5933_v9 = vpop.f32.mrf.mxu0  ;;  %v2054_v14 = vld [vmem:[#allocation2 + $0x9a] sm:$0xff]  ;;  %v5624_v33 = vpack.c.bf16 %v1158_v63, %v1158_v63 }
 0x15c   : > { %2020 = vst.msk [vmem:[#allocation3 + $0xbc] sm:$0xf] %vm1113_vm3, %v5717_v38  ;;  %v5844_v2 = vpack.c.bf16 %v2756_v58, %v2756_v58  ;;  %v1606_v6 = vld [vmem:[#allocation2 + $0x98] sm:$0xff]  ;;  %2021 = vst.msk [vmem:[#allocation3 + $0xd0] sm:$0xf] %vm1113_vm3, %v5718_v57  ;;  %v856_v16 = vmax.f32 %v824_v3, 0.0  ;;  %v7215_v19 = vpack.c.bf16 %v2054_v14, %v2054_v14 }
 0x15d   : > { %934 = vst.msk [vmem:[#allocation2 + $0xb1] sm:$0xff] %vm874_vm0, %v855_v53  ;;  %v2053_v7 = vld [vmem:[#allocation2 + $0x92] sm:$0xff]  ;;  %v2757_v15 = vld [vmem:[#allocation2 + $0x9a] sm:$0xff]  ;;  %v786_v18 = vmul.f32 %v5932_v4, %v7003_v62  ;;  %1296 = vrot.lane.b32.xlu1 %v5623_v60, %s6654_s23  ;;  %1743 = vrot.lane.b32.xlu0 %v5686_v5, %s6654_s23  ;;  %v5934_v23 = vpop.f32.mrf.mxu0  ;;  %v5687_v32 = vpack.c.bf16 %v1606_v6, %v1606_v6 }
 0x15e   : > { %v966_v8 = vld [vmem:[#allocation2 + $0x98] sm:$0xff]  ;;  %v7209_v12 = vpack.c.bf16 %v2053_v7, %v2053_v7  ;;  %2916 = vst.msk [vmem:[#allocation3 + $0xb0] sm:$0xf] %vm1113_vm3, %v5844_v2  ;;  %v5845_v17 = vpack.c.bf16 %v2757_v15, %v2757_v15  ;;  %v5935_v31 = vadd.f32 %v5934_v23, %v5933_v9  ;;  %1576 = vst.msk [vmem:[#allocation3 + $0x108] sm:$0xf] %vm1113_vm3, %v7215_v19 }
 0x15f   : > { %v5593_v13 = vpack.c.bf16 %v966_v8, %v966_v8  ;;  %v2309_v20 = vld [vmem:[#allocation2 + $0x98] sm:$0xff]  ;;  %935 = vst.msk [vmem:[#allocation2 + $0xc1] sm:$0xff] %vm874_vm0, %v856_v16  ;;  %v825_v28 = vadd.f32 %v7011_v1, %v786_v18  ;;  %v967_v36 = vld [vmem:[#allocation2 + $0xa8] sm:$0xff]  ;;  %v5936_v37 = vpop.f32.mrf.mxu0 }
 0x160   : > { %v1862_v22 = vld [vmem:[#allocation2 + $0x99] sm:$0xff]  ;;  %1575 = vst.msk [vmem:[#allocation3 + $0xf4] sm:$0xf] %vm1113_vm3, %v7209_v12  ;;  %v5781_v24 = vpack.c.bf16 %v2309_v20, %v2309_v20  ;;  %2917 = vst.msk [vmem:[#allocation3 + $0xc4] sm:$0xf] %vm1113_vm3, %v5845_v17  ;;  %v1607_v38 = vld [vmem:[#allocation2 + $0xa8] sm:$0xff]  ;;  %v5594_v39 = vpack.c.bf16 %v967_v36, %v967_v36  ;;  %v787_v47 = vmul.f32 %v5935_v31, %v7003_v62 }
 0x161   : > { %1127 = vst.msk [vmem:[#allocation3 + $0x104] sm:$0xf] %vm1113_vm3, %v5593_v13  ;;  %v5719_v25 = vpack.c.bf16 %v1862_v22, %v1862_v22  ;;  %v1159_v34 = vld [vmem:[#allocation2 + $0x99] sm:$0xff]  ;;  %v2310_v42 = vld [vmem:[#allocation2 + $0xa8] sm:$0xff]  ;;  %v857_v46 = vmax.f32 %v825_v28, 0.0  ;;  %1745 = vrot.lane.b32.xlu1 %v5687_v32, %s6654_s23  ;;  %1298 = vrot.lane.b32.xlu0 %v5624_v33, %s6654_s23  ;;  %v5937_v51 = vpop.f32.mrf.mxu0  ;;  %v5688_v58 = vpack.c.bf16 %v1607_v38, %v1607_v38 }
 0x162   : > { %2469 = vst.msk [vmem:[#allocation3 + $0xc0] sm:$0xf] %vm1113_vm3, %v5781_v24  ;;  %v1863_v44 = vld [vmem:[#allocation2 + $0xa9] sm:$0xff]  ;;  %v5782_v48 = vpack.c.bf16 %v2310_v42, %v2310_v42  ;;  %v5625_v52 = vpack.c.bf16 %v1159_v34, %v1159_v34  ;;  %1128 = vst.msk [vmem:[#allocation3 + $0x118] sm:$0xf] %vm1113_vm3, %v5594_v39  ;;  %v826_v55 = vadd.f32 %v7011_v1, %v787_v47 }
 0x163   : > { %2022 = vst.msk [vmem:[#allocation3 + $0xe4] sm:$0xf] %vm1113_vm3, %v5719_v25  ;;  %v5720_v49 = vpack.c.bf16 %v1863_v44, %v1863_v44  ;;  %v1160_v53 = vld [vmem:[#allocation2 + $0xa9] sm:$0xff]  ;;  %v5938_v57 = vadd.f32 %v5937_v51, %v5936_v37  ;;  %v5939_v2 = vpop.f32.mrf.mxu0 }
 0x164   : > { %v2758_v50 = vld [vmem:[#allocation2 + $0xaa] sm:$0xff]  ;;  %936 = vst.msk [vmem:[#allocation2 + $0xc9] sm:$0xff] %vm874_vm0, %v857_v46  ;;  %v2056_v5 = vld [vmem:[#allocation2 + $0xb2] sm:$0xff]  ;;  %v858_v7 = vmax.f32 %v826_v55, 0.0  ;;  %v5626_v24 = vpack.c.bf16 %v1160_v53, %v1160_v53 }
 0x165   : > { %v5846_v54 = vpack.c.bf16 %v2758_v50, %v2758_v50  ;;  %v1608_v59 = vld [vmem:[#allocation2 + $0xb0] sm:$0xff]  ;;  %2470 = vst.msk [vmem:[#allocation3 + $0xd4] sm:$0xf] %vm1113_vm3, %v5782_v48  ;;  %2023 = vst.msk [vmem:[#allocation3 + $0xf8] sm:$0xf] %vm1113_vm3, %v5720_v49  ;;  %v788_v8 = vmul.f32 %v5938_v57, %v7003_v62  ;;  %1300 = vrot.lane.b32.xlu1 %v5625_v52, %s6654_s23  ;;  %1747 = vrot.lane.b32.xlu0 %v5688_v58, %s6654_s23  ;;  %v5940_v16 = vpop.f32.mrf.mxu0 }
 0x166   : > { %v2055_v60 = vld [vmem:[#allocation2 + $0xaa] sm:$0xff]  ;;  %v2759_v6 = vld [vmem:[#allocation2 + $0xb2] sm:$0xff]  ;;  %v7241_v9 = vpack.c.bf16 %v2056_v5, %v2056_v5  ;;  %937 = vst.msk [vmem:[#allocation2 + $0xd9] sm:$0xff] %vm874_vm0, %v858_v7  ;;  %v5941_v22 = vadd.f32 %v5940_v16, %v5939_v2  ;;  %v5689_v23 = vpack.c.bf16 %v1608_v59, %v1608_v59  ;;  %v969_v28 = vld [vmem:[#allocation2 + $0xc0] sm:$0xff] }
 0x167   : > { %v968_v63 = vld [vmem:[#allocation2 + $0xb0] sm:$0xff]  ;;  %v7235_v3 = vpack.c.bf16 %v2055_v60, %v2055_v60  ;;  %2918 = vst.msk [vmem:[#allocation3 + $0xd8] sm:$0xf] %vm1113_vm3, %v5846_v54  ;;  %v5847_v13 = vpack.c.bf16 %v2759_v6, %v2759_v6  ;;  %v827_v20 = vadd.f32 %v7011_v1, %v788_v8  ;;  %v5942_v31 = vpop.f32.mrf.mxu0  ;;  %v1609_v32 = vld [vmem:[#allocation2 + $0xc0] sm:$0xff]  ;;  %v5596_v33 = vpack.c.bf16 %v969_v28, %v969_v28 }
 0x168   : > { %v5595_v4 = vpack.c.bf16 %v968_v63, %v968_v63  ;;  %v2311_v14 = vld [vmem:[#allocation2 + $0xb0] sm:$0xff]  ;;  %1578 = vst.msk [vmem:[#allocation3 + $0x130] sm:$0xf] %vm1113_vm3, %v7241_v9  ;;  %v2312_v34 = vld [vmem:[#allocation2 + $0xc0] sm:$0xff]  ;;  %v789_v38 = vmul.f32 %v5941_v22, %v7003_v62  ;;  %v5690_v52 = vpack.c.bf16 %v1609_v32, %v1609_v32 }
 0x169   : > { %v1864_v15 = vld [vmem:[#allocation2 + $0xb1] sm:$0xff]  ;;  %1577 = vst.msk [vmem:[#allocation3 + $0x11c] sm:$0xf] %vm1113_vm3, %v7235_v3  ;;  %v5783_v18 = vpack.c.bf16 %v2311_v14, %v2311_v14  ;;  %2919 = vst.msk [vmem:[#allocation3 + $0xec] sm:$0xf] %vm1113_vm3, %v5847_v13  ;;  %v1865_v36 = vld [vmem:[#allocation2 + $0xc1] sm:$0xff]  ;;  %1749 = vrot.lane.b32.xlu1 %v5689_v23, %s6654_s23  ;;  %1302 = vrot.lane.b32.xlu0 %v5626_v24, %s6654_s23  ;;  %v5784_v39 = vpack.c.bf16 %v2312_v34, %v2312_v34  ;;  %v5943_v46 = vpop.f32.mrf.mxu0 }
 0x16a   : > { %1129 = vst.msk [vmem:[#allocation3 + $0x12c] sm:$0xf] %vm1113_vm3, %v5595_v4  ;;  %v5721_v17 = vpack.c.bf16 %v1864_v15, %v1864_v15  ;;  %v1161_v25 = vld [vmem:[#allocation2 + $0xb1] sm:$0xff]  ;;  %v859_v37 = vmax.f32 %v827_v20, 0.0  ;;  %v5722_v42 = vpack.c.bf16 %v1865_v36, %v1865_v36  ;;  %v1162_v48 = vld [vmem:[#allocation2 + $0xc1] sm:$0xff]  ;;  %v828_v50 = vadd.f32 %v7011_v1, %v789_v38 }
 0x16b   : > { %2471 = vst.msk [vmem:[#allocation3 + $0xe8] sm:$0xf] %vm1113_vm3, %v5783_v18  ;;  %v2760_v44 = vld [vmem:[#allocation2 + $0xc2] sm:$0xff]  ;;  %v5627_v47 = vpack.c.bf16 %v1161_v25, %v1161_v25  ;;  %1130 = vst.msk [vmem:[#allocation3 + $0x140] sm:$0xf] %vm1113_vm3, %v5596_v33  ;;  %v5944_v51 = vadd.f32 %v5943_v46, %v5942_v31  ;;  %v5945_v57 = vpop.f32.mrf.mxu0  ;;  %v2058_v60 = vld [vmem:[#allocation2 + $0xca] sm:$0xff] }
 0x16c   : > { %2024 = vst.msk [vmem:[#allocation3 + $0x10c] sm:$0xf] %vm1113_vm3, %v5721_v17  ;;  %v5848_v49 = vpack.c.bf16 %v2760_v44, %v2760_v44  ;;  %v1610_v53 = vld [vmem:[#allocation2 + $0xc8] sm:$0xff]  ;;  %2472 = vst.msk [vmem:[#allocation3 + $0xfc] sm:$0xf] %vm1113_vm3, %v5784_v39  ;;  %v860_v2 = vmax.f32 %v828_v50, 0.0  ;;  %v7267_v5 = vpack.c.bf16 %v2058_v60, %v2058_v60  ;;  %v5628_v17 = vpack.c.bf16 %v1162_v48, %v1162_v48 }
 0x16d   : > { %938 = vst.msk [vmem:[#allocation2 + $0xe1] sm:$0xff] %vm874_vm0, %v859_v37  ;;  %v2057_v54 = vld [vmem:[#allocation2 + $0xc2] sm:$0xff]  ;;  %v2761_v63 = vld [vmem:[#allocation2 + $0xca] sm:$0xff]  ;;  %v790_v4 = vmul.f32 %v5944_v51, %v7003_v62  ;;  %1304 = vrot.lane.b32.xlu1 %v5627_v47, %s6654_s23  ;;  %1751 = vrot.lane.b32.xlu0 %v5690_v52, %s6654_s23  ;;  %v5946_v13 = vpop.f32.mrf.mxu0  ;;  %v5691_v18 = vpack.c.bf16 %v1610_v53, %v1610_v53  ;;  %v971_v22 = vld [vmem:[#allocation2 + $0xd8] sm:$0xff] }
 0x16e   : > { %v970_v55 = vld [vmem:[#allocation2 + $0xc8] sm:$0xff]  ;;  %2025 = vst.msk [vmem:[#allocation3 + $0x120] sm:$0xf] %vm1113_vm3, %v5722_v42  ;;  %v7261_v58 = vpack.c.bf16 %v2057_v54, %v2057_v54  ;;  %2920 = vst.msk [vmem:[#allocation3 + $0x100] sm:$0xf] %vm1113_vm3, %v5848_v49  ;;  %v5849_v6 = vpack.c.bf16 %v2761_v63, %v2761_v63  ;;  %v5947_v16 = vadd.f32 %v5946_v13, %v5945_v57  ;;  %v1611_v24 = vld [vmem:[#allocation2 + $0xd8] sm:$0xff] }
 0x16f   : > { %v5597_v59 = vpack.c.bf16 %v970_v55, %v970_v55  ;;  %v2313_v7 = vld [vmem:[#allocation2 + $0xc8] sm:$0xff]  ;;  %939 = vst.msk [vmem:[#allocation2 + $0xf1] sm:$0xff] %vm874_vm0, %v860_v2  ;;  %v829_v62 = vadd.f32 %v7011_v1, %v790_v4  ;;  %v5948_v23 = vpop.f32.mrf.mxu0  ;;  %v5598_v25 = vpack.c.bf16 %v971_v22, %v971_v22  ;;  %v2314_v28 = vld [vmem:[#allocation2 + $0xd8] sm:$0xff]  ;;  %v7282_v32 = vld [vmem:[%s8375_s2] ss:$0 sm:$0xff]  ;;  %v5692_v49 = vpack.c.bf16 %v1611_v24, %v1611_v24 }
 0x170   : > { %v1866_v8 = vld [vmem:[#allocation2 + $0xc9] sm:$0xff]  ;;  %1579 = vst.msk [vmem:[#allocation3 + $0x144] sm:$0xf] %vm1113_vm3, %v7261_v58  ;;  %v5785_v14 = vpack.c.bf16 %v2313_v7, %v2313_v7  ;;  %1580 = vst.msk [vmem:[#allocation3 + $0x158] sm:$0xf] %vm1113_vm3, %v7267_v5  ;;  %v1867_v31 = vld [vmem:[#allocation2 + $0xd9] sm:$0xff]  ;;  %v791_v33 = vmul.f32 %v7282_v32, %v5947_v16  ;;  %v5786_v34 = vpack.c.bf16 %v2314_v28, %v2314_v28 }
 0x171   : > { %1131 = vst.msk [vmem:[#allocation3 + $0x154] sm:$0xf] %vm1113_vm3, %v5597_v59  ;;  %v5723_v15 = vpack.c.bf16 %v1866_v8, %v1866_v8  ;;  %v1163_v20 = vld [vmem:[#allocation2 + $0xc9] sm:$0xff]  ;;  %2921 = vst.msk [vmem:[#allocation3 + $0x114] sm:$0xf] %vm1113_vm3, %v5849_v6  ;;  %v861_v1 = vmax.f32 %v829_v62, 0.0  ;;  %1753 = vrot.lane.b32.xlu1 %v5691_v18, %s6654_s23  ;;  %1306 = vrot.lane.b32.xlu0 %v5628_v17, %s6654_s23  ;;  %v5724_v36 = vpack.c.bf16 %v1867_v31, %v1867_v31  ;;  %v5949_v38 = vpop.f32.mrf.mxu0 }
 0x172   : > { %2473 = vst.msk [vmem:[#allocation3 + $0x110] sm:$0xf] %vm1113_vm3, %v5785_v14  ;;  %v5629_v39 = vpack.c.bf16 %v1163_v20, %v1163_v20  ;;  %v1164_v42 = vld [vmem:[#allocation2 + $0xd9] sm:$0xff]  ;;  %1132 = vst.msk [vmem:[#allocation3 + $0x168] sm:$0xf] %vm1113_vm3, %v5598_v25  ;;  %v5950_v48 = vadd.f32 %v5949_v38, %v5948_v23 }
 0x173   : > { %2026 = vst.msk [vmem:[#allocation3 + $0x134] sm:$0xf] %vm1113_vm3, %v5723_v15  ;;  %v7292_v46 = vld [vmem:[%s8376_s3] ss:$0 sm:$0xff]  ;;  %2474 = vst.msk [vmem:[#allocation3 + $0x124] sm:$0xf] %vm1113_vm3, %v5786_v34  ;;  %v5951_v53 = vpop.f32.mrf.mxu0  ;;  %v5630_v18 = vpack.c.bf16 %v1164_v42, %v1164_v42 }
 0x174   : > { %v2762_v37 = vld [vmem:[#allocation2 + $0xda] sm:$0xff]  ;;  %940 = vst.msk [vmem:[#allocation2 + $0xf9] sm:$0xff] %vm874_vm0, %v861_v1  ;;  %v830_v47 = vadd.f32 %v7292_v46, %v791_v33  ;;  %v2060_v57 = vld [vmem:[#allocation2 + $0xe2] sm:$0xff]  ;;  %v792_v63 = vmul.f32 %v7282_v32, %v5950_v48 }
 0x175   : > { %v5850_v44 = vpack.c.bf16 %v2762_v37, %v2762_v37  ;;  %v1612_v50 = vld [vmem:[#allocation2 + $0xe0] sm:$0xff]  ;;  %2027 = vst.msk [vmem:[#allocation3 + $0x148] sm:$0xf] %vm1113_vm3, %v5724_v36  ;;  %1308 = vrot.lane.b32.xlu1 %v5629_v39, %s6654_s23  ;;  %1755 = vrot.lane.b32.xlu0 %v5692_v49, %s6654_s23  ;;  %v7303_v2 = vpack.c.bf16 %v2060_v57, %v2060_v57  ;;  %v5952_v8 = vpop.f32.mrf.mxu0 }
 0x176   : > { %v2059_v51 = vld [vmem:[#allocation2 + $0xda] sm:$0xff]  ;;  %v2763_v59 = vld [vmem:[#allocation2 + $0xe2] sm:$0xff]  ;;  %v862_v60 = vmax.f32 %v830_v47, 0.0  ;;  %v831_v15 = vadd.f32 %v7292_v46, %v792_v63  ;;  %v5953_v62 = vadd.f32 %v5952_v8, %v5951_v53  ;;  %v5693_v16 = vpack.c.bf16 %v1612_v50, %v1612_v50  ;;  %v973_v20 = vld [vmem:[#allocation2 + $0xf0] sm:$0xff] }
 0x177   : > { %v972_v52 = vld [vmem:[#allocation2 + $0xe0] sm:$0xff]  ;;  %v7297_v54 = vpack.c.bf16 %v2059_v51, %v2059_v51  ;;  %2922 = vst.msk [vmem:[#allocation3 + $0x128] sm:$0xf] %vm1113_vm3, %v5850_v44  ;;  %v5851_v4 = vpack.c.bf16 %v2763_v59, %v2763_v59  ;;  %1582 = vst.msk [vmem:[#allocation3 + $0x180] sm:$0xf] %vm1113_vm3, %v7303_v2  ;;  %v5954_v22 = vpop.f32.mrf.mxu0  ;;  %v1613_v23 = vld [vmem:[#allocation2 + $0xf0] sm:$0xff]  ;;  %v5600_v24 = vpack.c.bf16 %v973_v20, %v973_v20 }
 0x178   : > { %v5599_v55 = vpack.c.bf16 %v972_v52, %v972_v52  ;;  %v2315_v6 = vld [vmem:[#allocation2 + $0xe0] sm:$0xff]  ;;  %941 = vst.msk [vmem:[#allocation2 + $0x109] sm:$0xff] %vm874_vm0, %v862_v60  ;;  %v2316_v25 = vld [vmem:[#allocation2 + $0xf0] sm:$0xff]  ;;  %v863_v31 = vmax.f32 %v831_v15, 0.0  ;;  %v793_v1 = vmul.f32 %v7282_v32, %v5953_v62  ;;  %v5694_v48 = vpack.c.bf16 %v1613_v23, %v1613_v23 }
 0x179   : > { %v1868_v7 = vld [vmem:[#allocation2 + $0xe1] sm:$0xff]  ;;  %1581 = vst.msk [vmem:[#allocation3 + $0x16c] sm:$0xf] %vm1113_vm3, %v7297_v54  ;;  %v5787_v13 = vpack.c.bf16 %v2315_v6, %v2315_v6  ;;  %2923 = vst.msk [vmem:[#allocation3 + $0x13c] sm:$0xf] %vm1113_vm3, %v5851_v4  ;;  %v1869_v28 = vld [vmem:[#allocation2 + $0xf1] sm:$0xff]  ;;  %1757 = vrot.lane.b32.xlu1 %v5693_v16, %s6654_s23  ;;  %1310 = vrot.lane.b32.xlu0 %v5630_v18, %s6654_s23  ;;  %v5788_v33 = vpack.c.bf16 %v2316_v25, %v2316_v25  ;;  %v5955_v37 = vpop.f32.mrf.mxu0 }
 0x17a   : > { %1133 = vst.msk [vmem:[#allocation3 + $0x17c] sm:$0xf] %vm1113_vm3, %v5599_v55  ;;  %v5725_v14 = vpack.c.bf16 %v1868_v7, %v1868_v7  ;;  %v1165_v17 = vld [vmem:[#allocation2 + $0xe1] sm:$0xff]  ;;  %v5726_v34 = vpack.c.bf16 %v1869_v28, %v1869_v28  ;;  %v1166_v39 = vld [vmem:[#allocation2 + $0xf1] sm:$0xff]  ;;  %1134 = vst.msk [vmem:[#allocation3 + $0x190] sm:$0xf] %vm1113_vm3, %v5600_v24  ;;  %v832_v44 = vadd.f32 %v7292_v46, %v793_v1 }
 0x17b   : > { %2475 = vst.msk [vmem:[#allocation3 + $0x138] sm:$0xf] %vm1113_vm3, %v5787_v13  ;;  %v2764_v36 = vld [vmem:[#allocation2 + $0xf2] sm:$0xff]  ;;  %v5631_v38 = vpack.c.bf16 %v1165_v17, %v1165_v17  ;;  %v5956_v47 = vadd.f32 %v5955_v37, %v5954_v22  ;;  %2476 = vst.msk [vmem:[#allocation3 + $0x14c] sm:$0xf] %vm1113_vm3, %v5788_v33  ;;  %v5957_v52 = vpop.f32.mrf.mxu0  ;;  %v2062_v57 = vld [vmem:[#allocation2 + $0xfa] sm:$0xff]  ;;  %v5632_v16 = vpack.c.bf16 %v1166_v39, %v1166_v39 }
 0x17c   : > { %2028 = vst.msk [vmem:[#allocation3 + $0x15c] sm:$0xf] %vm1113_vm3, %v5725_v14  ;;  %v5852_v42 = vpack.c.bf16 %v2764_v36, %v2764_v36  ;;  %v1614_v49 = vld [vmem:[#allocation2 + $0xf8] sm:$0xff]  ;;  %2029 = vst.msk [vmem:[#allocation3 + $0x170] sm:$0xf] %vm1113_vm3, %v5726_v34  ;;  %v864_v60 = vmax.f32 %v832_v44, 0.0  ;;  %v7329_v4 = vpack.c.bf16 %v2062_v57, %v2062_v57 }
 0x17d   : > { %942 = vst.msk [vmem:[#allocation2 + $0x111] sm:$0xff] %vm874_vm0, %v863_v31  ;;  %v2061_v50 = vld [vmem:[#allocation2 + $0xf2] sm:$0xff]  ;;  %v794_v63 = vmul.f32 %v7282_v32, %v5956_v47  ;;  %1312 = vrot.lane.b32.xlu1 %v5631_v38, %s6654_s23  ;;  %1759 = vrot.lane.b32.xlu0 %v5694_v48, %s6654_s23  ;;  %v5958_v8 = vpop.f32.mrf.mxu0  ;;  %v5695_v62 = vpack.c.bf16 %v1614_v49, %v1614_v49 }
 0x17e   : > { %v974_v51 = vld [vmem:[#allocation2 + $0xf8] sm:$0xff]  ;;  %v7323_v53 = vpack.c.bf16 %v2061_v50, %v2061_v50  ;;  %2924 = vst.msk [vmem:[#allocation3 + $0x150] sm:$0xf] %vm1113_vm3, %v5852_v42  ;;  %v5959_v15 = vadd.f32 %v5958_v8, %v5957_v52  ;;  %1584 = vst.msk [vmem:[#allocation3 + $0x1a8] sm:$0xf] %vm1113_vm3, %v7329_v4 }
 0x17f   : > { %v5601_v55 = vpack.c.bf16 %v974_v51, %v974_v51  ;;  %v2317_v59 = vld [vmem:[#allocation2 + $0xf8] sm:$0xff]  ;;  %943 = vst.msk [vmem:[#allocation2 + $0x121] sm:$0xff] %vm874_vm0, %v864_v60  ;;  %v833_v14 = vadd.f32 %v7292_v46, %v794_v63  ;;  %v975_v17 = vld [vmem:[#allocation2 + $0x108] sm:$0xff]  ;;  %v5960_v20 = vpop.f32.mrf.mxu0 }
 0x180   : > { %v5789_v6 = vpack.c.bf16 %v2317_v59, %v2317_v59  ;;  %v1870_v7 = vld [vmem:[#allocation2 + $0xf9] sm:$0xff]  ;;  %1583 = vst.msk [vmem:[#allocation3 + $0x194] sm:$0xf] %vm1113_vm3, %v7323_v53  ;;  %2925 = vst.msk [vmem:[#allocation3 + $0x164] sm:$0xf] %vm1113_vm3, %v7329_v4  ;;  %v1615_v22 = vld [vmem:[#allocation2 + $0x108] sm:$0xff]  ;;  %v5602_v23 = vpack.c.bf16 %v975_v17, %v975_v17  ;;  %v795_v31 = vmul.f32 %v7282_v32, %v5959_v15 }
 0x181   : > { %1135 = vst.msk [vmem:[#allocation3 + $0x1a4] sm:$0xf] %vm1113_vm3, %v5601_v55  ;;  %v5727_v13 = vpack.c.bf16 %v1870_v7, %v1870_v7  ;;  %v1167_v18 = vld [vmem:[#allocation2 + $0xf9] sm:$0xff]  ;;  %v2318_v24 = vld [vmem:[#allocation2 + $0x108] sm:$0xff]  ;;  %v865_v28 = vmax.f32 %v833_v14, 0.0  ;;  %1761 = vrot.lane.b32.xlu1 %v5695_v62, %s6654_s23  ;;  %1314 = vrot.lane.b32.xlu0 %v5632_v16, %s6654_s23  ;;  %v5961_v36 = vpop.f32.mrf.mxu0  ;;  %v5696_v47 = vpack.c.bf16 %v1615_v22, %v1615_v22 }
 0x182   : > { %2477 = vst.msk [vmem:[#allocation3 + $0x160] sm:$0xf] %vm1113_vm3, %v5789_v6  ;;  %v1871_v25 = vld [vmem:[#allocation2 + $0x109] sm:$0xff]  ;;  %v5790_v1 = vpack.c.bf16 %v2318_v24, %v2318_v24  ;;  %v5633_v37 = vpack.c.bf16 %v1167_v18, %v1167_v18  ;;  %1136 = vst.msk [vmem:[#allocation3 + $0x1b8] sm:$0xf] %vm1113_vm3, %v5602_v23  ;;  %v834_v42 = vadd.f32 %v7292_v46, %v795_v31 }
 0x183   : > { %2030 = vst.msk [vmem:[#allocation3 + $0x184] sm:$0xf] %vm1113_vm3, %v5727_v13  ;;  %v5728_v33 = vpack.c.bf16 %v1871_v25, %v1871_v25  ;;  %v1168_v38 = vld [vmem:[#allocation2 + $0x109] sm:$0xff]  ;;  %v5962_v44 = vadd.f32 %v5961_v36, %v5960_v20  ;;  %v5963_v51 = vpop.f32.mrf.mxu0 }
 0x184   : > { %v2766_v34 = vld [vmem:[#allocation2 + $0x10a] sm:$0xff]  ;;  %944 = vst.msk [vmem:[#allocation2 + $0x129] sm:$0xff] %vm874_vm0, %v865_v28  ;;  %v2064_v57 = vld [vmem:[#allocation2 + $0x112] sm:$0xff]  ;;  %v866_v60 = vmax.f32 %v834_v42, 0.0  ;;  %v5634_v18 = vpack.c.bf16 %v1168_v38, %v1168_v38 }
 0x185   : > { %v5854_v39 = vpack.c.bf16 %v2766_v34, %v2766_v34  ;;  %v1616_v48 = vld [vmem:[#allocation2 + $0x110] sm:$0xff]  ;;  %2478 = vst.msk [vmem:[#allocation3 + $0x174] sm:$0xf] %vm1113_vm3, %v5790_v1  ;;  %2031 = vst.msk [vmem:[#allocation3 + $0x198] sm:$0xf] %vm1113_vm3, %v5728_v33  ;;  %v796_v63 = vmul.f32 %v7282_v32, %v5962_v44  ;;  %1316 = vrot.lane.b32.xlu1 %v5633_v37, %s6654_s23  ;;  %1763 = vrot.lane.b32.xlu0 %v5696_v47, %s6654_s23  ;;  %v5964_v13 = vpop.f32.mrf.mxu0 }
 0x186   : > { %v2063_v49 = vld [vmem:[#allocation2 + $0x10a] sm:$0xff]  ;;  %v7356_v6 = vpack.c.bf16 %v2064_v57, %v2064_v57  ;;  %945 = vst.msk [vmem:[#allocation2 + $0x139] sm:$0xff] %vm874_vm0, %v866_v60  ;;  %v5965_v62 = vadd.f32 %v5964_v13, %v5963_v51  ;;  %v5697_v16 = vpack.c.bf16 %v1616_v48, %v1616_v48  ;;  %v977_v20 = vld [vmem:[#allocation2 + $0x120] sm:$0xff] }
 0x187   : > { %v976_v50 = vld [vmem:[#allocation2 + $0x110] sm:$0xff]  ;;  %v7350_v52 = vpack.c.bf16 %v2063_v49, %v2063_v49  ;;  %2926 = vst.msk [vmem:[#allocation3 + $0x178] sm:$0xf] %vm1113_vm3, %v5854_v39  ;;  %v835_v15 = vadd.f32 %v7292_v46, %v796_v63  ;;  %v5966_v22 = vpop.f32.mrf.mxu0  ;;  %v1617_v23 = vld [vmem:[#allocation2 + $0x120] sm:$0xff]  ;;  %v5604_v24 = vpack.c.bf16 %v977_v20, %v977_v20 }
 0x188   : > { %v5603_v55 = vpack.c.bf16 %v976_v50, %v976_v50  ;;  %v2319_v59 = vld [vmem:[#allocation2 + $0x110] sm:$0xff]  ;;  %1586 = vst.msk [vmem:[#allocation3 + $0x1d0] sm:$0xf] %vm1113_vm3, %v7356_v6  ;;  %2927 = vst.msk [vmem:[#allocation3 + $0x18c] sm:$0xf] %vm1113_vm3, %v7356_v6  ;;  %v2320_v25 = vld [vmem:[#allocation2 + $0x120] sm:$0xff]  ;;  %v797_v1 = vmul.f32 %v7282_v32, %v5965_v62  ;;  %v5698_v48 = vpack.c.bf16 %v1617_v23, %v1617_v23 }
 0x189   : > { %v5791_v7 = vpack.c.bf16 %v2319_v59, %v2319_v59  ;;  %v1872_v8 = vld [vmem:[#allocation2 + $0x111] sm:$0xff]  ;;  %1585 = vst.msk [vmem:[#allocation3 + $0x1bc] sm:$0xf] %vm1113_vm3, %v7350_v52  ;;  %v1873_v28 = vld [vmem:[#allocation2 + $0x121] sm:$0xff]  ;;  %v867_v31 = vmax.f32 %v835_v15, 0.0  ;;  %1765 = vrot.lane.b32.xlu1 %v5697_v16, %s6654_s23  ;;  %1318 = vrot.lane.b32.xlu0 %v5634_v18, %s6654_s23  ;;  %v5792_v33 = vpack.c.bf16 %v2320_v25, %v2320_v25  ;;  %v5967_v37 = vpop.f32.mrf.mxu0 }
 0x18a   : > { %1137 = vst.msk [vmem:[#allocation3 + $0x1cc] sm:$0xf] %vm1113_vm3, %v5603_v55  ;;  %v5729_v14 = vpack.c.bf16 %v1872_v8, %v1872_v8  ;;  %v1169_v17 = vld [vmem:[#allocation2 + $0x111] sm:$0xff]  ;;  %v5730_v34 = vpack.c.bf16 %v1873_v28, %v1873_v28  ;;  %v1170_v39 = vld [vmem:[#allocation2 + $0x121] sm:$0xff]  ;;  %1138 = vst.msk [vmem:[#allocation3 + $0x1e0] sm:$0xf] %vm1113_vm3, %v5604_v24  ;;  %v836_v44 = vadd.f32 %v7292_v46, %v797_v1 }
 0x18b   : > { %2479 = vst.msk [vmem:[#allocation3 + $0x188] sm:$0xf] %vm1113_vm3, %v5791_v7  ;;  %v2768_v36 = vld [vmem:[#allocation2 + $0x122] sm:$0xff]  ;;  %v5635_v38 = vpack.c.bf16 %v1169_v17, %v1169_v17  ;;  %v5968_v47 = vadd.f32 %v5967_v37, %v5966_v22  ;;  %2480 = vst.msk [vmem:[#allocation3 + $0x19c] sm:$0xf] %vm1113_vm3, %v5792_v33  ;;  %v5969_v55 = vpop.f32.mrf.mxu0  ;;  %v2066_v60 = vld [vmem:[#allocation2 + $0x12a] sm:$0xff]  ;;  %v5636_v22 = vpack.c.bf16 %v1170_v39, %v1170_v39 }
 0x18c   : > { %2032 = vst.msk [vmem:[#allocation3 + $0x1ac] sm:$0xf] %vm1113_vm3, %v5729_v14  ;;  %v5856_v42 = vpack.c.bf16 %v2768_v36, %v2768_v36  ;;  %v1618_v49 = vld [vmem:[#allocation2 + $0x128] sm:$0xff]  ;;  %2033 = vst.msk [vmem:[#allocation3 + $0x1c0] sm:$0xf] %vm1113_vm3, %v5730_v34  ;;  %v868_v7 = vmax.f32 %v836_v44, 0.0  ;;  %v7383_v13 = vpack.c.bf16 %v2066_v60, %v2066_v60 }
 0x18d   : > { %946 = vst.msk [vmem:[#allocation2 + $0x141] sm:$0xff] %vm874_vm0, %v867_v31  ;;  %v2065_v50 = vld [vmem:[#allocation2 + $0x122] sm:$0xff]  ;;  %v798_v8 = vmul.f32 %v7282_v32, %v5968_v47  ;;  %1320 = vrot.lane.b32.xlu1 %v5635_v38, %s6654_s23  ;;  %1767 = vrot.lane.b32.xlu0 %v5698_v48, %s6654_s23  ;;  %v5970_v62 = vpop.f32.mrf.mxu0  ;;  %v5699_v20 = vpack.c.bf16 %v1618_v49, %v1618_v49  ;;  %v979_v24 = vld [vmem:[#allocation2 + $0x138] sm:$0xff] }
 0x18e   : > { %v978_v51 = vld [vmem:[#allocation2 + $0x128] sm:$0xff]  ;;  %v7377_v57 = vpack.c.bf16 %v2065_v50, %v2065_v50  ;;  %2928 = vst.msk [vmem:[#allocation3 + $0x1a0] sm:$0xf] %vm1113_vm3, %v5856_v42  ;;  %v5971_v17 = vadd.f32 %v5970_v62, %v5969_v55  ;;  %1588 = vst.msk [vmem:[#allocation3 + $0x1f8] sm:$0xf] %vm1113_vm3, %v7383_v13  ;;  %v1619_v28 = vld [vmem:[#allocation2 + $0x138] sm:$0xff]  ;;  %v5606_v31 = vpack.c.bf16 %v979_v24, %v979_v24 }
 0x18f   : > { %v5605_v59 = vpack.c.bf16 %v978_v51, %v978_v51  ;;  %v2321_v63 = vld [vmem:[#allocation2 + $0x128] sm:$0xff]  ;;  %947 = vst.msk [vmem:[#allocation2 + $0x151] sm:$0xff] %vm874_vm0, %v868_v7  ;;  %v837_v18 = vadd.f32 %v7292_v46, %v798_v8  ;;  %v5972_v25 = vpop.f32.mrf.mxu0  ;;  %v2322_v1 = vld [vmem:[#allocation2 + $0x138] sm:$0xff]  ;;  %v5700_v51 = vpack.c.bf16 %v1619_v28, %v1619_v28 }
 0x190   : > { %v5793_v14 = vpack.c.bf16 %v2321_v63, %v2321_v63  ;;  %v1874_v15 = vld [vmem:[#allocation2 + $0x129] sm:$0xff]  ;;  %1587 = vst.msk [vmem:[#allocation3 + $0x1e4] sm:$0xf] %vm1113_vm3, %v7377_v57  ;;  %2929 = vst.msk [vmem:[#allocation3 + $0x1b4] sm:$0xf] %vm1113_vm3, %v7383_v13  ;;  %v1875_v33 = vld [vmem:[#allocation2 + $0x139] sm:$0xff]  ;;  %v799_v36 = vmul.f32 %v7282_v32, %v5971_v17  ;;  %v5794_v38 = vpack.c.bf16 %v2322_v1, %v2322_v1 }
 0x191   : > { %1139 = vst.msk [vmem:[#allocation3 + $0x1f4] sm:$0xf] %vm1113_vm3, %v5605_v59  ;;  %v5731_v16 = vpack.c.bf16 %v1874_v15, %v1874_v15  ;;  %v1171_v23 = vld [vmem:[#allocation2 + $0x129] sm:$0xff]  ;;  %v869_v34 = vmax.f32 %v837_v18, 0.0  ;;  %1769 = vrot.lane.b32.xlu1 %v5699_v20, %s6654_s23  ;;  %1322 = vrot.lane.b32.xlu0 %v5636_v22, %s6654_s23  ;;  %v6395_v37 = vld [vmem:[%s8377_s4 + $0xf8] sm:$0xff]   ;;  %v5732_v39 = vpack.c.bf16 %v1875_v33, %v1875_v33  ;;  %v5973_v44 = vpop.f32.mrf.mxu0 }
 0x192   : > { %2481 = vst.msk [vmem:[#allocation3 + $0x1b0] sm:$0xf] %vm1113_vm3, %v5793_v14  ;;  %v5637_v47 = vpack.c.bf16 %v1171_v23, %v1171_v23  ;;  %1140 = vst.msk [vmem:[#allocation3 + $0x208] sm:$0xf] %vm1113_vm3, %v5606_v31  ;;  %v838_v49 = vadd.f32 %v7292_v46, %v799_v36  ;;  %v5974_v50 = vadd.f32 %v5973_v44, %v5972_v25  ;;  %v1172_v55 = vld [vmem:[#allocation2 + $0x139] sm:$0xff]  ;;  %6093 = vmatprep.subr.bf16.mxu0 %v6395_v37 }
 0x193   : > { %2034 = vst.msk [vmem:[#allocation3 + $0x1d4] sm:$0xf] %vm1113_vm3, %v5731_v16  ;;  %2482 = vst.msk [vmem:[#allocation3 + $0x1c4] sm:$0xf] %vm1113_vm3, %v5794_v38  ;;  %v5975_v63 = vpop.f32.mrf.mxu0  ;;  %v5638_v1 = vpack.c.bf16 %v1172_v55, %v1172_v55 }
 0x194   : > { %v2770_v42 = vld [vmem:[#allocation2 + $0x13a] sm:$0xff]  ;;  %948 = vst.msk [vmem:[#allocation2 + $0x159] sm:$0xff] %vm874_vm0, %v869_v34  ;;  %v2068_v15 = vld [vmem:[#allocation2 + $0x142] sm:$0xff]  ;;  %v870_v62 = vmax.f32 %v838_v49, 0.0  ;;  %v800_v16 = vmul.f32 %v7282_v32, %v5974_v50 }
 0x195   : > { %v5858_v48 = vpack.c.bf16 %v2770_v42, %v2770_v42  ;;  %v2067_v59 = vld [vmem:[#allocation2 + $0x13a] sm:$0xff]  ;;  %2035 = vst.msk [vmem:[#allocation3 + $0x1e8] sm:$0xf] %vm1113_vm3, %v5732_v39  ;;  %1324 = vrot.lane.b32.xlu1 %v5637_v47, %s6654_s23  ;;  %1771 = vrot.lane.b32.xlu0 %v5700_v51, %s6654_s23  ;;  %v7413_v18 = vpack.c.bf16 %v2068_v15, %v2068_v15  ;;  %v5976_v22 = vpop.f32.mrf.mxu0 }
 0x196   : > { %v980_v60 = vld [vmem:[#allocation2 + $0x140] sm:$0xff]  ;;  %v7407_v8 = vpack.c.bf16 %v2067_v59, %v2067_v59  ;;  %949 = vst.msk [vmem:[#allocation2 + $0x169] sm:$0xff] %vm874_vm0, %v870_v62  ;;  %v839_v25 = vadd.f32 %v7292_v46, %v800_v16  ;;  %v5977_v28 = vadd.f32 %v5976_v22, %v5975_v63  ;;  %v981_v34 = vld [vmem:[#allocation2 + $0x150] sm:$0xff] }
 0x197   : > { %v1620_v7 = vld [vmem:[#allocation2 + $0x140] sm:$0xff]  ;;  %v5607_v14 = vpack.c.bf16 %v980_v60, %v980_v60  ;;  %2930 = vst.msk [vmem:[#allocation3 + $0x1c8] sm:$0xf] %vm1113_vm3, %v5858_v48  ;;  %1590 = vst.msk [vmem:[#allocation3 + $0x220] sm:$0xf] %vm1113_vm3, %v7413_v18  ;;  %v5978_v36 = vpop.f32.mrf.mxu0  ;;  %v1621_v37 = vld [vmem:[#allocation2 + $0x150] sm:$0xff]  ;;  %v5608_v38 = vpack.c.bf16 %v981_v34, %v981_v34 }
 0x198   : > { %v2323_v17 = vld [vmem:[#allocation2 + $0x140] sm:$0xff]  ;;  %1589 = vst.msk [vmem:[#allocation3 + $0x20c] sm:$0xf] %vm1113_vm3, %v7407_v8  ;;  %v5701_v31 = vpack.c.bf16 %v1620_v7, %v1620_v7  ;;  %2931 = vst.msk [vmem:[#allocation3 + $0x1dc] sm:$0xf] %vm1113_vm3, %v7413_v18  ;;  %v2324_v39 = vld [vmem:[#allocation2 + $0x150] sm:$0xff]  ;;  %v801_v44 = vmul.f32 %v7282_v32, %v5977_v28  ;;  %v5702_v7 = vpack.c.bf16 %v1621_v37, %v1621_v37 }
 0x199   : > { %v1876_v20 = vld [vmem:[#allocation2 + $0x141] sm:$0xff]  ;;  %1141 = vst.msk [vmem:[#allocation3 + $0x21c] sm:$0xf] %vm1113_vm3, %v5607_v14  ;;  %v5795_v23 = vpack.c.bf16 %v2323_v17, %v2323_v17  ;;  %v871_v42 = vmax.f32 %v839_v25, 0.0  ;;  %1326 = vrot.lane.b32.xlu0 %v5638_v1, %s6654_s23  ;;  %v5796_v47 = vpack.c.bf16 %v2324_v39, %v2324_v39  ;;  %v1877_v48 = vld [vmem:[#allocation2 + $0x151] sm:$0xff]  ;;  %v5979_v50 = vpop.f32.mrf.mxu0 }
 0x19a   : > { %v5733_v24 = vpack.c.bf16 %v1876_v20, %v1876_v20  ;;  %v1173_v33 = vld [vmem:[#allocation2 + $0x141] sm:$0xff]  ;;  %1773 = vrot.lane.b32.xlu1 %v5701_v31, %s6654_s23  ;;  %1142 = vst.msk [vmem:[#allocation3 + $0x230] sm:$0xf] %vm1113_vm3, %v5608_v38  ;;  %v5734_v55 = vpack.c.bf16 %v1877_v48, %v1877_v48  ;;  %v840_v60 = vadd.f32 %v7292_v46, %v801_v44  ;;  %v1174_v14 = vld [vmem:[#allocation2 + $0x151] sm:$0xff] }
 0x19b   : > { %2483 = vst.msk [vmem:[#allocation3 + $0x1d8] sm:$0xf] %vm1113_vm3, %v5795_v23  ;;  %v2772_v49 = vld [vmem:[#allocation2 + $0x152] sm:$0xff]  ;;  %v5639_v51 = vpack.c.bf16 %v1173_v33, %v1173_v33  ;;  %v5980_v63 = vadd.f32 %v5979_v50, %v5978_v36  ;;  %2484 = vst.msk [vmem:[#allocation3 + $0x1ec] sm:$0xf] %vm1113_vm3, %v5796_v47  ;;  %v2070_v22 = vld [vmem:[#allocation2 + $0x15a] sm:$0xff]  ;;  %v5640_v36 = vpack.c.bf16 %v1174_v14, %v1174_v14 }
 0x19c   : > { %2036 = vst.msk [vmem:[#allocation3 + $0x1fc] sm:$0xf] %vm1113_vm3, %v5733_v24  ;;  %v5860_v59 = vpack.c.bf16 %v2772_v49, %v2772_v49  ;;  %v2069_v15 = vld [vmem:[#allocation2 + $0x152] sm:$0xff]  ;;  %2037 = vst.msk [vmem:[#allocation3 + $0x210] sm:$0xf] %vm1113_vm3, %v5734_v55  ;;  %v872_v23 = vmax.f32 %v840_v60, 0.0  ;;  %v7440_v25 = vpack.c.bf16 %v2070_v22, %v2070_v22 }
 0x19d   : > { %950 = vst.msk [vmem:[#allocation2 + $0x171] sm:$0xff] %vm874_vm0, %v871_v42  ;;  %v982_v62 = vld [vmem:[#allocation2 + $0x158] sm:$0xff]  ;;  %v7433_v17 = vpack.c.bf16 %v2069_v15, %v2069_v15  ;;  %v802_v24 = vmul.f32 %v7282_v32, %v5980_v63  ;;  %1775 = vrot.lane.b32.xlu0 %v5702_v7, %s6654_s23  ;;  %v983_v37 = vld [vmem:[#allocation2 + $0x168] sm:$0xff] }
 0x19e   : > { %v1622_v16 = vld [vmem:[#allocation2 + $0x158] sm:$0xff]  ;;  %v5609_v20 = vpack.c.bf16 %v982_v62, %v982_v62  ;;  %2932 = vst.msk [vmem:[#allocation3 + $0x1f0] sm:$0xf] %vm1113_vm3, %v5860_v59  ;;  %1328 = vrot.lane.b32.xlu1 %v5639_v51, %s6654_s23  ;;  %1592 = vst.msk [vmem:[#allocation3 + $0x248] sm:$0xf] %vm1113_vm3, %v7440_v25  ;;  %v1623_v39 = vld [vmem:[#allocation2 + $0x168] sm:$0xff]  ;;  %v5610_v42 = vpack.c.bf16 %v983_v37, %v983_v37 }
 0x19f   : > { %v2325_v28 = vld [vmem:[#allocation2 + $0x158] sm:$0xff]  ;;  %1591 = vst.msk [vmem:[#allocation3 + $0x234] sm:$0xf] %vm1113_vm3, %v7433_v17  ;;  %v841_v34 = vadd.f32 %v7292_v46, %v802_v24  ;;  %v5703_v32 = vpack.c.bf16 %v1622_v16, %v1622_v16  ;;  %2933 = vst.msk [vmem:[#allocation3 + $0x204] sm:$0xf] %vm1113_vm3, %v7440_v25  ;;  %v2326_v46 = vld [vmem:[#allocation2 + $0x168] sm:$0xff]  ;;  %v5704_v60 = vpack.c.bf16 %v1623_v39, %v1623_v39 }
 0x1a0   : > { %v1878_v31 = vld [vmem:[#allocation2 + $0x159] sm:$0xff]  ;;  %1143 = vst.msk [vmem:[#allocation3 + $0x244] sm:$0xf] %vm1113_vm3, %v5609_v20  ;;  %v5797_v1 = vpack.c.bf16 %v2325_v28, %v2325_v28  ;;  %v1879_v47 = vld [vmem:[#allocation2 + $0x169] sm:$0xff]  ;;  %1144 = vst.msk [vmem:[#allocation3 + $0x258] sm:$0xf] %vm1113_vm3, %v5610_v42  ;;  %v5798_v49 = vpack.c.bf16 %v2326_v46, %v2326_v46 }
 0x1a1   : > { %v5735_v33 = vpack.c.bf16 %v1878_v31, %v1878_v31  ;;  %951 = vst.msk [vmem:[#allocation2 + $0x181] sm:$0xff] %vm874_vm0, %v872_v23  ;;  %v1175_v38 = vld [vmem:[#allocation2 + $0x159] sm:$0xff]  ;;  %v873_v44 = vmax.f32 %v841_v34, 0.0  ;;  %1330 = vrot.lane.b32.xlu0 %v5640_v36, %s6654_s23  ;;  %v5736_v50 = vpack.c.bf16 %v1879_v47, %v1879_v47  ;;  %v1176_v63 = vld [vmem:[#allocation2 + $0x169] sm:$0xff] }
 0x1a2   : > { %2485 = vst.msk [vmem:[#allocation3 + $0x200] sm:$0xf] %vm1113_vm3, %v5797_v1  ;;  %1777 = vrot.lane.b32.xlu1 %v5703_v32, %s6654_s23  ;;  %v1724_v55 = vpop.permute.xlu0 %1723  ;;  %v5641_v59 = vpack.c.bf16 %v1175_v38, %v1175_v38  ;;  %2486 = vst.msk [vmem:[#allocation3 + $0x214] sm:$0xf] %vm1113_vm3, %v5798_v49  ;;  %v5642_v32 = vpack.c.bf16 %v1176_v63, %v1176_v63 }
 0x1a3   : > { %2038 = vst.msk [vmem:[#allocation3 + $0x224] sm:$0xf] %vm1113_vm3, %v5735_v33  ;;  %2039 = vst.msk [vmem:[#allocation3 + $0x238] sm:$0xf] %vm1113_vm3, %v5736_v50 }
 0x1a4   : > { %v2774_v48 = vld [vmem:[#allocation2 + $0x16a] sm:$0xff]  ;;  %952 = vst.msk [vmem:[#allocation2 + $0x189] sm:$0xff] %vm874_vm0, %v873_v44  ;;  %v2072_v20 = vld [vmem:[#allocation2 + $0x172] sm:$0xff] }
 0x1a5   : > { %v5862_v51 = vpack.c.bf16 %v2774_v48, %v2774_v48  ;;  %v2071_v7 = vld [vmem:[#allocation2 + $0x16a] sm:$0xff]  ;;  %1819 = vst.msk [vmem:[#allocation3 + $0x4] sm:$0xf] %vm1370_vm4, %v1724_v55  ;;  %1779 = vrot.lane.b32.xlu0 %v5704_v60, %s6654_s23  ;;  %v7465_v22 = vpack.c.bf16 %v2072_v20, %v2072_v20 }
 0x1a6   : > { %v984_v14 = vld [vmem:[#allocation2 + $0x170] sm:$0xff]  ;;  %v7458_v62 = vpack.c.bf16 %v2071_v7, %v2071_v7  ;;  %1332 = vrot.lane.b32.xlu1 %v5641_v59, %s6654_s23  ;;  %v1726_v1 = vpop.permute.xlu1 %1725  ;;  %v1279_v33 = vpop.permute.xlu0 %1278 }
 0x1a7   : > { %v1624_v15 = vld [vmem:[#allocation2 + $0x170] sm:$0xff]  ;;  %v5611_v16 = vpack.c.bf16 %v984_v14, %v984_v14  ;;  %2934 = vst.msk [vmem:[#allocation3 + $0x218] sm:$0xf] %vm1113_vm3, %v5862_v51  ;;  %1594 = vst.msk [vmem:[#allocation3 + $0x270] sm:$0xf] %vm1113_vm3, %v7465_v22 }
 0x1a8   : > { %v2327_v23 = vld [vmem:[#allocation2 + $0x170] sm:$0xff]  ;;  %1593 = vst.msk [vmem:[#allocation3 + $0x25c] sm:$0xf] %vm1113_vm3, %v7458_v62  ;;  %v5705_v34 = vpack.c.bf16 %v1624_v15, %v1624_v15  ;;  %2935 = vst.msk [vmem:[#allocation3 + $0x22c] sm:$0xf] %vm1113_vm3, %v7465_v22  ;;  %v1625_v37 = vld [vmem:[#allocation2 + $0x180] sm:$0xff] }
 0x1a9   : > { %v1880_v24 = vld [vmem:[#allocation2 + $0x171] sm:$0xff]  ;;  %1145 = vst.msk [vmem:[#allocation3 + $0x26c] sm:$0xf] %vm1113_vm3, %v5611_v16  ;;  %v5799_v28 = vpack.c.bf16 %v2327_v23, %v2327_v23  ;;  %v2328_v38 = vld [vmem:[#allocation2 + $0x180] sm:$0xff]  ;;  %1334 = vrot.lane.b32.xlu0 %v5642_v32, %s6654_s23  ;;  %v5706_v51 = vpack.c.bf16 %v1625_v37, %v1625_v37 }
 0x1aa   : > { %v5737_v31 = vpack.c.bf16 %v1880_v24, %v1880_v24  ;;  %v1177_v36 = vld [vmem:[#allocation2 + $0x171] sm:$0xff]  ;;  %1820 = vst.msk [vmem:[#allocation3 + $0x18] sm:$0xf] %vm1370_vm4, %v1726_v1  ;;  %1373 = vst.msk [vmem:[#allocation3 + $0x28] sm:$0xf] %vm1370_vm4, %v1279_v33  ;;  %v1881_v39 = vld [vmem:[#allocation2 + $0x181] sm:$0xff]  ;;  %1781 = vrot.lane.b32.xlu1 %v5705_v34, %s6654_s23  ;;  %v5800_v42 = vpack.c.bf16 %v2328_v38, %v2328_v38  ;;  %v1281_v48 = vpop.permute.xlu1 %1280  ;;  %v2172_v49 = vpop.permute.xlu0 %2171 }
 0x1ab   : > { %2487 = vst.msk [vmem:[#allocation3 + $0x228] sm:$0xf] %vm1113_vm3, %v5799_v28  ;;  %v5738_v44 = vpack.c.bf16 %v1881_v39, %v1881_v39  ;;  %v2776_v46 = vld [vmem:[#allocation2 + $0x182] sm:$0xff]  ;;  %v5643_v50 = vpack.c.bf16 %v1177_v36, %v1177_v36  ;;  %v2074_v55 = vld [vmem:[#allocation2 + $0x18a] sm:$0xff] }
 0x1ac   : > { %2040 = vst.msk [vmem:[#allocation3 + $0x24c] sm:$0xf] %vm1113_vm3, %v5737_v31  ;;  %v5864_v47 = vpack.c.bf16 %v2776_v46, %v2776_v46  ;;  %2488 = vst.msk [vmem:[#allocation3 + $0x23c] sm:$0xf] %vm1113_vm3, %v5800_v42  ;;  %v1626_v59 = vld [vmem:[#allocation2 + $0x188] sm:$0xff]  ;;  %v7484_v60 = vpack.c.bf16 %v2074_v55, %v2074_v55  ;;  %v6396_v31 = vld [vmem:[%s8377_s4 + $0xb8] sm:$0xff]  }
 0x1ad   : > { %2041 = vst.msk [vmem:[#allocation3 + $0x260] sm:$0xf] %vm1113_vm3, %v5738_v44  ;;  %1783 = vrot.lane.b32.xlu0 %v5706_v51, %s6654_s23  ;;  %v2329_v63 = vld [vmem:[#allocation2 + $0x188] sm:$0xff]  ;;  %v5707_v23 = vpack.c.bf16 %v1626_v59, %v1626_v59  ;;  %v6366_v24 = vld [vmem:[#allocation3] ss:$20 sps:$4 sm:$0xff]  }
 0x1ae   : > { %1374 = vst.msk [vmem:[#allocation3 + $0x3c] sm:$0xf] %vm1370_vm4, %v1281_v48  ;;  %2267 = vst.msk [vmem:[#allocation3 + $0x8] sm:$0xf] %vm1370_vm4, %v2172_v49  ;;  %1336 = vrot.lane.b32.xlu1 %v5643_v50, %s6654_s23  ;;  %v1882_v7 = vld [vmem:[#allocation2 + $0x189] sm:$0xff]  ;;  %v5801_v14 = vpack.c.bf16 %v2329_v63, %v2329_v63  ;;  %v2174_v16 = vpop.permute.xlu1 %2173  ;;  %v1728_v20 = vpop.permute.xlu0 %1727 }
 0x1af   : > { %2936 = vst.msk [vmem:[#allocation3 + $0x240] sm:$0xf] %vm1113_vm3, %v5864_v47  ;;  %2937 = vst.msk [vmem:[#allocation3 + $0x254] sm:$0xf] %vm1113_vm3, %v7484_v60  ;;  %v5739_v15 = vpack.c.bf16 %v1882_v7, %v1882_v7  ;;  %v6399_v1 = vld [vmem:[%s8377_s4 + $0xf0] sm:$0xff]   ;;  %v6402_v38 = vld [vmem:[%s8377_s4 + $0xa8] sm:$0xff]  }
 0x1b0   : > { %2268 = vst.msk [vmem:[#allocation3 + $0x1c] sm:$0xf] %vm1370_vm4, %v2174_v16  ;;  %1821 = vst.msk [vmem:[#allocation3 + $0x2c] sm:$0xf] %vm1370_vm4, %v1728_v20  ;;  %v6400_v32 = vld [vmem:[%s8377_s4 + $0xb0] sm:$0xff]   ;;  %v2499_v16 = vld [vmem:[#allocation2 + $0x81] sm:$0xff] }
 0x1b1   : > { %v6368_v28 = vld [vmem:[#allocation3 + $0x4] ss:$20 sps:$4 sm:$0xff]   ;;  %2489 = vst.msk [vmem:[#allocation3 + $0x250] sm:$0xf] %vm1113_vm3, %v5801_v14  ;;  %2042 = vst.msk [vmem:[#allocation3 + $0x274] sm:$0xf] %vm1113_vm3, %v5739_v15  ;;  %2620 = vrot.lane.b32.xlu0 %v7093_v40, %s6654_s23 }
 0x1b2   : > { %1785 = vrot.lane.b32.xlu1 %v5707_v23, %s6654_s23  ;;  %3804 = vmatprep.mubr.bf16.mxu0 %v6368_v28  ;;  %v1730_v33 = vpop.permute.xlu1 %1729  ;;  %v1283_v34 = vpop.permute.xlu0 %1282  ;;  %v6401_v40 = vld [vmem:[%s8377_s4 + $0xe8] sm:$0xff]  }
 0x1b3   : > { %3805 = vmatmul.mubr.bf16.vlgmr.msra.gmra.mxu0 %v6366_v24  ;;  %1822 = vst.msk [vmem:[#allocation3 + $0x40] sm:$0xf] %vm1370_vm4, %v1730_v33  ;;  %1375 = vst.msk [vmem:[#allocation3 + $0x50] sm:$0xf] %vm1370_vm4, %v1283_v34  ;;  %v5811_v24 = vpack.c.bf16 %v2499_v16, %v2499_v16 }
 0x1b4   : > { %6094 = vmatpush3.bf16.msra.mxu0 %v6396_v31 }
 0x1b5   : > { %2175 = vrot.lane.b32.xlu0 %v7077_v26, %s6654_s23  ;;  %6095 = vmatprep.subr.bf16.mxu0 %v6399_v1  ;;  %v6405_v26 = vld [vmem:[%s8377_s4 + $0xe0] sm:$0xff]  }
 0x1b6   : > { %2622 = vrot.lane.b32.xlu1 %v7106_v56, %s6654_s23  ;;  %v1285_v36 = vpop.permute.xlu1 %1284  ;;  %v1732_v37 = vpop.permute.xlu0 %1731 }
 0x1b7   : > { %1376 = vst.msk [vmem:[#allocation3 + $0x64] sm:$0xf] %vm1370_vm4, %v1285_v36  ;;  %1823 = vst.msk [vmem:[#allocation3 + $0x54] sm:$0xf] %vm1370_vm4, %v1732_v37  ;;  %v2946_v42 = vld [vmem:[#allocation3 + $0x28] sm:$0xff] }
 0x1b8   : > { %6096 = vmatpush3.bf16.msra.mxu0 %v6400_v32  ;;  %v2501_v36 = vld [vmem:[#allocation2 + $0x99] sm:$0xff] }
 0x1b9   : > { %2624 = vrot.lane.b32.xlu0 %v7117_v10, %s6654_s23  ;;  %6097 = vmatprep.subr.bf16.mxu0 %v6401_v40  ;;  %v6408_v10 = vld [vmem:[%s8377_s4 + $0xd8] sm:$0xff]  }
 0x1ba   : > { %2177 = vrot.lane.b32.xlu1 %v7079_v27, %s6654_s23  ;;  %v1734_v56 = vpop.permute.xlu1 %1733  ;;  %v2949_v44 = vld [vmem:[#allocation3 + $0x3c] sm:$0xff]  ;;  %v6407_v27 = vld [vmem:[%s8377_s4 + $0xa0] sm:$0xff]  }
 0x1bb   : > { %v1287_v39 = vpop.permute.xlu0 %1286  ;;  %v6369_v46 = vld [vmem:[#allocation3 + $0x2c] ss:$20 sps:$4 sm:$0xff]   ;;  %1824 = vst.msk [vmem:[#allocation3 + $0x68] sm:$0xf] %vm1370_vm4, %v1734_v56  ;;  %v5421_v47 = vcombine.low %v2946_v42, %v2949_v44 }
 0x1bc   : > { %1377 = vst.msk [vmem:[#allocation3 + $0x78] sm:$0xf] %vm1370_vm4, %v1287_v39  ;;  %6098 = vmatpush3.bf16.msra.mxu0 %v6402_v38  ;;  %3812 = vmatprep.mubr.bf16.mxu0 %v6369_v46  ;;  %v2502_v39 = vld [vmem:[#allocation2 + $0xa9] sm:$0xff] }
 0x1bd   : > { %2179 = vrot.lane.b32.xlu0 %v7108_v61, %s6654_s23  ;;  %6099 = vmatprep.subr.bf16.mxu0 %v6405_v26  ;;  %v6412_v61 = vld [vmem:[%s8377_s4 + $0xd0] sm:$0xff]   ;;  %v5814_v46 = vpack.c.bf16 %v2502_v39, %v2502_v39 }
 0x1be   : > { %2626 = vrot.lane.b32.xlu1 %v7137_v30, %s6654_s23  ;;  %v1289_v48 = vpop.permute.xlu1 %1288  ;;  %3813 = vmatmul.mubr.bf16.gmra.mxu0 %v5421_v47  ;;  %v6409_v30 = vld [vmem:[%s8377_s4 + $0x98] sm:$0xff]   ;;  %v2952_v55 = vld [vmem:[#allocation3 + $0x50] sm:$0xff] }
 0x1bf   : > { %v1291_v49 = vpop.permute.xlu0 %1290  ;;  %1378 = vst.msk [vmem:[#allocation3 + $0x8c] sm:$0xf] %vm1370_vm4, %v1289_v48  ;;  %v6491_v47 = vld [vmem:[%s8377_s4 + $0x118] sm:$0xff]  }
 0x1c0   : > { %1379 = vst.msk [vmem:[#allocation3 + $0xa0] sm:$0xf] %vm1370_vm4, %v1291_v49  ;;  %6100 = vmatpush3.bf16.msra.mxu0 %v6407_v27  ;;  %v2503_v27 = vld [vmem:[#allocation2 + $0xb1] sm:$0xff] }
 0x1c1   : > { %2628 = vrot.lane.b32.xlu0 %v7143_v35, %s6654_s23  ;;  %6101 = vmatprep.subr.bf16.mxu0 %v6408_v10  ;;  %v6414_v35 = vld [vmem:[%s8377_s4 + $0xc8] sm:$0xff]   ;;  %v5815_v49 = vpack.c.bf16 %v2503_v27, %v2503_v27 }
 0x1c2   : > { %2181 = vrot.lane.b32.xlu1 %v7110_v0, %s6654_s23  ;;  %v1738_v50 = vpop.permute.xlu1 %1737  ;;  %v2955_v59 = vld [vmem:[#allocation3 + $0x64] sm:$0xff] }
 0x1c3   : > { %v1736_v51 = vpop.permute.xlu0 %1735  ;;  %v6371_v63 = vld [vmem:[#allocation3 + $0x54] ss:$20 sps:$4 sm:$0xff]   ;;  %1826 = vst.msk [vmem:[#allocation3 + $0x90] sm:$0xf] %vm1370_vm4, %v1738_v50  ;;  %v5426_v7 = vcombine.low %v2952_v55, %v2955_v59  ;;  %v6413_v0 = vld [vmem:[%s8377_s4 + $0x90] sm:$0xff]  }
 0x1c4   : > { %1825 = vst.msk [vmem:[#allocation3 + $0x7c] sm:$0xf] %vm1370_vm4, %v1736_v51  ;;  %6102 = vmatpush3.bf16.msra.mxu0 %v6409_v30  ;;  %3820 = vmatprep.mubr.bf16.mxu0 %v6371_v63  ;;  %v2504_v55 = vld [vmem:[#allocation2 + $0xc1] sm:$0xff] }
 0x1c5   : > { %2183 = vrot.lane.b32.xlu0 %v7145_v41, %s6654_s23  ;;  %6103 = vmatprep.subr.bf16.mxu0 %v6412_v61  ;;  %v6418_v41 = vld [vmem:[%s8377_s4 + $0xc0] sm:$0xff]  }
 0x1c6   : > { %2630 = vrot.lane.b32.xlu1 %v7169_v11, %s6654_s23  ;;  %v1740_v14 = vpop.permute.xlu1 %1739  ;;  %3821 = vmatmul.mubr.bf16.gmra.mxu0 %v5426_v7  ;;  %v6415_v11 = vld [vmem:[%s8377_s4 + $0x88] sm:$0xff]   ;;  %v5816_v7 = vpack.c.bf16 %v2504_v55, %v2504_v55 }
 0x1c7   : > { %v1293_v15 = vpop.permute.xlu0 %1292  ;;  %1827 = vst.msk [vmem:[#allocation3 + $0xa4] sm:$0xf] %vm1370_vm4, %v1740_v14  ;;  %v2513_v55 = vld [vmem:[#allocation2 + $0x129] sm:$0xff] }
 0x1c8   : > { %1380 = vst.msk [vmem:[#allocation3 + $0xb4] sm:$0xf] %vm1370_vm4, %v1293_v15  ;;  %6104 = vmatpush3.bf16.msra.mxu0 %v6413_v0  ;;  %v2505_v0 = vld [vmem:[#allocation2 + $0xc9] sm:$0xff] }
 0x1c9   : > { %2632 = vrot.lane.b32.xlu0 %v7190_v45, %s6654_s23  ;;  %6105 = vmatprep.subr.bf16.mxu0 %v6414_v35  ;;  %v6419_v45 = vld [vmem:[%s8377_s4 + $0x80] sm:$0xff]   ;;  %v5817_v14 = vpack.c.bf16 %v2505_v0, %v2505_v0 }
 0x1ca   : > { %2185 = vrot.lane.b32.xlu1 %v7147_v43, %s6654_s23  ;;  %v1742_v20 = vpop.permute.xlu1 %1741  ;;  %v2961_v31 = vld [vmem:[#allocation3 + $0x8c] sm:$0xff]  ;;  %v2500_v43 = vld [vmem:[#allocation2 + $0x91] sm:$0xff] }
 0x1cb   : > { %v1295_v23 = vpop.permute.xlu0 %1294  ;;  %v2958_v28 = vld [vmem:[#allocation3 + $0x78] sm:$0xff]  ;;  %1828 = vst.msk [vmem:[#allocation3 + $0xb8] sm:$0xf] %vm1370_vm4, %v1742_v20  ;;  %v5812_v40 = vpack.c.bf16 %v2500_v43, %v2500_v43  ;;  %v2506_v20 = vld [vmem:[#allocation2 + $0xd9] sm:$0xff] }
 0x1cc   : > { %v6373_v1 = vld [vmem:[#allocation3 + $0x7c] ss:$20 sps:$4 sm:$0xff]   ;;  %1381 = vst.msk [vmem:[#allocation3 + $0xc8] sm:$0xf] %vm1370_vm4, %v1295_v23  ;;  %v5431_v33 = vcombine.low %v2958_v28, %v2961_v31  ;;  %6106 = vmatpush3.bf16.msra.mxu0 %v6415_v11 }
 0x1cd   : > { %2187 = vrot.lane.b32.xlu0 %v7176_v21, %s6654_s23  ;;  %3828 = vmatprep.mubr.bf16.mxu0 %v6373_v1  ;;  %v5813_v21 = vpack.c.bf16 %v2501_v36, %v2501_v36  ;;  %v2507_v28 = vld [vmem:[#allocation2 + $0xe1] sm:$0xff] }
 0x1ce   : > { %2634 = vrot.lane.b32.xlu1 %v5811_v24, %s6654_s23  ;;  %6107 = vmatprep.subr.bf16.mxu0 %v6418_v41  ;;  %v5818_v24 = vpack.c.bf16 %v2506_v20, %v2506_v20 }
 0x1cf   : > { %v1297_v34 = vpop.permute.xlu1 %1296  ;;  %v1744_v32 = vpop.permute.xlu0 %1743  ;;  %3829 = vmatmul.mubr.bf16.gmra.mxu0 %v5431_v33  ;;  %v6375_v26 = vld [vmem:[#allocation3 + $0xa0] ss:$20 sps:$4 sm:$0xff]   ;;  %v5819_v33 = vpack.c.bf16 %v2507_v28, %v2507_v28 }
 0x1d0   : > { %1382 = vst.msk [vmem:[#allocation3 + $0xdc] sm:$0xf] %vm1370_vm4, %v1297_v34  ;;  %1829 = vst.msk [vmem:[#allocation3 + $0xcc] sm:$0xf] %vm1370_vm4, %v1744_v32  ;;  %6108 = vmatpush3.bf16.msra.mxu0 %v6419_v45  ;;  %v2508_v32 = vld [vmem:[#allocation2 + $0xf1] sm:$0xff] }
 0x1d1   : > { %2636 = vrot.lane.b32.xlu0 %v5812_v40, %s6654_s23  ;;  %v5820_v36 = vpack.c.bf16 %v2508_v32, %v2508_v32  ;;  %v2516_v28 = vld [vmem:[#allocation2 + $0x151] sm:$0xff] }
 0x1d2   : > { %2189 = vrot.lane.b32.xlu1 %v7183_v29, %s6654_s23  ;;  %v6377_v56 = vld [vmem:[#allocation3 + $0xa4] ss:$20 sps:$4 sm:$0xff]  }
 0x1d3   : > { %v1746_v37 = vpop.permute.xlu1 %1745  ;;  %v1299_v38 = vpop.permute.xlu0 %1298  ;;  %3836 = vmatprep.mubr.bf16.mxu1 %v6377_v56  ;;  %v6385_v29 = vld [vmem:[%s8377_s4 + $0x110] sm:$0xff]  }
 0x1d4   : > { %1830 = vst.msk [vmem:[#allocation3 + $0xe0] sm:$0xf] %vm1370_vm4, %v1746_v37  ;;  %1383 = vst.msk [vmem:[#allocation3 + $0xf0] sm:$0xf] %vm1370_vm4, %v1299_v38  ;;  %3837 = vmatmul.mubr.bf16.vlgmr.msra.gmra.mxu1 %v6375_v26  ;;  %v2509_v37 = vld [vmem:[#allocation2 + $0xf9] sm:$0xff] }
 0x1d5   : > { %2191 = vrot.lane.b32.xlu0 %v7209_v12, %s6654_s23  ;;  %6226 = vmatpush3.bf16.msra.mxu1 %v6491_v47  ;;  %v6392_v12 = vld [vmem:[%s8377_s4 + $0x108] sm:$0xff]   ;;  %v5821_v26 = vpack.c.bf16 %v2509_v37, %v2509_v37  ;;  %v2511_v47 = vld [vmem:[#allocation2 + $0x111] sm:$0xff] }
 0x1d6   : > { %2638 = vrot.lane.b32.xlu1 %v5813_v21, %s6654_s23  ;;  %6227 = vmatprep.subr.bf16.mxu1 %v6385_v29 }
 0x1d7   : > { %v1301_v42 = vpop.permute.xlu1 %1300  ;;  %v1748_v44 = vpop.permute.xlu0 %1747  ;;  %v2970_v30 = vld [vmem:[#allocation3 + $0xc8] sm:$0xff] }
 0x1d8   : > { %1384 = vst.msk [vmem:[#allocation3 + $0x104] sm:$0xf] %vm1370_vm4, %v1301_v42  ;;  %1831 = vst.msk [vmem:[#allocation3 + $0xf4] sm:$0xf] %vm1370_vm4, %v1748_v44  ;;  %v2510_v42 = vld [vmem:[#allocation2 + $0x109] sm:$0xff] }
 0x1d9   : > { %2640 = vrot.lane.b32.xlu0 %v5814_v46, %s6654_s23  ;;  %6228 = vmatpush3.bf16.msra.mxu1 %v6385_v29  ;;  %v5822_v46 = vpack.c.bf16 %v2510_v42, %v2510_v42 }
 0x1da   : > { %2193 = vrot.lane.b32.xlu1 %v7215_v19, %s6654_s23  ;;  %6229 = vmatprep.subr.bf16.mxu1 %v6392_v12  ;;  %v6406_v19 = vld [vmem:[%s8377_s4 + $0x100] sm:$0xff]  }
 0x1db   : > { %v1750_v10 = vpop.permute.xlu1 %1749  ;;  %v1303_v48 = vpop.permute.xlu0 %1302  ;;  %v2973_v61 = vld [vmem:[#allocation3 + $0xdc] sm:$0xff] }
 0x1dc   : > { %v6379_v50 = vld [vmem:[#allocation3 + $0xcc] ss:$20 sps:$4 sm:$0xff]   ;;  %1832 = vst.msk [vmem:[#allocation3 + $0x108] sm:$0xf] %vm1370_vm4, %v1750_v10  ;;  %1385 = vst.msk [vmem:[#allocation3 + $0x118] sm:$0xf] %vm1370_vm4, %v1303_v48  ;;  %v5441_v51 = vcombine.low %v2970_v30, %v2973_v61  ;;  %v5823_v10 = vpack.c.bf16 %v2511_v47, %v2511_v47 }
 0x1dd   : > { %2195 = vrot.lane.b32.xlu0 %v7235_v3, %s6654_s23  ;;  %3844 = vmatprep.mubr.bf16.mxu1 %v6379_v50  ;;  %v2512_v61 = vld [vmem:[#allocation2 + $0x121] sm:$0xff]  ;;  %v2330_v47 = vld [vmem:[#allocation2 + $0x198] sm:$0xff] }
 0x1de   : > { %2642 = vrot.lane.b32.xlu1 %v5815_v49, %s6654_s23  ;;  %3845 = vmatmul.mubr.bf16.gmra.mxu1 %v5441_v51  ;;  %v5824_v51 = vpack.c.bf16 %v2512_v61, %v2512_v61  ;;  %v2073_v61 = vld [vmem:[#allocation2 + $0x182] sm:$0xff] }
 0x1df   : > { %v1305_v59 = vpop.permute.xlu1 %1304  ;;  %v1752_v63 = vpop.permute.xlu0 %1751  ;;  %6230 = vmatpush3.bf16.msra.mxu1 %v6392_v12  ;;  %v2976_v15 = vld [vmem:[#allocation3 + $0xf0] sm:$0xff] }
 0x1e0   : > { %1386 = vst.msk [vmem:[#allocation3 + $0x12c] sm:$0xf] %vm1370_vm4, %v1305_v59  ;;  %1833 = vst.msk [vmem:[#allocation3 + $0x11c] sm:$0xf] %vm1370_vm4, %v1752_v63  ;;  %6231 = vmatprep.subr.bf16.mxu1 %v6406_v19  ;;  %v5825_v63 = vpack.c.bf16 %v2513_v55, %v2513_v55  ;;  %v5770_v55 = vpack.c.bf16 %v2073_v61, %v2073_v61 }
 0x1e1   : > { %2644 = vrot.lane.b32.xlu0 %v5816_v7, %s6654_s23 }
 0x1e2   : > { %2197 = vrot.lane.b32.xlu1 %v7241_v9, %s6654_s23 }
 0x1e3   : > { %v1754_v3 = vpop.permute.xlu1 %1753  ;;  %v1307_v35 = vpop.permute.xlu0 %1306  ;;  %v2979_v16 = vld [vmem:[#allocation3 + $0x104] sm:$0xff]  ;;  %6232 = vmatpush3.bf16.msra.mxu1 %v6406_v19 }
 0x1e4   : > { %v6381_v11 = vld [vmem:[#allocation3 + $0xf4] ss:$20 sps:$4 sm:$0xff]   ;;  %1834 = vst.msk [vmem:[#allocation3 + $0x130] sm:$0xf] %vm1370_vm4, %v1754_v3  ;;  %1387 = vst.msk [vmem:[#allocation3 + $0x140] sm:$0xf] %vm1370_vm4, %v1307_v35  ;;  %v5446_v41 = vcombine.low %v2976_v15, %v2979_v16 }
 0x1e5   : > { %2199 = vrot.lane.b32.xlu0 %v7261_v58, %s6654_s23  ;;  %3852 = vmatprep.mubr.bf16.mxu1 %v6381_v11  ;;  %v2514_v35 = vld [vmem:[#allocation2 + $0x139] sm:$0xff]  ;;  %v2515_v16 = vld [vmem:[#allocation2 + $0x141] sm:$0xff] }
 0x1e6   : > { %2646 = vrot.lane.b32.xlu1 %v5817_v14, %s6654_s23  ;;  %3853 = vmatmul.mubr.bf16.gmra.mxu1 %v5446_v41  ;;  %v5826_v15 = vpack.c.bf16 %v2514_v35, %v2514_v35  ;;  %v5827_v20 = vpack.c.bf16 %v2515_v16, %v2515_v16 }
 0x1e7   : > { %v1309_v9 = vpop.permute.xlu1 %1308  ;;  %v1756_v23 = vpop.permute.xlu0 %1755  ;;  %v2982_v43 = vld [vmem:[#allocation3 + $0x118] sm:$0xff] }
 0x1e8   : > { %1388 = vst.msk [vmem:[#allocation3 + $0x154] sm:$0xf] %vm1370_vm4, %v1309_v9  ;;  %1835 = vst.msk [vmem:[#allocation3 + $0x144] sm:$0xf] %vm1370_vm4, %v1756_v23 }
 0x1e9   : > { %2648 = vrot.lane.b32.xlu0 %v5818_v24, %s6654_s23 }
 0x1ea   : > { %2201 = vrot.lane.b32.xlu1 %v7267_v5, %s6654_s23 }
 0x1eb   : > { %v1758_v31 = vpop.permute.xlu1 %1757  ;;  %v1311_v1 = vpop.permute.xlu0 %1310  ;;  %v2985_v58 = vld [vmem:[#allocation3 + $0x12c] sm:$0xff] }
 0x1ec   : > { %v6383_v45 = vld [vmem:[#allocation3 + $0x11c] ss:$20 sps:$4 sm:$0xff]   ;;  %1836 = vst.msk [vmem:[#allocation3 + $0x158] sm:$0xf] %vm1370_vm4, %v1758_v31  ;;  %1389 = vst.msk [vmem:[#allocation3 + $0x168] sm:$0xf] %vm1370_vm4, %v1311_v1  ;;  %v5451_v34 = vcombine.low %v2982_v43, %v2985_v58  ;;  %v5828_v1 = vpack.c.bf16 %v2516_v28, %v2516_v28 }
 0x1ed   : > { %2203 = vrot.lane.b32.xlu0 %v7297_v54, %s6654_s23  ;;  %3860 = vmatprep.mubr.bf16.mxu1 %v6383_v45 }
 0x1ee   : > { %2650 = vrot.lane.b32.xlu1 %v5819_v33, %s6654_s23  ;;  %3861 = vmatmul.mubr.bf16.gmra.mxu1 %v5451_v34  ;;  %v2517_v33 = vld [vmem:[#allocation2 + $0x159] sm:$0xff] }
 0x1ef   : > { %v1313_v5 = vpop.permute.xlu1 %1312  ;;  %v1760_v40 = vpop.permute.xlu0 %1759  ;;  %v2988_v56 = vld [vmem:[#allocation3 + $0x140] sm:$0xff]  ;;  %v5829_v45 = vpack.c.bf16 %v2517_v33, %v2517_v33 }
 0x1f0   : > { %1390 = vst.msk [vmem:[#allocation3 + $0x17c] sm:$0xf] %vm1370_vm4, %v1313_v5  ;;  %1837 = vst.msk [vmem:[#allocation3 + $0x16c] sm:$0xf] %vm1370_vm4, %v1760_v40  ;;  %v2518_v40 = vld [vmem:[#allocation2 + $0x169] sm:$0xff] }
 0x1f1   : > { %2652 = vrot.lane.b32.xlu0 %v5820_v36, %s6654_s23  ;;  %v5830_v37 = vpack.c.bf16 %v2518_v40, %v2518_v40  ;;  %v6429_v40 = vld [vmem:[#allocation3 + $0xb0] ss:$20 sps:$4 sm:$0xff]  }
 0x1f2   : > { %2205 = vrot.lane.b32.xlu1 %v7303_v2, %s6654_s23 }
 0x1f3   : > { %v1762_v38 = vpop.permute.xlu1 %1761  ;;  %v1315_v21 = vpop.permute.xlu0 %1314  ;;  %v2991_v54 = vld [vmem:[#allocation3 + $0x154] sm:$0xff] }
 0x1f4   : > { %v6386_v39 = vld [vmem:[#allocation3 + $0x144] ss:$20 sps:$4 sm:$0xff]   ;;  %1838 = vst.msk [vmem:[#allocation3 + $0x180] sm:$0xf] %vm1370_vm4, %v1762_v38  ;;  %1391 = vst.msk [vmem:[#allocation3 + $0x190] sm:$0xf] %vm1370_vm4, %v1315_v21  ;;  %v5456_v29 = vcombine.low %v2988_v56, %v2991_v54 }
 0x1f5   : > { %2207 = vrot.lane.b32.xlu0 %v7323_v53, %s6654_s23  ;;  %3868 = vmatprep.mubr.bf16.mxu1 %v6386_v39  ;;  %v2519_v38 = vld [vmem:[#allocation2 + $0x171] sm:$0xff]  ;;  %v2778_v21 = vld [vmem:[#allocation2 + $0x19a] sm:$0xff] }
 0x1f6   : > { %2654 = vrot.lane.b32.xlu1 %v5821_v26, %s6654_s23  ;;  %3869 = vmatmul.mubr.bf16.gmra.mxu1 %v5456_v29  ;;  %v2779_v26 = vld [vmem:[#allocation2 + $0x1a2] sm:$0xff]  ;;  %v5866_v56 = vpack.c.bf16 %v2778_v21, %v2778_v21  ;;  %v5831_v29 = vpack.c.bf16 %v2519_v38, %v2519_v38 }
 0x1f7   : > { %v1317_v2 = vpop.permute.xlu1 %1316  ;;  %v1764_v44 = vpop.permute.xlu0 %1763  ;;  %v2994_v48 = vld [vmem:[#allocation3 + $0x168] sm:$0xff]  ;;  %v5867_v54 = vpack.c.bf16 %v2779_v26, %v2779_v26 }
 0x1f8   : > { %1392 = vst.msk [vmem:[#allocation3 + $0x1a4] sm:$0xf] %vm1370_vm4, %v1317_v2  ;;  %1839 = vst.msk [vmem:[#allocation3 + $0x194] sm:$0xf] %vm1370_vm4, %v1764_v44 }
 0x1f9   : > { %2656 = vrot.lane.b32.xlu0 %v5822_v46, %s6654_s23  ;;  %2938 = vst.msk [vmem:[#allocation3 + $0x268] sm:$0xf] %vm1113_vm3, %v5866_v56  ;;  %2939 = vst.msk [vmem:[#allocation3 + $0x27c] sm:$0xf] %vm1113_vm3, %v5867_v54 }
 0x1fa   : > { %2209 = vrot.lane.b32.xlu1 %v7329_v4, %s6654_s23 }
 0x1fb   : > { %v1766_v27 = vpop.permute.xlu1 %1765  ;;  %v1319_v12 = vpop.permute.xlu0 %1318  ;;  %v2997_v53 = vld [vmem:[#allocation3 + $0x17c] sm:$0xff] }
 0x1fc   : > { %v6388_v49 = vld [vmem:[#allocation3 + $0x16c] ss:$20 sps:$4 sm:$0xff]   ;;  %1840 = vst.msk [vmem:[#allocation3 + $0x1a8] sm:$0xf] %vm1370_vm4, %v1766_v27  ;;  %1393 = vst.msk [vmem:[#allocation3 + $0x1b8] sm:$0xf] %vm1370_vm4, %v1319_v12  ;;  %v5461_v30 = vcombine.low %v2994_v48, %v2997_v53  ;;  %v5802_v27 = vpack.c.bf16 %v2330_v47, %v2330_v47 }
 0x1fd   : > { %2211 = vrot.lane.b32.xlu0 %v7350_v52, %s6654_s23  ;;  %3876 = vmatprep.mubr.bf16.mxu1 %v6388_v49  ;;  %v2331_v12 = vld [vmem:[#allocation2 + $0x1a0] sm:$0xff] }
 0x1fe   : > { %2658 = vrot.lane.b32.xlu1 %v5823_v10, %s6654_s23  ;;  %3877 = vmatmul.mubr.bf16.gmra.mxu1 %v5461_v30  ;;  %2490 = vst.msk [vmem:[#allocation3 + $0x264] sm:$0xf] %vm1113_vm3, %v5802_v27  ;;  %v5803_v49 = vpack.c.bf16 %v2331_v12, %v2331_v12  ;;  %v2521_v30 = vld [vmem:[#allocation2 + $0x189] sm:$0xff]  ;;  %v6479_v27 = vld [vmem:[%s8380_s7 + $0x34] ss:$8 sps:$4 sm:$0xff]  }
 0x1ff   : > { %v1321_v4 = vpop.permute.xlu1 %1320  ;;  %v1768_v50 = vpop.permute.xlu0 %1767  ;;  %v3000_v7 = vld [vmem:[#allocation3 + $0x190] sm:$0xff]  ;;  %4485 = vmatprep.subr.bf16.mxu1 %v6479_v27 }
 0x200   : > { %1394 = vst.msk [vmem:[#allocation3 + $0x1cc] sm:$0xf] %vm1370_vm4, %v1321_v4  ;;  %1841 = vst.msk [vmem:[#allocation3 + $0x1bc] sm:$0xf] %vm1370_vm4, %v1768_v50 }
 0x201   : > { %2660 = vrot.lane.b32.xlu0 %v5824_v51, %s6654_s23  ;;  %2491 = vst.msk [vmem:[#allocation3 + $0x278] sm:$0xf] %vm1113_vm3, %v5803_v49  ;;  %v5833_v51 = vpack.c.bf16 %v2521_v30, %v2521_v30 }
 0x202   : > { %2213 = vrot.lane.b32.xlu1 %v7356_v6, %s6654_s23 }
 0x203   : > { %v1770_v19 = vpop.permute.xlu1 %1769  ;;  %v1323_v59 = vpop.permute.xlu0 %1322  ;;  %v3003_v52 = vld [vmem:[#allocation3 + $0x1a4] sm:$0xff] }
 0x204   : > { %v6390_v0 = vld [vmem:[#allocation3 + $0x194] ss:$20 sps:$4 sm:$0xff]   ;;  %1842 = vst.msk [vmem:[#allocation3 + $0x1d0] sm:$0xf] %vm1370_vm4, %v1770_v19  ;;  %1395 = vst.msk [vmem:[#allocation3 + $0x1e0] sm:$0xf] %vm1370_vm4, %v1323_v59  ;;  %v5466_v3 = vcombine.low %v3000_v7, %v3003_v52 }
 0x205   : > { %2215 = vrot.lane.b32.xlu0 %v7377_v57, %s6654_s23  ;;  %3884 = vmatprep.mubr.bf16.mxu1 %v6390_v0  ;;  %v2523_v52 = vld [vmem:[#allocation2 + $0x1a1] sm:$0xff] }
 0x206   : > { %2662 = vrot.lane.b32.xlu1 %v5825_v63, %s6654_s23  ;;  %3885 = vmatmul.mubr.bf16.gmra.mxu1 %v5466_v3  ;;  %v5835_v35 = vpack.c.bf16 %v2523_v52, %v2523_v52 }
 0x207   : > { %v1325_v6 = vpop.permute.xlu1 %1324  ;;  %v1772_v14 = vpop.permute.xlu0 %1771  ;;  %v3006_v9 = vld [vmem:[#allocation3 + $0x1b8] sm:$0xff] }
 0x208   : > { %1396 = vst.msk [vmem:[#allocation3 + $0x1f4] sm:$0xf] %vm1370_vm4, %v1325_v6  ;;  %1843 = vst.msk [vmem:[#allocation3 + $0x1e4] sm:$0xf] %vm1370_vm4, %v1772_v14 }
 0x209   : > { %2664 = vrot.lane.b32.xlu0 %v5826_v15, %s6654_s23 }
 0x20a   : > { %2217 = vrot.lane.b32.xlu1 %v7383_v13, %s6654_s23 }
 0x20b   : > { %v1327_v41 = vpop.permute.xlu0 %1326  ;;  %v3009_v57 = vld [vmem:[#allocation3 + $0x1cc] sm:$0xff] }
 0x20c   : > { %v1774_v11 = vpop.permute.xlu1 %1773  ;;  %v6393_v23 = vld [vmem:[#allocation3 + $0x1bc] ss:$20 sps:$4 sm:$0xff]   ;;  %1397 = vst.msk [vmem:[#allocation3 + $0x208] sm:$0xf] %vm1370_vm4, %v1327_v41  ;;  %v5471_v24 = vcombine.low %v3006_v9, %v3009_v57 }
 0x20d   : > { %1844 = vst.msk [vmem:[#allocation3 + $0x1f8] sm:$0xf] %vm1370_vm4, %v1774_v11  ;;  %2219 = vrot.lane.b32.xlu0 %v7407_v8, %s6654_s23  ;;  %3892 = vmatprep.mubr.bf16.mxu1 %v6393_v23  ;;  %v6421_v57 = vld [vmem:[#allocation3 + $0x8] ss:$20 sps:$4 sm:$0xff]  }
 0x20e   : > { %2666 = vrot.lane.b32.xlu1 %v5827_v20, %s6654_s23  ;;  %3893 = vmatmul.mubr.bf16.gmra.mxu1 %v5471_v24  ;;  %v6420_v20 = vld [vmem:[#allocation3 + $0x10] ss:$20 sps:$4 sm:$0xff]  }
 0x20f   : > { %v1776_v31 = vpop.permute.xlu0 %1775  ;;  %v3012_v34 = vld [vmem:[#allocation3 + $0x1e0] sm:$0xff] }
 0x210   : > { %v1329_v13 = vpop.permute.xlu1 %1328  ;;  %1845 = vst.msk [vmem:[#allocation3 + $0x20c] sm:$0xf] %vm1370_vm4, %v1776_v31  ;;  %v6425_v31 = vld [vmem:[#allocation3 + $0x60] ss:$20 sps:$4 sm:$0xff]  }
 0x211   : > { %1398 = vst.msk [vmem:[#allocation3 + $0x21c] sm:$0xf] %vm1370_vm4, %v1329_v13  ;;  %2668 = vrot.lane.b32.xlu0 %v5828_v1, %s6654_s23  ;;  %v6424_v13 = vld [vmem:[#allocation3 + $0x38] ss:$20 sps:$4 sm:$0xff]  }
 0x212   : > { %2221 = vrot.lane.b32.xlu1 %v7413_v18, %s6654_s23 }
 0x213   : > { %v1331_v58 = vpop.permute.xlu0 %1330 }
 0x214   : > { %v1778_v43 = vpop.permute.xlu1 %1777  ;;  %v3015_v8 = vld [vmem:[#allocation3 + $0x1f4] sm:$0xff]  ;;  %1399 = vst.msk [vmem:[#allocation3 + $0x230] sm:$0xf] %vm1370_vm4, %v1331_v58 }
 0x215   : > { %v6397_v32 = vld [vmem:[#allocation3 + $0x1e4] ss:$20 sps:$4 sm:$0xff]   ;;  %1846 = vst.msk [vmem:[#allocation3 + $0x220] sm:$0xf] %vm1370_vm4, %v1778_v43  ;;  %v5476_v5 = vcombine.low %v3012_v34, %v3015_v8  ;;  %2223 = vrot.lane.b32.xlu0 %v7433_v17, %s6654_s23 }
 0x216   : > { %2670 = vrot.lane.b32.xlu1 %v5829_v45, %s6654_s23  ;;  %3900 = vmatprep.mubr.bf16.mxu1 %v6397_v32 }
 0x217   : > { %3901 = vmatmul.mubr.bf16.gmra.mxu1 %v5476_v5  ;;  %v1780_v36 = vpop.permute.xlu0 %1779  ;;  %v3018_v42 = vld [vmem:[#allocation3 + $0x208] sm:$0xff] }
 0x218   : > { %v1333_v18 = vpop.permute.xlu1 %1332  ;;  %1847 = vst.msk [vmem:[#allocation3 + $0x234] sm:$0xf] %vm1370_vm4, %v1780_v36  ;;  %v6428_v5 = vld [vmem:[#allocation3 + $0x88] ss:$20 sps:$4 sm:$0xff]  }
 0x219   : > { %1400 = vst.msk [vmem:[#allocation3 + $0x244] sm:$0xf] %vm1370_vm4, %v1333_v18  ;;  %2672 = vrot.lane.b32.xlu0 %v5830_v37, %s6654_s23 }
 0x21a   : > { %2225 = vrot.lane.b32.xlu1 %v7440_v25, %s6654_s23  ;;  %v2520_v25 = vld [vmem:[#allocation2 + $0x181] sm:$0xff] }
 0x21b   : > { %v1335_v39 = vpop.permute.xlu0 %1334  ;;  %v5832_v53 = vpack.c.bf16 %v2520_v25, %v2520_v25  ;;  %v6477_v25 = vld [vmem:[%s8380_s7 + $0x30] ss:$8 sps:$4 sm:$0xff]  }
 0x21c   : > { %v1782_v17 = vpop.permute.xlu1 %1781  ;;  %v3021_v2 = vld [vmem:[#allocation3 + $0x21c] sm:$0xff]  ;;  %1401 = vst.msk [vmem:[#allocation3 + $0x258] sm:$0xf] %vm1370_vm4, %v1335_v39 }
 0x21d   : > { %v6403_v44 = vld [vmem:[#allocation3 + $0x20c] ss:$20 sps:$4 sm:$0xff]   ;;  %1848 = vst.msk [vmem:[#allocation3 + $0x248] sm:$0xf] %vm1370_vm4, %v1782_v17  ;;  %v5481_v46 = vcombine.low %v3018_v42, %v3021_v2  ;;  %2227 = vrot.lane.b32.xlu0 %v7458_v62, %s6654_s23 }
 0x21e   : > { %2674 = vrot.lane.b32.xlu1 %v5831_v29, %s6654_s23  ;;  %3908 = vmatprep.mubr.bf16.mxu1 %v6403_v44  ;;  %v2522_v62 = vld [vmem:[#allocation2 + $0x199] sm:$0xff]  ;;  %v6433_v39 = vld [vmem:[#allocation3 + $0x100] ss:$20 sps:$4 sm:$0xff]  }
 0x21f   : > { %3909 = vmatmul.mubr.bf16.gmra.mxu1 %v5481_v46  ;;  %v1784_v48 = vpop.permute.xlu0 %1783  ;;  %v3024_v19 = vld [vmem:[#allocation3 + $0x230] sm:$0xff]  ;;  %v6432_v17 = vld [vmem:[#allocation3 + $0xd8] ss:$20 sps:$4 sm:$0xff]  }
 0x220   : > { %v1337_v10 = vpop.permute.xlu1 %1336  ;;  %1849 = vst.msk [vmem:[#allocation3 + $0x25c] sm:$0xf] %vm1370_vm4, %v1784_v48  ;;  %v6436_v48 = vld [vmem:[#allocation3 + $0x128] ss:$20 sps:$4 sm:$0xff]  }
 0x221   : > { %1402 = vst.msk [vmem:[#allocation3 + $0x26c] sm:$0xf] %vm1370_vm4, %v1337_v10  ;;  %2676 = vrot.lane.b32.xlu0 %v5832_v53, %s6654_s23  ;;  %v6437_v53 = vld [vmem:[#allocation3 + $0x150] ss:$20 sps:$4 sm:$0xff]  }
 0x222   : > { %2229 = vrot.lane.b32.xlu1 %v7465_v22, %s6654_s23  ;;  %v5834_v22 = vpack.c.bf16 %v2522_v62, %v2522_v62 }
 0x223   : > { %v2621_v50 = vpop.permute.xlu0 %2620 }
 0x224   : > { %v1786_v4 = vpop.permute.xlu1 %1785  ;;  %v3027_v59 = vld [vmem:[#allocation3 + $0x244] sm:$0xff]  ;;  %2716 = vst.msk [vmem:[#allocation3 + $0xc] sm:$0xf] %vm1370_vm4, %v2621_v50 }
 0x225   : > { %v6410_v63 = vld [vmem:[#allocation3 + $0x234] ss:$20 sps:$4 sm:$0xff]   ;;  %1850 = vst.msk [vmem:[#allocation3 + $0x270] sm:$0xf] %vm1370_vm4, %v1786_v4  ;;  %v5486_v7 = vcombine.low %v3024_v19, %v3027_v59  ;;  %2231 = vrot.lane.b32.xlu0 %v5770_v55, %s6654_s23  ;;  %v6440_v19 = vld [vmem:[#allocation3 + $0x178] ss:$20 sps:$4 sm:$0xff]  }
 0x226   : > { %2678 = vrot.lane.b32.xlu1 %v5833_v51, %s6654_s23  ;;  %3916 = vmatprep.mubr.bf16.mxu1 %v6410_v63  ;;  %v6441_v59 = vld [vmem:[#allocation3 + $0x1a0] ss:$20 sps:$4 sm:$0xff]  }
 0x227   : > { %3917 = vmatmul.mubr.bf16.gmra.mxu1 %v5486_v7  ;;  %v2176_v3 = vpop.permute.xlu0 %2175  ;;  %v3030_v6 = vld [vmem:[#allocation3 + $0x258] sm:$0xff] }
 0x228   : > { %v2623_v0 = vpop.permute.xlu1 %2622  ;;  %2269 = vst.msk [vmem:[#allocation3 + $0x30] sm:$0xf] %vm1370_vm4, %v2176_v3  ;;  %v6480_v3 = vld [vmem:[%s8380_s7 + $0x20] ss:$8 sps:$4 sm:$0xff]  }
 0x229   : > { %2717 = vst.msk [vmem:[#allocation3 + $0x20] sm:$0xf] %vm1370_vm4, %v2623_v0  ;;  %2680 = vrot.lane.b32.xlu0 %v5834_v22, %s6654_s23 }
 0x22a   : > { %2233 = vrot.lane.b32.xlu1 %v7484_v60, %s6654_s23 }
 0x22b   : > { %v2625_v15 = vpop.permute.xlu0 %2624 }
 0x22c   : > { %v2178_v14 = vpop.permute.xlu1 %2177  ;;  %v3033_v16 = vld [vmem:[#allocation3 + $0x26c] sm:$0xff]  ;;  %2718 = vst.msk [vmem:[#allocation3 + $0x34] sm:$0xf] %vm1370_vm4, %v2625_v15 }
 0x22d   : > { %v6416_v11 = vld [vmem:[#allocation3 + $0x25c] ss:$20 sps:$4 sm:$0xff]   ;;  %2270 = vst.msk [vmem:[#allocation3 + $0x44] sm:$0xf] %vm1370_vm4, %v2178_v14  ;;  %v5491_v41 = vcombine.low %v3030_v6, %v3033_v16 }
 0x22e   : > { %2682 = vrot.lane.b32.xlu1 %v5835_v35, %s6654_s23  ;;  %3924 = vmatprep.mubr.bf16.mxu1 %v6416_v11  ;;  %v6482_v6 = vld [vmem:[%s8380_s7 + $0x24] ss:$8 sps:$4 sm:$0xff]   ;;  %v6445_v11 = vld [vmem:[#allocation3 + $0x1f0] ss:$20 sps:$4 sm:$0xff]  }
 0x22f   : > { %3925 = vmatmul.mubr.bf16.gmra.mxu1 %v5491_v41  ;;  %v2180_v60 = vpop.permute.xlu0 %2179  ;;  %v6444_v16 = vld [vmem:[#allocation3 + $0x1c8] ss:$20 sps:$4 sm:$0xff]  }
 0x230   : > { %v2627_v9 = vpop.permute.xlu1 %2626  ;;  %v6423_v23 = vld [vmem:[#allocation3 + $0xc] ss:$20 sps:$4 sm:$0xff]   ;;  %2271 = vst.msk [vmem:[#allocation3 + $0x58] sm:$0xf] %vm1370_vm4, %v2180_v60  ;;  %6233 = vmatprep.mubr.msk.bf16.mxu1 %vm874_vm0, %v6420_v20 }
 0x231   : > { %2719 = vst.msk [vmem:[#allocation3 + $0x48] sm:$0xf] %vm1370_vm4, %v2627_v9  ;;  %3965 = vmatprep.mubr.bf16.mxu0 %v6423_v23 }
 0x232   : > { %3966 = vmatmul.mubr.bf16.vlgmr.msra.gmra.mxu0 %v6421_v57 }
 0x233   : > { %v2629_v28 = vpop.permute.xlu0 %2628  ;;  %v2947_v43 = vld [vmem:[#allocation3 + $0x30] sm:$0xff] }
 0x234   : > { %v2182_v24 = vpop.permute.xlu1 %2181  ;;  %2720 = vst.msk [vmem:[#allocation3 + $0x5c] sm:$0xf] %vm1370_vm4, %v2629_v28 }
 0x235   : > { %2272 = vst.msk [vmem:[#allocation3 + $0x6c] sm:$0xf] %vm1370_vm4, %v2182_v24 }
 0x237   : > { %6234 = vmatmul.mubr.msk.bf16.vlgmr.msra.gmra.mxu1 %vm874_vm0, %v6424_v13  ;;  %v2184_v33 = vpop.permute.xlu0 %2183  ;;  %v6448_v13 = vld [vmem:[#allocation3 + $0x218] ss:$20 sps:$4 sm:$0xff]  }
 0x238   : > { %v2631_v1 = vpop.permute.xlu1 %2630  ;;  %v2950_v58 = vld [vmem:[#allocation3 + $0x44] sm:$0xff]  ;;  %2273 = vst.msk [vmem:[#allocation3 + $0x80] sm:$0xf] %vm1370_vm4, %v2184_v33  ;;  %6237 = vmatprep.mubr.msk.bf16.mxu1 %vm874_vm0, %v6425_v31  ;;  %4486 = vmatpush1.bf16.msra.mxu1 %v6477_v25  ;;  %v6449_v31 = vld [vmem:[#allocation3 + $0x240] ss:$20 sps:$4 sm:$0xff]  }
 0x239   : > { %v6426_v45 = vld [vmem:[#allocation3 + $0x34] ss:$20 sps:$4 sm:$0xff]   ;;  %2721 = vst.msk [vmem:[#allocation3 + $0x70] sm:$0xf] %vm1370_vm4, %v2631_v1  ;;  %v5423_v34 = vcombine.low %v2947_v43, %v2950_v58  ;;  %4487 = vmatprep.subr.bf16.mxu1 %v6482_v6 }
 0x23a   : > { %3973 = vmatprep.mubr.bf16.mxu0 %v6426_v45 }
 0x23b   : > { %3974 = vmatmul.mubr.bf16.gmra.mxu0 %v5423_v34  ;;  %v2633_v32 = vpop.permute.xlu0 %2632  ;;  %v2953_v37 = vld [vmem:[#allocation3 + $0x58] sm:$0xff]  ;;  %v6483_v34 = vld [vmem:[%s8380_s7 + $0x10] ss:$8 sps:$4 sm:$0xff]  }
 0x23c   : > { %v2186_v8 = vpop.permute.xlu1 %2185  ;;  %2722 = vst.msk [vmem:[#allocation3 + $0x84] sm:$0xf] %vm1370_vm4, %v2633_v32  ;;  %4488 = vmatpush1.bf16.msra.mxu1 %v6480_v3  ;;  %v6485_v32 = vld [vmem:[%s8380_s7 + $0x14] ss:$8 sps:$4 sm:$0xff]  }
 0x23d   : > { %2274 = vst.msk [vmem:[#allocation3 + $0x94] sm:$0xf] %vm1370_vm4, %v2186_v8  ;;  %4489 = vmatprep.subr.bf16.mxu1 %v6485_v32 }
 0x23f   : > { %6238 = vmatmul.mubr.msk.bf16.gmra.mxu1 %vm874_vm0, %v6428_v5  ;;  %v2188_v36 = vpop.permute.xlu0 %2187 }
 0x240   : > { %v2635_v18 = vpop.permute.xlu1 %2634  ;;  %v2956_v38 = vld [vmem:[#allocation3 + $0x6c] sm:$0xff]  ;;  %2275 = vst.msk [vmem:[#allocation3 + $0xa8] sm:$0xf] %vm1370_vm4, %v2188_v36  ;;  %6241 = vmatprep.mubr.msk.bf16.mxu1 %vm874_vm0, %v6429_v40  ;;  %4490 = vmatpush1.bf16.msra.mxu1 %v6483_v34 }
 0x241   : > { %v6430_v21 = vld [vmem:[#allocation3 + $0x5c] ss:$20 sps:$4 sm:$0xff]   ;;  %2723 = vst.msk [vmem:[#allocation3 + $0x98] sm:$0xf] %vm1370_vm4, %v2635_v18  ;;  %v5428_v26 = vcombine.low %v2953_v37, %v2956_v38 }
 0x242   : > { %3981 = vmatprep.mubr.bf16.mxu0 %v6430_v21  ;;  %v6470_v18 = vld [vmem:[#allocation3 + $0x268] ss:$20 sps:$4 sm:$0xff]  }
 0x243   : > { %3982 = vmatmul.mubr.bf16.gmra.mxu0 %v5428_v26  ;;  %v2637_v54 = vpop.permute.xlu0 %2636  ;;  %v2959_v29 = vld [vmem:[#allocation3 + $0x80] sm:$0xff] }
 0x244   : > { %v2190_v56 = vpop.permute.xlu1 %2189  ;;  %2724 = vst.msk [vmem:[#allocation3 + $0xac] sm:$0xf] %vm1370_vm4, %v2637_v54 }
 0x245   : > { %2276 = vst.msk [vmem:[#allocation3 + $0xbc] sm:$0xf] %vm1370_vm4, %v2190_v56 }
 0x247   : > { %6242 = vmatmul.mubr.msk.bf16.gmra.mxu1 %vm874_vm0, %v6432_v17  ;;  %v2192_v2 = vpop.permute.xlu0 %2191 }
 0x248   : > { %v2639_v42 = vpop.permute.xlu1 %2638  ;;  %v2962_v44 = vld [vmem:[#allocation3 + $0x94] sm:$0xff]  ;;  %2277 = vst.msk [vmem:[#allocation3 + $0xd0] sm:$0xf] %vm1370_vm4, %v2192_v2  ;;  %6245 = vmatprep.mubr.msk.bf16.mxu1 %vm874_vm0, %v6433_v39 }
 0x249   : > { %v6434_v46 = vld [vmem:[#allocation3 + $0x84] ss:$20 sps:$4 sm:$0xff]   ;;  %2725 = vst.msk [vmem:[#allocation3 + $0xc0] sm:$0xf] %vm1370_vm4, %v2639_v42  ;;  %v5433_v47 = vcombine.low %v2959_v29, %v2962_v44  ;;  %v6488_v2 = vld [vmem:[%s8380_s7 + $0x4] ss:$8 sps:$4 sm:$0xff]  }
 0x24a   : > { %3989 = vmatprep.mubr.bf16.mxu0 %v6434_v46  ;;  %v6486_v42 = vld [vmem:[%s8380_s7] ss:$8 sps:$4 sm:$0xff]   ;;  %4491 = vmatprep.subr.bf16.mxu1 %v6488_v2 }
 0x24b   : > { %3990 = vmatmul.mubr.bf16.gmra.mxu0 %v5433_v47  ;;  %v2641_v10 = vpop.permute.xlu0 %2640  ;;  %v2965_v61 = vld [vmem:[#allocation3 + $0xa8] sm:$0xff]  ;;  %4492 = vmatpush1.bf16.msra.mxu1 %v6486_v42 }
 0x24c   : > { %v2194_v12 = vpop.permute.xlu1 %2193  ;;  %2726 = vst.msk [vmem:[#allocation3 + $0xd4] sm:$0xf] %vm1370_vm4, %v2641_v10 }
 0x24d   : > { %2278 = vst.msk [vmem:[#allocation3 + $0xe4] sm:$0xf] %vm1370_vm4, %v2194_v12 }
 0x24f   : > { %6246 = vmatmul.mubr.msk.bf16.gmra.mxu1 %vm874_vm0, %v6436_v48  ;;  %v2196_v30 = vpop.permute.xlu0 %2195 }
 0x250   : > { %v2643_v49 = vpop.permute.xlu1 %2642  ;;  %v2968_v62 = vld [vmem:[#allocation3 + $0xbc] sm:$0xff]  ;;  %2279 = vst.msk [vmem:[#allocation3 + $0xf8] sm:$0xf] %vm1370_vm4, %v2196_v30  ;;  %6249 = vmatprep.mubr.msk.bf16.mxu1 %vm874_vm0, %v6437_v53 }
 0x251   : > { %v6438_v4 = vld [vmem:[#allocation3 + $0xac] ss:$20 sps:$4 sm:$0xff]   ;;  %2727 = vst.msk [vmem:[#allocation3 + $0xe8] sm:$0xf] %vm1370_vm4, %v2643_v49  ;;  %v5438_v50 = vcombine.low %v2965_v61, %v2968_v62  ;;  %v8389_v62 = vmov 0  }
 0x252   : > { %3997 = vmatprep.mubr.bf16.mxu0 %v6438_v4 }
 0x253   : > { %3998 = vmatmul.mubr.bf16.gmra.mxu0 %v5438_v50  ;;  %v2645_v55 = vpop.permute.xlu0 %2644  ;;  %v2971_v63 = vld [vmem:[#allocation3 + $0xd0] sm:$0xff] }
 0x254   : > { %v2198_v51 = vpop.permute.xlu1 %2197  ;;  %2728 = vst.msk [vmem:[#allocation3 + $0xfc] sm:$0xf] %vm1370_vm4, %v2645_v55 }
 0x255   : > { %2280 = vst.msk [vmem:[#allocation3 + $0x10c] sm:$0xf] %vm1370_vm4, %v2198_v51 }
 0x257   : > { %6250 = vmatmul.mubr.msk.bf16.gmra.mxu1 %vm874_vm0, %v6440_v19  ;;  %v2200_v22 = vpop.permute.xlu0 %2199 }
 0x258   : > { %v2647_v7 = vpop.permute.xlu1 %2646  ;;  %v2974_v52 = vld [vmem:[#allocation3 + $0xe4] sm:$0xff]  ;;  %2281 = vst.msk [vmem:[#allocation3 + $0x120] sm:$0xf] %vm1370_vm4, %v2200_v22  ;;  %6253 = vmatprep.mubr.msk.bf16.mxu1 %vm874_vm0, %v6441_v59 }
 0x259   : > { %v6442_v0 = vld [vmem:[#allocation3 + $0xd4] ss:$20 sps:$4 sm:$0xff]   ;;  %2729 = vst.msk [vmem:[#allocation3 + $0x110] sm:$0xf] %vm1370_vm4, %v2647_v7  ;;  %v5443_v35 = vcombine.low %v2971_v63, %v2974_v52 }
 0x25a   : > { %4005 = vmatprep.mubr.bf16.mxu0 %v6442_v0 }
 0x25b   : > { %4006 = vmatmul.mubr.bf16.gmra.mxu0 %v5443_v35  ;;  %v2649_v15 = vpop.permute.xlu0 %2648  ;;  %v2977_v9 = vld [vmem:[#allocation3 + $0xf8] sm:$0xff] }
 0x25c   : > { %v2202_v14 = vpop.permute.xlu1 %2201  ;;  %2730 = vst.msk [vmem:[#allocation3 + $0x124] sm:$0xf] %vm1370_vm4, %v2649_v15 }
 0x25d   : > { %2282 = vst.msk [vmem:[#allocation3 + $0x134] sm:$0xf] %vm1370_vm4, %v2202_v14 }
 0x25f   : > { %6254 = vmatmul.mubr.msk.bf16.gmra.mxu1 %vm874_vm0, %v6444_v16  ;;  %v2204_v20 = vpop.permute.xlu0 %2203 }
 0x260   : > { %v2651_v41 = vpop.permute.xlu1 %2650  ;;  %v2980_v60 = vld [vmem:[#allocation3 + $0x10c] sm:$0xff]  ;;  %2283 = vst.msk [vmem:[#allocation3 + $0x148] sm:$0xf] %vm1370_vm4, %v2204_v20  ;;  %6257 = vmatprep.mubr.msk.bf16.mxu1 %vm874_vm0, %v6445_v11 }
 0x261   : > { %v6446_v57 = vld [vmem:[#allocation3 + $0xfc] ss:$20 sps:$4 sm:$0xff]   ;;  %2731 = vst.msk [vmem:[#allocation3 + $0x138] sm:$0xf] %vm1370_vm4, %v2651_v41  ;;  %v5448_v23 = vcombine.low %v2977_v9, %v2980_v60 }
 0x262   : > { %4013 = vmatprep.mubr.bf16.mxu0 %v6446_v57 }
 0x263   : > { %4014 = vmatmul.mubr.bf16.gmra.mxu0 %v5448_v23  ;;  %v2653_v28 = vpop.permute.xlu0 %2652  ;;  %v2983_v1 = vld [vmem:[#allocation3 + $0x120] sm:$0xff] }
 0x264   : > { %v2206_v24 = vpop.permute.xlu1 %2205  ;;  %2732 = vst.msk [vmem:[#allocation3 + $0x14c] sm:$0xf] %vm1370_vm4, %v2653_v28 }
 0x265   : > { %2284 = vst.msk [vmem:[#allocation3 + $0x15c] sm:$0xf] %vm1370_vm4, %v2206_v24 }
 0x267   : > { %6258 = vmatmul.mubr.msk.bf16.gmra.mxu1 %vm874_vm0, %v6448_v13  ;;  %v2208_v43 = vpop.permute.xlu0 %2207 }
 0x268   : > { %v2655_v33 = vpop.permute.xlu1 %2654  ;;  %v2986_v58 = vld [vmem:[#allocation3 + $0x134] sm:$0xff]  ;;  %2285 = vst.msk [vmem:[#allocation3 + $0x170] sm:$0xf] %vm1370_vm4, %v2208_v43  ;;  %6261 = vmatprep.mubr.msk.bf16.mxu1 %vm874_vm0, %v6449_v31 }
 0x269   : > { %v6450_v45 = vld [vmem:[#allocation3 + $0x124] ss:$20 sps:$4 sm:$0xff]   ;;  %2733 = vst.msk [vmem:[#allocation3 + $0x160] sm:$0xf] %vm1370_vm4, %v2655_v33  ;;  %v5453_v8 = vcombine.low %v2983_v1, %v2986_v58 }
 0x26a   : > { %4021 = vmatprep.mubr.bf16.mxu0 %v6450_v45 }
 0x26b   : > { %4022 = vmatmul.mubr.bf16.gmra.mxu0 %v5453_v8  ;;  %v2657_v40 = vpop.permute.xlu0 %2656 }
 0x26c   : > { %v2210_v5 = vpop.permute.xlu1 %2209  ;;  %2734 = vst.msk [vmem:[#allocation3 + $0x174] sm:$0xf] %vm1370_vm4, %v2657_v40  ;;  %v6452_v38 = vld [vmem:[#allocation3 + $0x148] ss:$20 sps:$4 sm:$0xff]  }
 0x26d   : > { %2286 = vst.msk [vmem:[#allocation3 + $0x184] sm:$0xf] %vm1370_vm4, %v2210_v5 }
 0x26f   : > { %v2212_v37 = vpop.permute.xlu0 %2211  ;;  %6262 = vmatmul.mubr.msk.bf16.gmra.mxu1 %vm874_vm0, %v6470_v18 }
 0x270   : > { %v2659_v36 = vpop.permute.xlu1 %2658  ;;  %v6454_v21 = vld [vmem:[#allocation3 + $0x14c] ss:$20 sps:$4 sm:$0xff]   ;;  %2287 = vst.msk [vmem:[#allocation3 + $0x198] sm:$0xf] %vm1370_vm4, %v2212_v37  ;;  %4509 = vmatprep.mubr.bf16.mxu1 %v8389_v62 }
 0x271   : > { %2735 = vst.msk [vmem:[#allocation3 + $0x188] sm:$0xf] %vm1370_vm4, %v2659_v36  ;;  %4029 = vmatprep.mubr.bf16.mxu0 %v6454_v21 }
 0x273   : > { %4030 = vmatmul.mubr.bf16.gmra.mxu0 %v6452_v38  ;;  %v2661_v56 = vpop.permute.xlu0 %2660  ;;  %v5997_v36 = vpop.f32.mrf.mxu0 }
 0x274   : > { %v2214_v26 = vpop.permute.xlu1 %2213  ;;  %2736 = vst.msk [vmem:[#allocation3 + $0x19c] sm:$0xf] %vm1370_vm4, %v2661_v56  ;;  %v6455_v17 = vld [vmem:[#allocation3 + $0x170] ss:$20 sps:$4 sm:$0xff]  }
 0x275   : > { %2288 = vst.msk [vmem:[#allocation3 + $0x1ac] sm:$0xf] %vm1370_vm4, %v2214_v26  ;;  %v5998_v21 = vpop.f32.mrf.mxu0 }
 0x277   : > { %v2216_v29 = vpop.permute.xlu0 %2215 }
 0x278   : > { %v2663_v54 = vpop.permute.xlu1 %2662  ;;  %v6457_v39 = vld [vmem:[#allocation3 + $0x174] ss:$20 sps:$4 sm:$0xff]   ;;  %2289 = vst.msk [vmem:[#allocation3 + $0x1c0] sm:$0xf] %vm1370_vm4, %v2216_v29 }
 0x279   : > { %2737 = vst.msk [vmem:[#allocation3 + $0x1b0] sm:$0xf] %vm1370_vm4, %v2663_v54  ;;  %4037 = vmatprep.mubr.bf16.mxu0 %v6457_v39 }
 0x27b   : > { %4038 = vmatmul.mubr.bf16.gmra.mxu0 %v6455_v17  ;;  %v2665_v46 = vpop.permute.xlu0 %2664  ;;  %v6000_v17 = vpop.f32.mrf.mxu0 }
 0x27c   : > { %v2218_v44 = vpop.permute.xlu1 %2217  ;;  %2738 = vst.msk [vmem:[#allocation3 + $0x1c4] sm:$0xf] %vm1370_vm4, %v2665_v46  ;;  %v6458_v47 = vld [vmem:[#allocation3 + $0x198] ss:$20 sps:$4 sm:$0xff]  }
 0x27d   : > { %2290 = vst.msk [vmem:[#allocation3 + $0x1d4] sm:$0xf] %vm1370_vm4, %v2218_v44  ;;  %v6001_v42 = vpop.f32.mrf.mxu0 }
 0x27f   : > { %v2220_v12 = vpop.permute.xlu0 %2219  ;;  %v7849_v46 = vpop.f32.mrf.mxu0 }
 0x280   : > { %v2667_v25 = vpop.permute.xlu1 %2666  ;;  %v6460_v27 = vld [vmem:[#allocation3 + $0x19c] ss:$20 sps:$4 sm:$0xff]   ;;  %2291 = vst.msk [vmem:[#allocation3 + $0x1e8] sm:$0xf] %vm1370_vm4, %v2220_v12 }
 0x281   : > { %2739 = vst.msk [vmem:[#allocation3 + $0x1d8] sm:$0xf] %vm1370_vm4, %v2667_v25  ;;  %4045 = vmatprep.mubr.bf16.mxu0 %v6460_v27  ;;  %v6004_v27 = vpop.f32.mrf.mxu0 }
 0x283   : > { %4046 = vmatmul.mubr.bf16.gmra.mxu0 %v6458_v47  ;;  %v2669_v48 = vpop.permute.xlu0 %2668 }
 0x284   : > { %v2222_v10 = vpop.permute.xlu1 %2221  ;;  %2740 = vst.msk [vmem:[#allocation3 + $0x1ec] sm:$0xf] %vm1370_vm4, %v2669_v48  ;;  %v6461_v49 = vld [vmem:[#allocation3 + $0x1c0] ss:$20 sps:$4 sm:$0xff]  }
 0x285   : > { %2292 = vst.msk [vmem:[#allocation3 + $0x1fc] sm:$0xf] %vm1370_vm4, %v2222_v10 }
 0x287   : > { %v2224_v61 = vpop.permute.xlu0 %2223 }
 0x288   : > { %v2671_v53 = vpop.permute.xlu1 %2670  ;;  %v6463_v30 = vld [vmem:[#allocation3 + $0x1c4] ss:$20 sps:$4 sm:$0xff]   ;;  %2293 = vst.msk [vmem:[#allocation3 + $0x210] sm:$0xf] %vm1370_vm4, %v2224_v61 }
 0x289   : > { %2741 = vst.msk [vmem:[#allocation3 + $0x200] sm:$0xf] %vm1370_vm4, %v2671_v53  ;;  %4053 = vmatprep.mubr.bf16.mxu0 %v6463_v30  ;;  %v7857_v53 = vpop.f32.mrf.mxu0 }
 0x28b   : > { %4054 = vmatmul.mubr.bf16.gmra.mxu0 %v6461_v49  ;;  %v2673_v50 = vpop.permute.xlu0 %2672  ;;  %v7861_v61 = vpop.f32.mrf.mxu0 }
 0x28c   : > { %v2226_v4 = vpop.permute.xlu1 %2225  ;;  %2742 = vst.msk [vmem:[#allocation3 + $0x214] sm:$0xf] %vm1370_vm4, %v2673_v50  ;;  %v6464_v55 = vld [vmem:[#allocation3 + $0x1e8] ss:$20 sps:$4 sm:$0xff]  }
 0x28d   : > { %2294 = vst.msk [vmem:[#allocation3 + $0x224] sm:$0xf] %vm1370_vm4, %v2226_v4 }
 0x28f   : > { %v2228_v59 = vpop.permute.xlu0 %2227 }
 0x290   : > { %v2675_v51 = vpop.permute.xlu1 %2674  ;;  %v6466_v19 = vld [vmem:[#allocation3 + $0x1ec] ss:$20 sps:$4 sm:$0xff]   ;;  %2295 = vst.msk [vmem:[#allocation3 + $0x238] sm:$0xf] %vm1370_vm4, %v2228_v59 }
 0x291   : > { %2743 = vst.msk [vmem:[#allocation3 + $0x228] sm:$0xf] %vm1370_vm4, %v2675_v51  ;;  %4061 = vmatprep.mubr.bf16.mxu0 %v6466_v19 }
 0x293   : > { %4062 = vmatmul.mubr.bf16.gmra.mxu0 %v6464_v55  ;;  %v2677_v7 = vpop.permute.xlu0 %2676  ;;  %v7867_v55 = vpop.f32.mrf.mxu0 }
 0x294   : > { %v2230_v63 = vpop.permute.xlu1 %2229  ;;  %2744 = vst.msk [vmem:[#allocation3 + $0x23c] sm:$0xf] %vm1370_vm4, %v2677_v7  ;;  %v6021_v52 = vpop.f32.mrf.mxu1  ;;  %v6467_v0 = vld [vmem:[#allocation3 + $0x210] ss:$20 sps:$4 sm:$0xff]  }
 0x295   : > { %2296 = vst.msk [vmem:[#allocation3 + $0x24c] sm:$0xf] %vm1370_vm4, %v2230_v63  ;;  %v7871_v63 = vpop.f32.mrf.mxu0 }
 0x296   : > { %v6022_v6 = vpop.f32.mrf.mxu1 }
 0x297   : > { %v2232_v35 = vpop.permute.xlu0 %2231  ;;  %v7812_v14 = vadd.f32 %v6022_v6, %v6021_v52 }
 0x298   : > { %v2679_v22 = vpop.permute.xlu1 %2678  ;;  %v6469_v3 = vld [vmem:[#allocation3 + $0x214] ss:$20 sps:$4 sm:$0xff]   ;;  %2297 = vst.msk [vmem:[#allocation3 + $0x260] sm:$0xf] %vm1370_vm4, %v2232_v35  ;;  %v7814_v16 = vpop.f32.mrf.mxu1 }
 0x299   : > { %2745 = vst.msk [vmem:[#allocation3 + $0x250] sm:$0xf] %vm1370_vm4, %v2679_v22  ;;  %4069 = vmatprep.mubr.bf16.mxu0 %v6469_v3 }
 0x29a   : > { %v7818_v41 = vpop.f32.mrf.mxu1 }
 0x29b   : > { %4070 = vmatmul.mubr.bf16.gmra.mxu0 %v6467_v0  ;;  %v2681_v11 = vpop.permute.xlu0 %2680  ;;  %v7875_v0 = vpop.f32.mrf.mxu0 }
 0x29c   : > { %v2234_v15 = vpop.permute.xlu1 %2233  ;;  %2746 = vst.msk [vmem:[#allocation3 + $0x264] sm:$0xf] %vm1370_vm4, %v2681_v11  ;;  %v6471_v60 = vld [vmem:[#allocation3 + $0x238] ss:$20 sps:$4 sm:$0xff]  }
 0x29d   : > { %2298 = vst.msk [vmem:[#allocation3 + $0x274] sm:$0xf] %vm1370_vm4, %v2234_v15  ;;  %v7879_v15 = vpop.f32.mrf.mxu0 }
 0x29e   : > { %v6027_v9 = vpop.f32.mrf.mxu1 }
 0x2a0   : > { %v2683_v20 = vpop.permute.xlu1 %2682  ;;  %v6473_v57 = vld [vmem:[#allocation3 + $0x23c] ss:$20 sps:$4 sm:$0xff]   ;;  %v6028_v23 = vpop.f32.mrf.mxu1 }
 0x2a1   : > { %2747 = vst.msk [vmem:[#allocation3 + $0x278] sm:$0xf] %vm1370_vm4, %v2683_v20  ;;  %4077 = vmatprep.mubr.bf16.mxu0 %v6473_v57  ;;  %v7821_v24 = vadd.f32 %v6028_v23, %v6027_v9 }
 0x2a2   : > { %v7823_v28 = vpop.f32.mrf.mxu1 }
 0x2a3   : > { %4078 = vmatmul.mubr.bf16.gmra.mxu0 %v6471_v60  ;;  %v7883_v60 = vpop.f32.mrf.mxu0 }
 0x2a4   : > { %v7825_v13 = vpop.f32.mrf.mxu1  ;;  %v6474_v1 = vld [vmem:[#allocation3 + $0x260] ss:$20 sps:$4 sm:$0xff]  }
 0x2a6   : > { %v6033_v31 = vpop.f32.mrf.mxu1 }
 0x2a8   : > { %v6476_v33 = vld [vmem:[#allocation3 + $0x264] ss:$20 sps:$4 sm:$0xff]   ;;  %v6034_v43 = vpop.f32.mrf.mxu1 }
 0x2a9   : > { %4085 = vmatprep.mubr.bf16.mxu0 %v6476_v33  ;;  %v7827_v58 = vadd.f32 %v6034_v43, %v6033_v31 }
 0x2aa   : > { %v7829_v45 = vpop.f32.mrf.mxu1 }
 0x2ab   : > { %4086 = vmatmul.mubr.bf16.gmra.mxu0 %v6474_v1  ;;  %v7887_v1 = vpop.f32.mrf.mxu0 }
 0x2ac   : > { %v7831_v34 = vpop.f32.mrf.mxu1 }
 0x2ae   : > { %v6039_v8 = vpop.f32.mrf.mxu1 }
 0x2b0   : > { %v6040_v32 = vpop.f32.mrf.mxu1 }
 0x2b1   : > { %v7833_v5 = vadd.f32 %v6040_v32, %v6039_v8  ;;  %v7891_v32 = vpop.f32.mrf.mxu0 }
 0x2b2   : > { %v7835_v40 = vpop.f32.mrf.mxu1 }
 0x2b4   : > { %v7837_v18 = vpop.f32.mrf.mxu1 }
 0x2b6   : > { %v6045_v37 = vpop.f32.mrf.mxu1 }
 0x2b8   : > { %v6046_v38 = vpop.f32.mrf.mxu1 }
 0x2b9   : > { %v7839_v26 = vadd.f32 %v6046_v38, %v6045_v37 }
 0x2ba   : > { %v7841_v56 = vpop.f32.mrf.mxu1 }
 0x2bc   : > { %v7843_v54 = vpop.f32.mrf.mxu1 }
 0x2be   : > { %v6051_v39 = vpop.f32.mrf.mxu1 }
 0x2c0   : > { %v6052_v29 = vpop.f32.mrf.mxu1 }
 0x2c1   : > { %v7845_v2 = vadd.f32 %v6052_v29, %v6051_v39  ;;  %v7895_v29 = vpop.f32.mrf.mxu0 }
 0x2c2   : > { %v7847_v44 = vpop.f32.mrf.mxu1 }
 0x2c4   : > { %v7851_v25 = vpop.f32.mrf.mxu1 }
 0x2c6   : > { %v6057_v47 = vpop.f32.mrf.mxu1 }
 0x2c8   : > { %v6058_v12 = vpop.f32.mrf.mxu1 }
 0x2c9   : > { %v7853_v10 = vadd.f32 %v6058_v12, %v6057_v47 }
 0x2ca   : > { %v7855_v48 = vpop.f32.mrf.mxu1 }
 0x2cc   : > { %v7859_v49 = vpop.f32.mrf.mxu1 }
 0x2ce   : > { %v6063_v30 = vpop.f32.mrf.mxu1 }
 0x2d0   : > { %v6064_v4 = vpop.f32.mrf.mxu1 }
 0x2d1   : > { %v7863_v50 = vadd.f32 %v6064_v4, %v6063_v30 }
 0x2d2   : > { %v7865_v51 = vpop.f32.mrf.mxu1 }
 0x2d4   : > { %v7869_v19 = vpop.f32.mrf.mxu1 }
 0x2d7   : > { %v6069_v59 = vpop.f32.mrf.mxu1 }
 0x2d9   : > { %v6070_v7 = vpop.f32.mrf.mxu1 }
 0x2da   : > { %v7873_v22 = vadd.f32 %v6070_v7, %v6069_v59  ;;  %v5999_v7 = vadd.f32 %v5998_v21, %v5997_v36 }
 0x2db   : > { %v6072_v52 = vpop.f32.mrf.mxu1 }
 0x2dd   : > { %v6073_v3 = vpop.f32.mrf.mxu1 }
 0x2de   : > { %v7877_v35 = vadd.f32 %v6073_v3, %v6072_v52 }
 0x2df   : > { %v6075_v6 = vpop.f32.mrf.mxu1 }
 0x2e1   : > { %v6076_v11 = vpop.f32.mrf.mxu1 }
 0x2e2   : > { %v7881_v20 = vadd.f32 %v6076_v11, %v6075_v6 }
 0x2e3   : > { %v6078_v9 = vpop.f32.mrf.mxu1 }
 0x2e5   : > { %v6079_v57 = vpop.f32.mrf.mxu1 }
 0x2e6   : > { %v7885_v23 = vadd.f32 %v6079_v57, %v6078_v9 }
 0x2e7   : > { %v6081_v31 = vpop.f32.mrf.mxu1 }
 0x2e9   : > { %v6082_v33 = vpop.f32.mrf.mxu1 }
 0x2ea   : > { %v7889_v43 = vadd.f32 %v6082_v33, %v6081_v31  ;;  %v6002_v33 = vadd.f32 %v6001_v42, %v6000_v17  ;;  %v7911_v17 = vld [vmem:[%s8379_s6] ss:$0 sm:$0xff] }
 0x2eb   : > { %v6084_v8 = vpop.f32.mrf.mxu1 }
 0x2ec   : > { %8400 = vst [vmem:[#allocation13_spill] sm:$0xff] %v7889_v43 }
 0x2ed   : > { %v6085_v37 = vpop.f32.mrf.mxu1 }
 0x2ee   : > { %v7893_v38 = vadd.f32 %v6085_v37, %v6084_v8 }
 0x2ef   : > { %v6087_v39 = vpop.f32.mrf.mxu1 }
 0x2f0   : > { %8401 = vst [vmem:[#allocation14_spill] sm:$0xff] %v7893_v38 }
 0x2f1   : > { %v6088_v47 = vpop.f32.mrf.mxu1 }
 0x2f2   : > { %v7897_v12 = vadd.f32 %v6088_v47, %v6087_v39  ;;  %v6109_v30 = vpop.f32.mrf.mxu0  ;;  %v7904_v39 = vld [vmem:[%s8378_s5] ss:$0 sm:$0xff] }
 0x2f3   : > { %v6090_v4 = vpop.f32.mrf.mxu1 }
 0x2f4   : > { %8402 = vst [vmem:[#allocation15_spill] sm:$0xff] %v7897_v12  ;;  %v6110_v59 = vpop.f32.mrf.mxu0 }
 0x2f5   : > { %v6091_v52 = vpop.f32.mrf.mxu1  ;;  %v6111_v3 = vadd.f32 %v6110_v59, %v6109_v30 }
 0x2f6   : > { %v7899_v6 = vadd.f32 %v6091_v52, %v6090_v4  ;;  %v6112_v11 = vpop.f32.mrf.mxu0  ;;  %v6005_v4 = vadd.f32 %v6004_v27, %v7849_v46 }
 0x2f7   : > { %v6235_v9 = vpop.f32.mrf.mxu1  ;;  %v3968_v57 = vadd.f32 %v6111_v3, %v5999_v7 }
 0x2f8   : > { %8403 = vst [vmem:[#allocation16_spill] sm:$0xff] %v7899_v6  ;;  %v6113_v31 = vpop.f32.mrf.mxu0 }
 0x2f9   : > { %v6114_v8 = vadd.f32 %v6113_v31, %v6112_v11  ;;  %v4128_v37 = vpop.f32.mrf.mxu1 }
 0x2fa   : > { %v4129_v47 = vadd.f32 %v4128_v37, %v3968_v57 }
 0x2fb   : > { %v6115_v62 = vpop.f32.mrf.mxu0  ;;  %v6236_v12 = vpop.f32.mrf.mxu1  ;;  %v3971_v36 = vadd.f32 %v6114_v8, %v6002_v33  ;;  %v6008_v8 = vadd.f32 %v7861_v61, %v7857_v53 }
 0x2fc   : > { %v4262_v21 = vmul.f32 %v7904_v39, %v4129_v47 }
 0x2fd   : > { %v6116_v30 = vpop.f32.mrf.mxu0  ;;  %v4131_v59 = vpop.f32.mrf.mxu1 }
 0x2fe   : > { %v6117_v42 = vadd.f32 %v6116_v30, %v6115_v62  ;;  %v4132_v7 = vadd.f32 %v4131_v59, %v3971_v36  ;;  %v4301_v11 = vadd.f32 %v7911_v17, %v4262_v21  ;;  %v6011_v21 = vadd.f32 %v7871_v63, %v7867_v55 }
 0x2ff   : > { %v6118_v52 = vpop.f32.mrf.mxu0  ;;  %v6239_v31 = vpop.f32.mrf.mxu1  ;;  %v8404_v63 = vmov 0  }
 0x300   : > { %v3976_v3 = vadd.f32 %v6117_v42, %v6005_v4  ;;  %v4263_v57 = vmul.f32 %v7904_v39, %v4132_v7  ;;  %v4333_v36 = vmax.f32 %v4301_v11, 0.0  ;;  %v6014_v11 = vadd.f32 %v7879_v15, %v7875_v0 }
 0x301   : > { %v6119_v33 = vpop.f32.mrf.mxu0  ;;  %v4144_v4 = vpop.f32.mrf.mxu1 }
 0x302   : > { %v4137_v46 = vadd.f32 %v6235_v9, %v3976_v3  ;;  %v6120_v27 = vadd.f32 %v6119_v33, %v6118_v52  ;;  %v4302_v37 = vadd.f32 %v7911_v17, %v4263_v57 }
 0x303   : > { %v6121_v47 = vpop.f32.mrf.mxu0  ;;  %v6240_v52 = vpop.f32.mrf.mxu1 }
 0x304   : > { %v4264_v62 = vmul.f32 %v7904_v39, %v4137_v46  ;;  %v3979_v30 = vadd.f32 %v6120_v27, %v6008_v8  ;;  %v4334_v59 = vmax.f32 %v4302_v37, 0.0 }
 0x305   : > { %v6122_v42 = vpop.f32.mrf.mxu0 }
 0x306   : > { %v4140_v7 = vadd.f32 %v6236_v12, %v3979_v30  ;;  %v6123_v6 = vadd.f32 %v6122_v42, %v6121_v47  ;;  %v4365_v38 = vpack.c.bf16 %v4334_v59, %v4333_v36  ;;  %v4303_v53 = vadd.f32 %v7911_v17, %v4264_v62 }
 0x307   : > { %v6124_v43 = vpop.f32.mrf.mxu0 }
 0x308   : > { %v4265_v61 = vmul.f32 %v7904_v39, %v4140_v7  ;;  %v3984_v9 = vadd.f32 %v6123_v6, %v6011_v21  ;;  %5558 = vmatmul.mubr.msk.bf16.vlgmr.msra.gmra.mxu1 %vm874_vm0, %v4365_v38  ;;  %v4335_v8 = vmax.f32 %v4303_v53, 0.0  ;;  %v4147_v6 = vpop.f32.mrf.mxu1  ;;  %v6017_v38 = vadd.f32 %v7887_v1, %v7883_v60 }
 0x309   : > { %v6125_v3 = vpop.f32.mrf.mxu0  ;;  %4519 = vmatprep.mubr.bf16.mxu1 %v8404_v63  ;;  %v6020_v21 = vadd.f32 %v7895_v29, %v7891_v32 }
 0x30a   : > { %v4304_v57 = vadd.f32 %v7911_v17, %v4265_v61  ;;  %v4145_v33 = vadd.f32 %v4144_v4, %v3984_v9  ;;  %v6126_v55 = vadd.f32 %v6125_v3, %v6124_v43  ;;  %v6243_v4 = vpop.f32.mrf.mxu1 }
 0x30b   : > { %v6127_v12 = vpop.f32.mrf.mxu0 }
 0x30c   : > { %v4336_v46 = vmax.f32 %v4304_v57, 0.0  ;;  %v4266_v27 = vmul.f32 %v7904_v39, %v4145_v33  ;;  %v3987_v37 = vadd.f32 %v6126_v55, %v6014_v11  ;;  %v4160_v57 = vpop.f32.mrf.mxu1 }
 0x30d   : > { %v6128_v47 = vpop.f32.mrf.mxu0 }
 0x30e   : > { %v4148_v62 = vadd.f32 %v4147_v6, %v3987_v37  ;;  %v6129_v30 = vadd.f32 %v6128_v47, %v6127_v12  ;;  %v4366_v0 = vpack.c.bf16 %v4336_v46, %v4335_v8  ;;  %v4305_v36 = vadd.f32 %v7911_v17, %v4266_v27  ;;  %v6244_v27 = vpop.f32.mrf.mxu1 }
 0x30f   : > { %v6130_v15 = vpop.f32.mrf.mxu0  ;;  %v6026_v6 = vadd.f32 %v7818_v41, %v7814_v16 }
 0x310   : > { %v4267_v43 = vmul.f32 %v7904_v39, %v4148_v62  ;;  %v3992_v59 = vadd.f32 %v6129_v30, %v6017_v38  ;;  %5559 = vmatmul.mubr.msk.bf16.gmra.mxu1 %vm874_vm0, %v4366_v0  ;;  %v4337_v61 = vmax.f32 %v4305_v36, 0.0 }
 0x311   : > { %v6131_v42 = vpop.f32.mrf.mxu0  ;;  %4529 = vmatprep.mubr.bf16.mxu1 %v8404_v63 }
 0x312   : > { %v4306_v7 = vadd.f32 %v7911_v17, %v4267_v43  ;;  %v4153_v53 = vadd.f32 %v6239_v31, %v3992_v59  ;;  %v6132_v60 = vadd.f32 %v6131_v42, %v6130_v15 }
 0x313   : > { %v6133_v1 = vpop.f32.mrf.mxu0 }
 0x314   : > { %v4338_v9 = vmax.f32 %v4306_v7, 0.0  ;;  %v4268_v3 = vmul.f32 %v7904_v39, %v4153_v53  ;;  %v3995_v11 = vadd.f32 %v6132_v60, %v6020_v21 }
 0x315   : > { %v6134_v33 = vpop.f32.mrf.mxu0 }
 0x316   : > { %v4156_v55 = vadd.f32 %v6240_v52, %v3995_v11  ;;  %v6135_v12 = vadd.f32 %v6134_v33, %v6133_v1  ;;  %v4367_v8 = vpack.c.bf16 %v4338_v9, %v4337_v61  ;;  %v4307_v32 = vadd.f32 %v7911_v17, %v4268_v3 }
 0x317   : > { %v6136_v46 = vpop.f32.mrf.mxu0  ;;  %v6032_v61 = vadd.f32 %v7825_v13, %v7823_v28 }
 0x318   : > { %v4269_v29 = vmul.f32 %v7904_v39, %v4156_v55  ;;  %v4000_v31 = vadd.f32 %v6135_v12, %v7812_v14  ;;  %5560 = vmatmul.mubr.msk.bf16.gmra.mxu1 %vm874_vm0, %v4367_v8  ;;  %v4339_v30 = vmax.f32 %v4307_v32, 0.0  ;;  %v4163_v14 = vpop.f32.mrf.mxu1 }
 0x319   : > { %v6137_v37 = vpop.f32.mrf.mxu0  ;;  %4539 = vmatprep.mubr.bf16.mxu1 %v8404_v63 }
 0x31a   : > { %v4308_v47 = vadd.f32 %v7911_v17, %v4269_v29  ;;  %v4161_v38 = vadd.f32 %v4160_v57, %v4000_v31  ;;  %v6138_v52 = vadd.f32 %v6137_v37, %v6136_v46  ;;  %v6247_v60 = vpop.f32.mrf.mxu1 }
 0x31b   : > { %v6139_v62 = vpop.f32.mrf.mxu0 }
 0x31c   : > { %v4340_v0 = vmax.f32 %v4308_v47, 0.0  ;;  %v4270_v15 = vmul.f32 %v7904_v39, %v4161_v38  ;;  %v4003_v36 = vadd.f32 %v6138_v52, %v6026_v6  ;;  %v6038_v38 = vadd.f32 %v7831_v34, %v7829_v45 }
 0x31d   : > { %v6140_v43 = vpop.f32.mrf.mxu0 }
 0x31e   : > { %v4164_v59 = vadd.f32 %v4163_v14, %v4003_v36  ;;  %v6141_v42 = vadd.f32 %v6140_v43, %v6139_v62  ;;  %v4368_v21 = vpack.c.bf16 %v4340_v0, %v4339_v30  ;;  %v4309_v16 = vadd.f32 %v7911_v17, %v4270_v15 }
 0x31f   : > { %v6142_v7 = vpop.f32.mrf.mxu0 }
 0x320   : > { %v4271_v41 = vmul.f32 %v7904_v39, %v4164_v59  ;;  %v4008_v53 = vadd.f32 %v6141_v42, %v7821_v24  ;;  %5561 = vmatmul.mubr.msk.bf16.gmra.mxu1 %vm874_vm0, %v4368_v21  ;;  %v4341_v33 = vmax.f32 %v4309_v16, 0.0  ;;  %v4176_v24 = vpop.f32.mrf.mxu1 }
 0x321   : > { %v6143_v1 = vpop.f32.mrf.mxu0  ;;  %4549 = vmatprep.mubr.bf16.mxu1 %v8404_v63 }
 0x322   : > { %v4310_v9 = vadd.f32 %v7911_v17, %v4271_v41  ;;  %v4169_v3 = vadd.f32 %v6243_v4, %v4008_v53  ;;  %v6144_v11 = vadd.f32 %v6143_v1, %v6142_v7  ;;  %v6248_v6 = vpop.f32.mrf.mxu1  ;;  %v6044_v1 = vadd.f32 %v7837_v18, %v7835_v40 }
 0x323   : > { %v6145_v57 = vpop.f32.mrf.mxu0 }
 0x324   : > { %v4342_v55 = vmax.f32 %v4310_v9, 0.0  ;;  %v4272_v12 = vmul.f32 %v7904_v39, %v4169_v3  ;;  %v4011_v8 = vadd.f32 %v6144_v11, %v6032_v61 }
 0x325   : > { %v6146_v46 = vpop.f32.mrf.mxu0 }
 0x326   : > { %v4172_v32 = vadd.f32 %v6244_v27, %v4011_v8  ;;  %v6147_v29 = vadd.f32 %v6146_v46, %v6145_v57  ;;  %v4369_v31 = vpack.c.bf16 %v4342_v55, %v4341_v33  ;;  %v4311_v28 = vadd.f32 %v7911_v17, %v4272_v12 }
 0x327   : > { %v6148_v37 = vpop.f32.mrf.mxu0 }
 0x328   : > { %v4273_v13 = vmul.f32 %v7904_v39, %v4172_v32  ;;  %v4016_v4 = vadd.f32 %v6147_v29, %v7827_v58  ;;  %5562 = vmatmul.mubr.msk.bf16.gmra.mxu1 %vm874_vm0, %v4369_v31  ;;  %v4343_v0 = vmax.f32 %v4311_v28, 0.0  ;;  %v4179_v58 = vpop.f32.mrf.mxu1  ;;  %v6050_v28 = vadd.f32 %v7843_v54, %v7841_v56 }
 0x329   : > { %v6149_v47 = vpop.f32.mrf.mxu0  ;;  %4559 = vmatprep.mubr.bf16.mxu1 %v8404_v63 }
 0x32a   : > { %v4312_v52 = vadd.f32 %v7911_v17, %v4273_v13  ;;  %v4177_v62 = vadd.f32 %v4176_v24, %v4016_v4  ;;  %v6150_v27 = vadd.f32 %v6149_v47, %v6148_v37  ;;  %v6251_v41 = vpop.f32.mrf.mxu1 }
 0x32b   : > { %v6151_v30 = vpop.f32.mrf.mxu0 }
 0x32c   : > { %v4344_v15 = vmax.f32 %v4312_v52, 0.0  ;;  %v4274_v36 = vmul.f32 %v7904_v39, %v4177_v62  ;;  %v4019_v14 = vadd.f32 %v6150_v27, %v6038_v38 }
 0x32d   : > { %v6152_v43 = vpop.f32.mrf.mxu0 }
 0x32e   : > { %v4180_v59 = vadd.f32 %v4179_v58, %v4019_v14  ;;  %v6153_v42 = vadd.f32 %v6152_v43, %v6151_v30  ;;  %v4370_v21 = vpack.c.bf16 %v4344_v15, %v4343_v0  ;;  %v4313_v45 = vadd.f32 %v7911_v17, %v4274_v36 }
 0x32f   : > { %v6154_v7 = vpop.f32.mrf.mxu0 }
 0x330   : > { %v4275_v34 = vmul.f32 %v7904_v39, %v4180_v59  ;;  %v4024_v16 = vadd.f32 %v6153_v42, %v7833_v5  ;;  %5563 = vmatmul.mubr.msk.bf16.gmra.mxu1 %vm874_vm0, %v4370_v21  ;;  %v4345_v57 = vmax.f32 %v4313_v45, 0.0  ;;  %v4192_v5 = vpop.f32.mrf.mxu1  ;;  %v6056_v42 = vadd.f32 %v7851_v25, %v7847_v44 }
 0x331   : > { %v6155_v53 = vpop.f32.mrf.mxu0  ;;  %4569 = vmatprep.mubr.bf16.mxu1 %v8404_v63 }
 0x332   : > { %v4314_v61 = vadd.f32 %v7911_v17, %v4275_v34  ;;  %v4185_v9 = vadd.f32 %v6247_v60, %v4024_v16  ;;  %v6156_v3 = vadd.f32 %v6155_v53, %v6154_v7  ;;  %v6252_v31 = vpop.f32.mrf.mxu1 }
 0x333   : > { %v6157_v11 = vpop.f32.mrf.mxu0 }
 0x334   : > { %v4346_v33 = vmax.f32 %v4314_v61, 0.0  ;;  %v4276_v55 = vmul.f32 %v7904_v39, %v4185_v9  ;;  %v4027_v12 = vadd.f32 %v6156_v3, %v6044_v1 }
 0x335   : > { %v6158_v8 = vpop.f32.mrf.mxu0 }
 0x336   : > { %v4188_v24 = vadd.f32 %v6248_v6, %v4027_v12  ;;  %v6159_v46 = vadd.f32 %v6158_v8, %v6157_v11  ;;  %v4371_v32 = vpack.c.bf16 %v4346_v33, %v4345_v57  ;;  %v4315_v40 = vadd.f32 %v7911_v17, %v4276_v55 }
 0x337   : > { %v6160_v29 = vpop.f32.mrf.mxu0 }
 0x338   : > { %v4277_v18 = vmul.f32 %v7904_v39, %v4188_v24  ;;  %v4032_v60 = vadd.f32 %v6159_v46, %v7839_v26  ;;  %5564 = vmatmul.mubr.msk.bf16.gmra.mxu1 %vm874_vm0, %v4371_v32  ;;  %v4347_v38 = vmax.f32 %v4315_v40, 0.0  ;;  %v4195_v26 = vpop.f32.mrf.mxu1 }
 0x339   : > { %v6161_v37 = vpop.f32.mrf.mxu0  ;;  %4579 = vmatprep.mubr.bf16.mxu1 %v8404_v63 }
 0x33a   : > { %v4316_v13 = vadd.f32 %v7911_v17, %v4277_v18  ;;  %v4193_v4 = vadd.f32 %v4192_v5, %v4032_v60  ;;  %v6162_v6 = vadd.f32 %v6161_v37, %v6160_v29  ;;  %v6255_v43 = vpop.f32.mrf.mxu1  ;;  %v6062_v5 = vadd.f32 %v7859_v49, %v7855_v48 }
 0x33b   : > { %v6163_v47 = vpop.f32.mrf.mxu0 }
 0x33c   : > { %v4348_v52 = vmax.f32 %v4316_v13, 0.0  ;;  %v4278_v62 = vmul.f32 %v7904_v39, %v4193_v4  ;;  %v4035_v27 = vadd.f32 %v6162_v6, %v6050_v28 }
 0x33d   : > { %v6164_v30 = vpop.f32.mrf.mxu0 }
 0x33e   : > { %v4196_v0 = vadd.f32 %v4195_v26, %v4035_v27  ;;  %v6165_v15 = vadd.f32 %v6164_v30, %v6163_v47  ;;  %v4372_v36 = vpack.c.bf16 %v4348_v52, %v4347_v38  ;;  %v4317_v56 = vadd.f32 %v7911_v17, %v4278_v62 }
 0x33f   : > { %v6166_v14 = vpop.f32.mrf.mxu0  ;;  %v6068_v52 = vadd.f32 %v7869_v19, %v7865_v51 }
 0x340   : > { %v4279_v54 = vmul.f32 %v7904_v39, %v4196_v0  ;;  %v4040_v58 = vadd.f32 %v6165_v15, %v7845_v2  ;;  %5565 = vmatmul.mubr.msk.bf16.gmra.mxu1 %vm874_vm0, %v4372_v36  ;;  %v4349_v16 = vmax.f32 %v4317_v56, 0.0  ;;  %v4208_v2 = vpop.f32.mrf.mxu1 }
 0x341   : > { %v6167_v59 = vpop.f32.mrf.mxu0  ;;  %4589 = vmatprep.mubr.bf16.mxu1 %v8404_v63 }
 0x342   : > { %v4318_v21 = vadd.f32 %v7911_v17, %v4279_v54  ;;  %v4201_v7 = vadd.f32 %v6251_v41, %v4040_v58  ;;  %v6168_v45 = vadd.f32 %v6167_v59, %v6166_v14  ;;  %v6256_v55 = vpop.f32.mrf.mxu1 }
 0x343   : > { %v6169_v34 = vpop.f32.mrf.mxu0 }
 0x344   : > { %v4350_v53 = vmax.f32 %v4318_v21, 0.0  ;;  %v4280_v1 = vmul.f32 %v7904_v39, %v4201_v7  ;;  %v4043_v61 = vadd.f32 %v6168_v45, %v6056_v42 }
 0x345   : > { %v6170_v9 = vpop.f32.mrf.mxu0 }
 0x346   : > { %v4373_v3 = vpack.c.bf16 %v4350_v53, %v4349_v16  ;;  %v4204_v11 = vadd.f32 %v6252_v31, %v4043_v61  ;;  %v6171_v57 = vadd.f32 %v6170_v9, %v6169_v34  ;;  %v4319_v44 = vadd.f32 %v7911_v17, %v4280_v1 }
 0x347   : > { %v6172_v33 = vpop.f32.mrf.mxu0 }
 0x348   : > { %v4281_v25 = vmul.f32 %v7904_v39, %v4204_v11  ;;  %v4048_v41 = vadd.f32 %v6171_v57, %v7853_v10  ;;  %5566 = vmatmul.mubr.msk.bf16.gmra.mxu1 %vm874_vm0, %v4373_v3  ;;  %v4351_v29 = vmax.f32 %v4319_v44, 0.0  ;;  %v4211_v10 = vpop.f32.mrf.mxu1 }
 0x349   : > { %v6173_v12 = vpop.f32.mrf.mxu0  ;;  %4599 = vmatprep.mubr.bf16.mxu1 %v8404_v63 }
 0x34a   : > { %v4320_v8 = vadd.f32 %v7911_v17, %v4281_v25  ;;  %v4209_v24 = vadd.f32 %v4208_v2, %v4048_v41  ;;  %v6174_v46 = vadd.f32 %v6173_v12, %v6172_v33  ;;  %v6259_v47 = vpop.f32.mrf.mxu1 }
 0x34b   : > { %v6175_v32 = vpop.f32.mrf.mxu0 }
 0x34c   : > { %v4352_v40 = vmax.f32 %v4320_v8, 0.0  ;;  %v4282_v18 = vmul.f32 %v7904_v39, %v4209_v24  ;;  %v4051_v60 = vadd.f32 %v6174_v46, %v6062_v5 }
 0x34d   : > { %v6176_v31 = vpop.f32.mrf.mxu0 }
 0x34e   : > { %v4374_v37 = vpack.c.bf16 %v4352_v40, %v4351_v29  ;;  %v4212_v28 = vadd.f32 %v4211_v10, %v4051_v60  ;;  %v6177_v13 = vadd.f32 %v6176_v31, %v6175_v32  ;;  %v4321_v48 = vadd.f32 %v7911_v17, %v4282_v18 }
 0x34f   : > { %v6178_v4 = vpop.f32.mrf.mxu0 }
 0x350   : > { %v4283_v49 = vmul.f32 %v7904_v39, %v4212_v28  ;;  %v4056_v6 = vadd.f32 %v6177_v13, %v7863_v50  ;;  %5567 = vmatmul.mubr.msk.bf16.gmra.mxu1 %vm874_vm0, %v4374_v37  ;;  %v4353_v0 = vmax.f32 %v4321_v48, 0.0  ;;  %v4224_v50 = vpop.f32.mrf.mxu1  ;;  %v8405_v48 = vld [vmem:[#allocation13_spill] sm:$0xff] }
 0x351   : > { %v6179_v38 = vpop.f32.mrf.mxu0  ;;  %4609 = vmatprep.mubr.bf16.mxu1 %v8404_v63 }
 0x352   : > { %v4322_v62 = vadd.f32 %v7911_v17, %v4283_v49  ;;  %v4217_v27 = vadd.f32 %v6255_v43, %v4056_v6  ;;  %v6180_v26 = vadd.f32 %v6179_v38, %v6178_v4  ;;  %v6260_v21 = vpop.f32.mrf.mxu1 }
 0x353   : > { %v6181_v30 = vpop.f32.mrf.mxu0 }
 0x354   : > { %v4354_v15 = vmax.f32 %v4322_v62, 0.0  ;;  %v4284_v36 = vmul.f32 %v7904_v39, %v4217_v27  ;;  %v4059_v14 = vadd.f32 %v6180_v26, %v6068_v52  ;;  %v4227_v3 = vpop.f32.mrf.mxu1 }
 0x355   : > { %v6182_v56 = vpop.f32.mrf.mxu0 }
 0x356   : > { %v4375_v54 = vpack.c.bf16 %v4354_v15, %v4353_v0  ;;  %v4220_v58 = vadd.f32 %v6256_v55, %v4059_v14  ;;  %v6183_v59 = vadd.f32 %v6182_v56, %v6181_v30  ;;  %v4323_v51 = vadd.f32 %v7911_v17, %v4284_v36  ;;  %v6263_v5 = vpop.f32.mrf.mxu1  ;;  %v8406_v0 = vld [vmem:[#allocation14_spill] sm:$0xff] }
 0x357   : > { %v6184_v42 = vpop.f32.mrf.mxu0 }
 0x358   : > { %v4285_v19 = vmul.f32 %v7904_v39, %v4220_v58  ;;  %v4064_v43 = vadd.f32 %v6183_v59, %v7873_v22  ;;  %5568 = vmatmul.mubr.msk.bf16.gmra.mxu1 %vm874_vm0, %v4375_v54  ;;  %v4355_v1 = vmax.f32 %v4323_v51, 0.0  ;;  %v4240_v60 = vpop.f32.mrf.mxu1  ;;  %v8407_v51 = vld [vmem:[#allocation15_spill] sm:$0xff] }
 0x359   : > { %v6185_v7 = vpop.f32.mrf.mxu0  ;;  %4619 = vmatprep.mubr.bf16.mxu1 %v8404_v63 }
 0x35a   : > { %v4324_v45 = vadd.f32 %v7911_v17, %v4285_v19  ;;  %v4225_v34 = vadd.f32 %v4224_v50, %v4064_v43  ;;  %v6186_v16 = vadd.f32 %v6185_v7, %v6184_v42  ;;  %v6264_v6 = vpop.f32.mrf.mxu1 }
 0x35b   : > { %v6187_v53 = vpop.f32.mrf.mxu0 }
 0x35c   : > { %v4356_v61 = vmax.f32 %v4324_v45, 0.0  ;;  %v4286_v2 = vmul.f32 %v7904_v39, %v4225_v34  ;;  %v4067_v9 = vadd.f32 %v6186_v16, %v7877_v35  ;;  %v4243_v36 = vpop.f32.mrf.mxu1 }
 0x35d   : > { %v6188_v11 = vpop.f32.mrf.mxu0 }
 0x35e   : > { %v4376_v22 = vpack.c.bf16 %v4356_v61, %v4355_v1  ;;  %v4228_v57 = vadd.f32 %v4227_v3, %v4067_v9  ;;  %v6189_v33 = vadd.f32 %v6188_v11, %v6187_v53  ;;  %v4325_v25 = vadd.f32 %v7911_v17, %v4286_v2  ;;  %v8408_v1 = vld [vmem:[#allocation16_spill] sm:$0xff] }
 0x35f   : > { %v6190_v44 = vpop.f32.mrf.mxu0 }
 0x360   : > { %v4287_v41 = vmul.f32 %v7904_v39, %v4228_v57  ;;  %v4072_v55 = vadd.f32 %v6189_v33, %v7881_v20  ;;  %5569 = vmatmul.mubr.msk.bf16.gmra.mxu1 %vm874_vm0, %v4376_v22  ;;  %v4357_v32 = vmax.f32 %v4325_v25, 0.0  ;;  %v4672_v25 = vlaneseq }
 0x361   : > { %v6191_v12 = vpop.f32.mrf.mxu0  ;;  %4629 = vmatprep.mubr.bf16.mxu1 %v8404_v63 }
 0x362   : > { %v4326_v8 = vadd.f32 %v7911_v17, %v4287_v41  ;;  %v4233_v24 = vadd.f32 %v6259_v47, %v4072_v55  ;;  %v6192_v35 = vadd.f32 %v6191_v12, %v6190_v44  ;;  %v4673_v41 = vshrl.u32 %v4672_v25, 7  ;;  %v4670_v12 = vld [vmem:[%s8381_s8] sm:$0x3]  ;;  %v6500_v25 = vld [vmem:[%s6817_s11 + $0x40] sm:$0xff] }
 0x363   : > { %v6193_v46 = vpop.f32.mrf.mxu0 }
 0x364   : > { %v4358_v29 = vmax.f32 %v4326_v8, 0.0  ;;  %v4288_v40 = vmul.f32 %v7904_v39, %v4233_v24  ;;  %v4075_v18 = vadd.f32 %v6192_v35, %v7885_v23  ;;  %v4674_v55 = vsub.s32 0, %v4673_v41 }
 0x365   : > { %v6194_v10 = vpop.f32.mrf.mxu0 }
 0x366   : > { %v4377_v20 = vpack.c.bf16 %v4358_v29, %v4357_v32  ;;  %v4236_v31 = vadd.f32 %v6260_v21, %v4075_v18  ;;  %v6195_v37 = vadd.f32 %v6194_v10, %v6193_v46  ;;  %v4327_v13 = vadd.f32 %v7911_v17, %v4288_v40 }
 0x367   : > { %v6196_v28 = vpop.f32.mrf.mxu0 }
 0x368   : > { %v4289_v4 = vmul.f32 %v7904_v39, %v4236_v31  ;;  %v4080_v49 = vadd.f32 %v6195_v37, %v8405_v48  ;;  %5570 = vmatmul.mubr.msk.bf16.gmra.mxu1 %vm874_vm0, %v4377_v20  ;;  %v4359_v27 = vmax.f32 %v4327_v13, 0.0  ;;  %v6493_v13 = vld [vmem:[%s6817_s11 + $0x8] sm:$0xff] }
 0x369   : > { %v6197_v47 = vpop.f32.mrf.mxu0  ;;  %4639 = vmatprep.mubr.bf16.mxu1 %v8404_v63 }
 0x36a   : > { %v4328_v38 = vadd.f32 %v7911_v17, %v4289_v4  ;;  %v4241_v52 = vadd.f32 %v4240_v60, %v4080_v49  ;;  %v6198_v23 = vadd.f32 %v6197_v47, %v6196_v28  ;;  %v6492_v60 = vld [vmem:[%s6817_s11] sm:$0xff] }
 0x36b   : > { %v6199_v62 = vpop.f32.mrf.mxu0 }
 0x36c   : > { %v4360_v26 = vmax.f32 %v4328_v38, 0.0  ;;  %v4290_v30 = vmul.f32 %v7904_v39, %v4241_v52  ;;  %v4083_v15 = vadd.f32 %v6198_v23, %v8406_v0  ;;  %v6494_v38 = vld [vmem:[%s6817_s11 + $0x10] sm:$0xff] }
 0x36d   : > { %v6200_v14 = vpop.f32.mrf.mxu0 }
 0x36e   : > { %v4378_v50 = vpack.c.bf16 %v4360_v26, %v4359_v27  ;;  %v4244_v56 = vadd.f32 %v4243_v36, %v4083_v15  ;;  %v6201_v54 = vadd.f32 %v6200_v14, %v6199_v62  ;;  %v4329_v59 = vadd.f32 %v7911_v17, %v4290_v30  ;;  %v6495_v30 = vld [vmem:[%s6817_s11 + $0x18] sm:$0xff] }
 0x36f   : > { %v6202_v58 = vpop.f32.mrf.mxu0 }
 0x370   : > { %v4291_v42 = vmul.f32 %v7904_v39, %v4244_v56  ;;  %v4088_v19 = vadd.f32 %v6201_v54, %v8407_v51  ;;  %5571 = vmatmul.mubr.msk.bf16.gmra.mxu1 %vm874_vm0, %v4378_v50  ;;  %v4361_v34 = vmax.f32 %v4329_v59, 0.0  ;;  %v6496_v56 = vld [vmem:[%s6817_s11 + $0x20] sm:$0xff] }
 0x371   : > { %v6203_v43 = vpop.f32.mrf.mxu0  ;;  %4649 = vmatprep.mubr.bf16.mxu1 %v8404_v63 }
 0x372   : > { %v4330_v21 = vadd.f32 %v7911_v17, %v4291_v42  ;;  %v4249_v7 = vadd.f32 %v6263_v5, %v4088_v19  ;;  %v6204_v45 = vadd.f32 %v6203_v43, %v6202_v58  ;;  %v8055_v5 = vrot.slane %v4670_v12, %v4674_v55  ;;  %v6497_v19 = vld [vmem:[%s6817_s11 + $0x28] sm:$0xff] }
 0x374   : > { %v4362_v16 = vmax.f32 %v4330_v21, 0.0  ;;  %v4292_v53 = vmul.f32 %v7904_v39, %v4249_v7  ;;  %v4091_v61 = vadd.f32 %v6204_v45, %v8408_v1 }
 0x376   : > { %v4379_v2 = vpack.c.bf16 %v4362_v16, %v4361_v34  ;;  %v4252_v9 = vadd.f32 %v6264_v6, %v4091_v61  ;;  %v4331_v3 = vadd.f32 %v7911_v17, %v4292_v53  ;;  %v6498_v16 = vld [vmem:[%s6817_s11 + $0x30] sm:$0xff] }
 0x378   : > { %v4293_v11 = vmul.f32 %v7904_v39, %v4252_v9  ;;  %5572 = vmatmul.mubr.msk.bf16.gmra.mxu1 %vm874_vm0, %v4379_v2  ;;  %v4363_v57 = vmax.f32 %v4331_v3, 0.0  ;;  %v4678_v39 = vsub.s32 1, %v4673_v41  ;;  %v6499_v3 = vld [vmem:[%s6817_s11 + $0x38] sm:$0xff] }
 0x379   : > { %4659 = vmatprep.mubr.bf16.mxu1 %v8404_v63 }
 0x37a   : > { %v4332_v22 = vadd.f32 %v7911_v17, %v4293_v11  ;;  %v4746_v17 = vld [vmem:[%s8382_s9] sm:$0x3]  ;;  %v8059_v8 = vrot.slane %v4670_v12, %v4678_v39 }
 0x37b   : > { %v8057_v63 = vrot.slane %v4746_v17, %v4674_v55  ;;  %v8062_v46 = vrot.slane %v4746_v17, %v4678_v39 }
 0x37c   : > { %v4364_v33 = vmax.f32 %v4332_v22, 0.0 }
 0x37e   : > { %v4380_v44 = vpack.c.bf16 %v4364_v33, %v4363_v57 }
 0x380   : > { %5573 = vmatmul.mubr.msk.bf16.gmra.mxu1 %vm874_vm0, %v4380_v44 }
 0x3c8   : > { %v4511_v24 = vpop.f32.mrf.mxu1 }
 0x3c9   : > { %v4682_v35 = vmul.f32 %v8055_v5, %v4511_v24  ;;  %v6501_v24 = vld [vmem:[%s6817_s11 + $0x48] sm:$0xff] }
 0x3ca   : > { %v4513_v32 = vpop.f32.mrf.mxu1 }
 0x3cb   : > { %v4758_v29 = vadd.f32 %v8057_v63, %v4682_v35  ;;  %v4683_v40 = vmul.f32 %v8059_v8, %v4513_v32 }
 0x3cc   : > { %v4515_v18 = vpop.f32.mrf.mxu1 }
 0x3cd   : > { %v4822_v10 = vadd.f32 %v6492_v60, %v4758_v29  ;;  %v4759_v20 = vadd.f32 %v8062_v46, %v4683_v40  ;;  %v4684_v31 = vmul.f32 %v8055_v5, %v4515_v18  ;;  %v6502_v60 = vld [vmem:[%s6817_s11 + $0x50] sm:$0xff] }
 0x3ce   : > { %v4517_v37 = vpop.f32.mrf.mxu1 }
 0x3cf   : > { %v4886_v28 = vmax.f32 %v4822_v10, 0.0  ;;  %v4823_v4 = vadd.f32 %v6493_v13, %v4759_v20  ;;  %v4760_v48 = vadd.f32 %v8057_v63, %v4684_v31  ;;  %v4685_v49 = vmul.f32 %v8059_v8, %v4517_v37  ;;  %v6503_v13 = vld [vmem:[%s6817_s11 + $0x58] sm:$0xff] }
 0x3d0   : > { %v4521_v6 = vpop.f32.mrf.mxu1 }
 0x3d1   : > { %4950 = vst [vmem:[%s8074_s21] sm:$0xff] %v4886_v28  ;;  %v4887_v47 = vmax.f32 %v4823_v4, 0.0  ;;  %v4824_v52 = vadd.f32 %v6494_v38, %v4760_v48  ;;  %v4761_v23 = vadd.f32 %v8062_v46, %v4685_v49  ;;  %v4686_v62 = vmul.f32 %v8055_v5, %v4521_v6  ;;  %v6504_v38 = vld [vmem:[%s6817_s11 + $0x60] sm:$0xff] }
 0x3d2   : > { %v4523_v27 = vpop.f32.mrf.mxu1 }
 0x3d3   : > { %4951 = vst [vmem:[%s8074_s21 + $0x8] sm:$0xff] %v4887_v47  ;;  %v4888_v26 = vmax.f32 %v4824_v52, 0.0  ;;  %v4825_v0 = vadd.f32 %v6495_v30, %v4761_v23  ;;  %v4762_v15 = vadd.f32 %v8057_v63, %v4686_v62  ;;  %v4687_v36 = vmul.f32 %v8059_v8, %v4523_v27  ;;  %v6505_v30 = vld [vmem:[%s6817_s11 + $0x68] sm:$0xff] }
 0x3d4   : > { %v4525_v14 = vpop.f32.mrf.mxu1 }
 0x3d5   : > { %4952 = vst [vmem:[%s8074_s21 + $0x10] sm:$0xff] %v4888_v26  ;;  %v4889_v50 = vmax.f32 %v4825_v0, 0.0  ;;  %v4826_v54 = vadd.f32 %v6496_v56, %v4762_v15  ;;  %v4763_v58 = vadd.f32 %v8062_v46, %v4687_v36  ;;  %v4688_v59 = vmul.f32 %v8055_v5, %v4525_v14  ;;  %v6506_v56 = vld [vmem:[%s6817_s11 + $0x70] sm:$0xff] }
 0x3d6   : > { %v4527_v42 = vpop.f32.mrf.mxu1 }
 0x3d7   : > { %4953 = vst [vmem:[%s8074_s21 + $0x18] sm:$0xff] %v4889_v50  ;;  %v4890_v51 = vmax.f32 %v4826_v54, 0.0  ;;  %v4827_v43 = vadd.f32 %v6497_v19, %v4763_v58  ;;  %v4764_v21 = vadd.f32 %v8057_v63, %v4688_v59  ;;  %v4689_v7 = vmul.f32 %v8059_v8, %v4527_v42  ;;  %v6507_v19 = vld [vmem:[%s6817_s11 + $0x78] sm:$0xff] }
 0x3d8   : > { %v4531_v45 = vpop.f32.mrf.mxu1 }
 0x3d9   : > { %4954 = vst [vmem:[%s8074_s21 + $0x20] sm:$0xff] %v4890_v51  ;;  %v4891_v34 = vmax.f32 %v4827_v43, 0.0  ;;  %v4828_v53 = vadd.f32 %v6498_v16, %v4764_v21  ;;  %v4765_v1 = vadd.f32 %v8062_v46, %v4689_v7  ;;  %v4690_v61 = vmul.f32 %v8055_v5, %v4531_v45  ;;  %v6508_v16 = vld [vmem:[%s6817_s11 + $0x80] sm:$0xff] }
 0x3da   : > { %v4533_v2 = vpop.f32.mrf.mxu1 }
 0x3db   : > { %4955 = vst [vmem:[%s8074_s21 + $0x28] sm:$0xff] %v4891_v34  ;;  %v4892_v9 = vmax.f32 %v4828_v53, 0.0  ;;  %v4829_v11 = vadd.f32 %v6499_v3, %v4765_v1  ;;  %v4766_v22 = vadd.f32 %v8057_v63, %v4690_v61  ;;  %v4691_v57 = vmul.f32 %v8059_v8, %v4533_v2  ;;  %v6509_v3 = vld [vmem:[%s6817_s11 + $0x88] sm:$0xff] }
 0x3dc   : > { %v4535_v33 = vpop.f32.mrf.mxu1 }
 0x3dd   : > { %4956 = vst [vmem:[%s8074_s21 + $0x30] sm:$0xff] %v4892_v9  ;;  %v4893_v44 = vmax.f32 %v4829_v11, 0.0  ;;  %v4830_v41 = vadd.f32 %v6500_v25, %v4766_v22  ;;  %v4767_v55 = vadd.f32 %v8062_v46, %v4691_v57  ;;  %v4692_v12 = vmul.f32 %v8055_v5, %v4535_v33  ;;  %v6510_v25 = vld [vmem:[%s6817_s11 + $0x90] sm:$0xff] }
 0x3de   : > { %v4537_v39 = vpop.f32.mrf.mxu1 }
 0x3df   : > { %4957 = vst [vmem:[%s8074_s21 + $0x38] sm:$0xff] %v4893_v44  ;;  %v4894_v17 = vmax.f32 %v4830_v41, 0.0  ;;  %v4831_v35 = vadd.f32 %v6501_v24, %v4767_v55  ;;  %v4768_v32 = vadd.f32 %v8057_v63, %v4692_v12  ;;  %v4693_v29 = vmul.f32 %v8059_v8, %v4537_v39  ;;  %v6511_v24 = vld [vmem:[%s6817_s11 + $0x98] sm:$0xff] }
 0x3e0   : > { %v4541_v40 = vpop.f32.mrf.mxu1 }
 0x3e1   : > { %4958 = vst [vmem:[%s8074_s21 + $0x40] sm:$0xff] %v4894_v17  ;;  %v4895_v18 = vmax.f32 %v4831_v35, 0.0  ;;  %v4832_v10 = vadd.f32 %v6502_v60, %v4768_v32  ;;  %v4769_v20 = vadd.f32 %v8062_v46, %v4693_v29  ;;  %v4694_v31 = vmul.f32 %v8055_v5, %v4541_v40  ;;  %v6512_v60 = vld [vmem:[%s6817_s11 + $0xa0] sm:$0xff] }
 0x3e2   : > { %v4543_v37 = vpop.f32.mrf.mxu1 }
 0x3e3   : > { %4959 = vst [vmem:[%s8074_s21 + $0x48] sm:$0xff] %v4895_v18  ;;  %v4896_v28 = vmax.f32 %v4832_v10, 0.0  ;;  %v4833_v4 = vadd.f32 %v6503_v13, %v4769_v20  ;;  %v4770_v48 = vadd.f32 %v8057_v63, %v4694_v31  ;;  %v4695_v49 = vmul.f32 %v8059_v8, %v4543_v37  ;;  %v6513_v13 = vld [vmem:[%s6817_s11 + $0xa8] sm:$0xff] }
 0x3e4   : > { %v4545_v6 = vpop.f32.mrf.mxu1 }
 0x3e5   : > { %4960 = vst [vmem:[%s8074_s21 + $0x50] sm:$0xff] %v4896_v28  ;;  %v4897_v47 = vmax.f32 %v4833_v4, 0.0  ;;  %v4834_v52 = vadd.f32 %v6504_v38, %v4770_v48  ;;  %v4771_v23 = vadd.f32 %v8062_v46, %v4695_v49  ;;  %v4696_v62 = vmul.f32 %v8055_v5, %v4545_v6  ;;  %v6514_v38 = vld [vmem:[%s6817_s11 + $0xb0] sm:$0xff] }
 0x3e6   : > { %v4547_v27 = vpop.f32.mrf.mxu1 }
 0x3e7   : > { %4961 = vst [vmem:[%s8074_s21 + $0x58] sm:$0xff] %v4897_v47  ;;  %v4898_v26 = vmax.f32 %v4834_v52, 0.0  ;;  %v4835_v0 = vadd.f32 %v6505_v30, %v4771_v23  ;;  %v4772_v15 = vadd.f32 %v8057_v63, %v4696_v62  ;;  %v4697_v36 = vmul.f32 %v8059_v8, %v4547_v27  ;;  %v6515_v30 = vld [vmem:[%s6817_s11 + $0xb8] sm:$0xff] }
 0x3e8   : > { %v4551_v14 = vpop.f32.mrf.mxu1 }
 0x3e9   : > { %4962 = vst [vmem:[%s8074_s21 + $0x60] sm:$0xff] %v4898_v26  ;;  %v4899_v50 = vmax.f32 %v4835_v0, 0.0  ;;  %v4836_v54 = vadd.f32 %v6506_v56, %v4772_v15  ;;  %v4773_v58 = vadd.f32 %v8062_v46, %v4697_v36  ;;  %v4698_v59 = vmul.f32 %v8055_v5, %v4551_v14  ;;  %v6516_v56 = vld [vmem:[%s6817_s11 + $0xc0] sm:$0xff] }
 0x3ea   : > { %v4553_v42 = vpop.f32.mrf.mxu1 }
 0x3eb   : > { %4963 = vst [vmem:[%s8074_s21 + $0x68] sm:$0xff] %v4899_v50  ;;  %v4900_v51 = vmax.f32 %v4836_v54, 0.0  ;;  %v4837_v43 = vadd.f32 %v6507_v19, %v4773_v58  ;;  %v4774_v21 = vadd.f32 %v8057_v63, %v4698_v59  ;;  %v4699_v7 = vmul.f32 %v8059_v8, %v4553_v42  ;;  %v6517_v19 = vld [vmem:[%s6817_s11 + $0xc8] sm:$0xff] }
 0x3ec   : > { %v4555_v45 = vpop.f32.mrf.mxu1 }
 0x3ed   : > { %4964 = vst [vmem:[%s8074_s21 + $0x70] sm:$0xff] %v4900_v51  ;;  %v4901_v34 = vmax.f32 %v4837_v43, 0.0  ;;  %v4838_v53 = vadd.f32 %v6508_v16, %v4774_v21  ;;  %v4775_v1 = vadd.f32 %v8062_v46, %v4699_v7  ;;  %v4700_v61 = vmul.f32 %v8055_v5, %v4555_v45  ;;  %v6518_v16 = vld [vmem:[%s6817_s11 + $0xd0] sm:$0xff] }
 0x3ee   : > { %v4557_v2 = vpop.f32.mrf.mxu1 }
 0x3ef   : > { %4965 = vst [vmem:[%s8074_s21 + $0x78] sm:$0xff] %v4901_v34  ;;  %v4902_v9 = vmax.f32 %v4838_v53, 0.0  ;;  %v4839_v11 = vadd.f32 %v6509_v3, %v4775_v1  ;;  %v4776_v22 = vadd.f32 %v8057_v63, %v4700_v61  ;;  %v4701_v57 = vmul.f32 %v8059_v8, %v4557_v2  ;;  %v6519_v3 = vld [vmem:[%s6817_s11 + $0xd8] sm:$0xff] }
 0x3f0   : > { %v4561_v33 = vpop.f32.mrf.mxu1 }
 0x3f1   : > { %4966 = vst [vmem:[%s8074_s21 + $0x80] sm:$0xff] %v4902_v9  ;;  %v4903_v44 = vmax.f32 %v4839_v11, 0.0  ;;  %v4840_v41 = vadd.f32 %v6510_v25, %v4776_v22  ;;  %v4777_v55 = vadd.f32 %v8062_v46, %v4701_v57  ;;  %v4702_v12 = vmul.f32 %v8055_v5, %v4561_v33  ;;  %v6520_v25 = vld [vmem:[%s6817_s11 + $0xe0] sm:$0xff] }
 0x3f2   : > { %v4563_v39 = vpop.f32.mrf.mxu1 }
 0x3f3   : > { %4967 = vst [vmem:[%s8074_s21 + $0x88] sm:$0xff] %v4903_v44  ;;  %v4904_v17 = vmax.f32 %v4840_v41, 0.0  ;;  %v4841_v35 = vadd.f32 %v6511_v24, %v4777_v55  ;;  %v4778_v32 = vadd.f32 %v8057_v63, %v4702_v12  ;;  %v4703_v29 = vmul.f32 %v8059_v8, %v4563_v39  ;;  %v6521_v24 = vld [vmem:[%s6817_s11 + $0xe8] sm:$0xff] }
 0x3f4   : > { %v4565_v40 = vpop.f32.mrf.mxu1 }
 0x3f5   : > { %4968 = vst [vmem:[%s8074_s21 + $0x90] sm:$0xff] %v4904_v17  ;;  %v4905_v18 = vmax.f32 %v4841_v35, 0.0  ;;  %v4842_v10 = vadd.f32 %v6512_v60, %v4778_v32  ;;  %v4779_v20 = vadd.f32 %v8062_v46, %v4703_v29  ;;  %v4704_v31 = vmul.f32 %v8055_v5, %v4565_v40  ;;  %v6522_v60 = vld [vmem:[%s6817_s11 + $0xf0] sm:$0xff] }
 0x3f6   : > { %v4567_v37 = vpop.f32.mrf.mxu1 }
 0x3f7   : > { %4969 = vst [vmem:[%s8074_s21 + $0x98] sm:$0xff] %v4905_v18  ;;  %v4906_v28 = vmax.f32 %v4842_v10, 0.0  ;;  %v4843_v4 = vadd.f32 %v6513_v13, %v4779_v20  ;;  %v4780_v48 = vadd.f32 %v8057_v63, %v4704_v31  ;;  %v4705_v49 = vmul.f32 %v8059_v8, %v4567_v37  ;;  %v6523_v13 = vld [vmem:[%s6817_s11 + $0xf8] sm:$0xff] }
 0x3f8   : > { %v4571_v6 = vpop.f32.mrf.mxu1 }
 0x3f9   : > { %4970 = vst [vmem:[%s8074_s21 + $0xa0] sm:$0xff] %v4906_v28  ;;  %v4907_v47 = vmax.f32 %v4843_v4, 0.0  ;;  %v4844_v52 = vadd.f32 %v6514_v38, %v4780_v48  ;;  %v4781_v23 = vadd.f32 %v8062_v46, %v4705_v49  ;;  %v4706_v62 = vmul.f32 %v8055_v5, %v4571_v6  ;;  %v6524_v38 = vld [vmem:[%s6817_s11 + $0x100] sm:$0xff] }
 0x3fa   : > { %v4573_v27 = vpop.f32.mrf.mxu1 }
 0x3fb   : > { %4971 = vst [vmem:[%s8074_s21 + $0xa8] sm:$0xff] %v4907_v47  ;;  %v4908_v26 = vmax.f32 %v4844_v52, 0.0  ;;  %v4845_v0 = vadd.f32 %v6515_v30, %v4781_v23  ;;  %v4782_v15 = vadd.f32 %v8057_v63, %v4706_v62  ;;  %v4707_v36 = vmul.f32 %v8059_v8, %v4573_v27  ;;  %v6525_v30 = vld [vmem:[%s6817_s11 + $0x108] sm:$0xff] }
 0x3fc   : > { %v4575_v14 = vpop.f32.mrf.mxu1 }
 0x3fd   : > { %4972 = vst [vmem:[%s8074_s21 + $0xb0] sm:$0xff] %v4908_v26  ;;  %v4909_v50 = vmax.f32 %v4845_v0, 0.0  ;;  %v4846_v54 = vadd.f32 %v6516_v56, %v4782_v15  ;;  %v4783_v58 = vadd.f32 %v8062_v46, %v4707_v36  ;;  %v4708_v59 = vmul.f32 %v8055_v5, %v4575_v14  ;;  %v6526_v56 = vld [vmem:[%s6817_s11 + $0x110] sm:$0xff] }
 0x3fe   : > { %v4577_v42 = vpop.f32.mrf.mxu1 }
 0x3ff   : > { %4973 = vst [vmem:[%s8074_s21 + $0xb8] sm:$0xff] %v4909_v50  ;;  %v4910_v51 = vmax.f32 %v4846_v54, 0.0  ;;  %v4847_v43 = vadd.f32 %v6517_v19, %v4783_v58  ;;  %v4784_v21 = vadd.f32 %v8057_v63, %v4708_v59  ;;  %v4709_v7 = vmul.f32 %v8059_v8, %v4577_v42  ;;  %v6527_v19 = vld [vmem:[%s6817_s11 + $0x118] sm:$0xff] }
 0x400   : > { %v4581_v45 = vpop.f32.mrf.mxu1 }
 0x401   : > { %4974 = vst [vmem:[%s8074_s21 + $0xc0] sm:$0xff] %v4910_v51  ;;  %v4911_v34 = vmax.f32 %v4847_v43, 0.0  ;;  %v4848_v53 = vadd.f32 %v6518_v16, %v4784_v21  ;;  %v4785_v1 = vadd.f32 %v8062_v46, %v4709_v7  ;;  %v4710_v61 = vmul.f32 %v8055_v5, %v4581_v45  ;;  %v6528_v16 = vld [vmem:[%s6817_s11 + $0x120] sm:$0xff] }
 0x402   : > { %v4583_v2 = vpop.f32.mrf.mxu1 }
 0x403   : > { %4975 = vst [vmem:[%s8074_s21 + $0xc8] sm:$0xff] %v4911_v34  ;;  %v4912_v9 = vmax.f32 %v4848_v53, 0.0  ;;  %v4849_v11 = vadd.f32 %v6519_v3, %v4785_v1  ;;  %v4786_v22 = vadd.f32 %v8057_v63, %v4710_v61  ;;  %v4711_v57 = vmul.f32 %v8059_v8, %v4583_v2  ;;  %v6529_v3 = vld [vmem:[%s6817_s11 + $0x128] sm:$0xff] }
 0x404   : > { %v4585_v33 = vpop.f32.mrf.mxu1 }
 0x405   : > { %4976 = vst [vmem:[%s8074_s21 + $0xd0] sm:$0xff] %v4912_v9  ;;  %v4913_v44 = vmax.f32 %v4849_v11, 0.0  ;;  %v4850_v41 = vadd.f32 %v6520_v25, %v4786_v22  ;;  %v4787_v55 = vadd.f32 %v8062_v46, %v4711_v57  ;;  %v4712_v12 = vmul.f32 %v8055_v5, %v4585_v33  ;;  %v6530_v25 = vld [vmem:[%s6817_s11 + $0x130] sm:$0xff] }
 0x406   : > { %v4587_v39 = vpop.f32.mrf.mxu1 }
 0x407   : > { %4977 = vst [vmem:[%s8074_s21 + $0xd8] sm:$0xff] %v4913_v44  ;;  %v4914_v17 = vmax.f32 %v4850_v41, 0.0  ;;  %v4851_v35 = vadd.f32 %v6521_v24, %v4787_v55  ;;  %v4788_v32 = vadd.f32 %v8057_v63, %v4712_v12  ;;  %v4713_v29 = vmul.f32 %v8059_v8, %v4587_v39  ;;  %v6531_v24 = vld [vmem:[%s6817_s11 + $0x138] sm:$0xff] }
 0x408   : > { %v4591_v40 = vpop.f32.mrf.mxu1 }
 0x409   : > { %4978 = vst [vmem:[%s8074_s21 + $0xe0] sm:$0xff] %v4914_v17  ;;  %v4915_v18 = vmax.f32 %v4851_v35, 0.0  ;;  %v4852_v10 = vadd.f32 %v6522_v60, %v4788_v32  ;;  %v4789_v20 = vadd.f32 %v8062_v46, %v4713_v29  ;;  %v4714_v31 = vmul.f32 %v8055_v5, %v4591_v40  ;;  %v6532_v60 = vld [vmem:[%s6817_s11 + $0x140] sm:$0xff] }
 0x40a   : > { %v4593_v37 = vpop.f32.mrf.mxu1 }
 0x40b   : > { %4979 = vst [vmem:[%s8074_s21 + $0xe8] sm:$0xff] %v4915_v18  ;;  %v4916_v28 = vmax.f32 %v4852_v10, 0.0  ;;  %v4853_v4 = vadd.f32 %v6523_v13, %v4789_v20  ;;  %v4790_v48 = vadd.f32 %v8057_v63, %v4714_v31  ;;  %v4715_v49 = vmul.f32 %v8059_v8, %v4593_v37  ;;  %v6533_v13 = vld [vmem:[%s6817_s11 + $0x148] sm:$0xff] }
 0x40c   : > { %v4595_v6 = vpop.f32.mrf.mxu1 }
 0x40d   : > { %4980 = vst [vmem:[%s8074_s21 + $0xf0] sm:$0xff] %v4916_v28  ;;  %v4917_v47 = vmax.f32 %v4853_v4, 0.0  ;;  %v4854_v52 = vadd.f32 %v6524_v38, %v4790_v48  ;;  %v4791_v23 = vadd.f32 %v8062_v46, %v4715_v49  ;;  %v4716_v62 = vmul.f32 %v8055_v5, %v4595_v6  ;;  %v6534_v38 = vld [vmem:[%s6817_s11 + $0x150] sm:$0xff] }
 0x40e   : > { %v4597_v27 = vpop.f32.mrf.mxu1 }
 0x40f   : > { %4981 = vst [vmem:[%s8074_s21 + $0xf8] sm:$0xff] %v4917_v47  ;;  %v4918_v26 = vmax.f32 %v4854_v52, 0.0  ;;  %v4855_v0 = vadd.f32 %v6525_v30, %v4791_v23  ;;  %v4792_v15 = vadd.f32 %v8057_v63, %v4716_v62  ;;  %v4717_v36 = vmul.f32 %v8059_v8, %v4597_v27  ;;  %v6535_v30 = vld [vmem:[%s6817_s11 + $0x158] sm:$0xff] }
 0x410   : > { %v4601_v14 = vpop.f32.mrf.mxu1 }
 0x411   : > { %4982 = vst [vmem:[%s8074_s21 + $0x100] sm:$0xff] %v4918_v26  ;;  %v4919_v50 = vmax.f32 %v4855_v0, 0.0  ;;  %v4856_v54 = vadd.f32 %v6526_v56, %v4792_v15  ;;  %v4793_v58 = vadd.f32 %v8062_v46, %v4717_v36  ;;  %v4718_v59 = vmul.f32 %v8055_v5, %v4601_v14  ;;  %v6536_v56 = vld [vmem:[%s6817_s11 + $0x160] sm:$0xff] }
 0x412   : > { %v4603_v42 = vpop.f32.mrf.mxu1 }
 0x413   : > { %4983 = vst [vmem:[%s8074_s21 + $0x108] sm:$0xff] %v4919_v50  ;;  %v4920_v51 = vmax.f32 %v4856_v54, 0.0  ;;  %v4857_v43 = vadd.f32 %v6527_v19, %v4793_v58  ;;  %v4794_v21 = vadd.f32 %v8057_v63, %v4718_v59  ;;  %v4719_v7 = vmul.f32 %v8059_v8, %v4603_v42  ;;  %v6537_v19 = vld [vmem:[%s6817_s11 + $0x168] sm:$0xff] }
 0x414   : > { %v4605_v45 = vpop.f32.mrf.mxu1 }
 0x415   : > { %4984 = vst [vmem:[%s8074_s21 + $0x110] sm:$0xff] %v4920_v51  ;;  %v4921_v34 = vmax.f32 %v4857_v43, 0.0  ;;  %v4858_v53 = vadd.f32 %v6528_v16, %v4794_v21  ;;  %v4795_v1 = vadd.f32 %v8062_v46, %v4719_v7  ;;  %v4720_v61 = vmul.f32 %v8055_v5, %v4605_v45  ;;  %v6538_v16 = vld [vmem:[%s6817_s11 + $0x170] sm:$0xff] }
 0x416   : > { %v4607_v2 = vpop.f32.mrf.mxu1 }
 0x417   : > { %4985 = vst [vmem:[%s8074_s21 + $0x118] sm:$0xff] %v4921_v34  ;;  %v4922_v9 = vmax.f32 %v4858_v53, 0.0  ;;  %v4859_v11 = vadd.f32 %v6529_v3, %v4795_v1  ;;  %v4796_v22 = vadd.f32 %v8057_v63, %v4720_v61  ;;  %v4721_v57 = vmul.f32 %v8059_v8, %v4607_v2  ;;  %v6539_v3 = vld [vmem:[%s6817_s11 + $0x178] sm:$0xff] }
 0x418   : > { %v4611_v33 = vpop.f32.mrf.mxu1 }
 0x419   : > { %4986 = vst [vmem:[%s8074_s21 + $0x120] sm:$0xff] %v4922_v9  ;;  %v4923_v44 = vmax.f32 %v4859_v11, 0.0  ;;  %v4860_v41 = vadd.f32 %v6530_v25, %v4796_v22  ;;  %v4797_v55 = vadd.f32 %v8062_v46, %v4721_v57  ;;  %v4722_v12 = vmul.f32 %v8055_v5, %v4611_v33  ;;  %v6540_v25 = vld [vmem:[%s6817_s11 + $0x180] sm:$0xff] }
 0x41a   : > { %v4613_v39 = vpop.f32.mrf.mxu1 }
 0x41b   : > { %4987 = vst [vmem:[%s8074_s21 + $0x128] sm:$0xff] %v4923_v44  ;;  %v4924_v17 = vmax.f32 %v4860_v41, 0.0  ;;  %v4861_v35 = vadd.f32 %v6531_v24, %v4797_v55  ;;  %v4798_v32 = vadd.f32 %v8057_v63, %v4722_v12  ;;  %v4723_v29 = vmul.f32 %v8059_v8, %v4613_v39  ;;  %v6541_v24 = vld [vmem:[%s6817_s11 + $0x188] sm:$0xff] }
 0x41c   : > { %v4615_v40 = vpop.f32.mrf.mxu1 }
 0x41d   : > { %4988 = vst [vmem:[%s8074_s21 + $0x130] sm:$0xff] %v4924_v17  ;;  %v4925_v18 = vmax.f32 %v4861_v35, 0.0  ;;  %v4862_v10 = vadd.f32 %v6532_v60, %v4798_v32  ;;  %v4799_v20 = vadd.f32 %v8062_v46, %v4723_v29  ;;  %v4724_v31 = vmul.f32 %v8055_v5, %v4615_v40  ;;  %v6542_v60 = vld [vmem:[%s6817_s11 + $0x190] sm:$0xff] }
 0x41e   : > { %v4617_v37 = vpop.f32.mrf.mxu1 }
 0x41f   : > { %4989 = vst [vmem:[%s8074_s21 + $0x138] sm:$0xff] %v4925_v18  ;;  %v4926_v28 = vmax.f32 %v4862_v10, 0.0  ;;  %v4863_v4 = vadd.f32 %v6533_v13, %v4799_v20  ;;  %v4800_v48 = vadd.f32 %v8057_v63, %v4724_v31  ;;  %v4725_v49 = vmul.f32 %v8059_v8, %v4617_v37  ;;  %v6543_v13 = vld [vmem:[%s6817_s11 + $0x198] sm:$0xff] }
 0x420   : > { %v4621_v6 = vpop.f32.mrf.mxu1 }
 0x421   : > { %4990 = vst [vmem:[%s8074_s21 + $0x140] sm:$0xff] %v4926_v28  ;;  %v4927_v47 = vmax.f32 %v4863_v4, 0.0  ;;  %v4864_v52 = vadd.f32 %v6534_v38, %v4800_v48  ;;  %v4801_v23 = vadd.f32 %v8062_v46, %v4725_v49  ;;  %v4726_v62 = vmul.f32 %v8055_v5, %v4621_v6  ;;  %v6544_v38 = vld [vmem:[%s6817_s11 + $0x1a0] sm:$0xff] }
 0x422   : > { %v4623_v27 = vpop.f32.mrf.mxu1 }
 0x423   : > { %4991 = vst [vmem:[%s8074_s21 + $0x148] sm:$0xff] %v4927_v47  ;;  %v4928_v26 = vmax.f32 %v4864_v52, 0.0  ;;  %v4865_v0 = vadd.f32 %v6535_v30, %v4801_v23  ;;  %v4802_v15 = vadd.f32 %v8057_v63, %v4726_v62  ;;  %v4727_v36 = vmul.f32 %v8059_v8, %v4623_v27  ;;  %v6545_v30 = vld [vmem:[%s6817_s11 + $0x1a8] sm:$0xff] }
 0x424   : > { %v4625_v14 = vpop.f32.mrf.mxu1 }
 0x425   : > { %4992 = vst [vmem:[%s8074_s21 + $0x150] sm:$0xff] %v4928_v26  ;;  %v4929_v50 = vmax.f32 %v4865_v0, 0.0  ;;  %v4866_v54 = vadd.f32 %v6536_v56, %v4802_v15  ;;  %v4803_v58 = vadd.f32 %v8062_v46, %v4727_v36  ;;  %v4728_v59 = vmul.f32 %v8055_v5, %v4625_v14  ;;  %v6546_v56 = vld [vmem:[%s6817_s11 + $0x1b0] sm:$0xff] }
 0x426   : > { %v4627_v42 = vpop.f32.mrf.mxu1 }
 0x427   : > { %4993 = vst [vmem:[%s8074_s21 + $0x158] sm:$0xff] %v4929_v50  ;;  %v4930_v51 = vmax.f32 %v4866_v54, 0.0  ;;  %v4867_v43 = vadd.f32 %v6537_v19, %v4803_v58  ;;  %v4804_v21 = vadd.f32 %v8057_v63, %v4728_v59  ;;  %v4729_v7 = vmul.f32 %v8059_v8, %v4627_v42  ;;  %v6547_v19 = vld [vmem:[%s6817_s11 + $0x1b8] sm:$0xff] }
 0x428   : > { %v4631_v45 = vpop.f32.mrf.mxu1 }
 0x429   : > { %4994 = vst [vmem:[%s8074_s21 + $0x160] sm:$0xff] %v4930_v51  ;;  %v4931_v34 = vmax.f32 %v4867_v43, 0.0  ;;  %v4868_v53 = vadd.f32 %v6538_v16, %v4804_v21  ;;  %v4805_v1 = vadd.f32 %v8062_v46, %v4729_v7  ;;  %v4730_v61 = vmul.f32 %v8055_v5, %v4631_v45  ;;  %v6548_v16 = vld [vmem:[%s6817_s11 + $0x1c0] sm:$0xff] }
 0x42a   : > { %v4633_v2 = vpop.f32.mrf.mxu1 }
 0x42b   : > { %4995 = vst [vmem:[%s8074_s21 + $0x168] sm:$0xff] %v4931_v34  ;;  %v4932_v9 = vmax.f32 %v4868_v53, 0.0  ;;  %v4869_v11 = vadd.f32 %v6539_v3, %v4805_v1  ;;  %v4806_v22 = vadd.f32 %v8057_v63, %v4730_v61  ;;  %v4731_v57 = vmul.f32 %v8059_v8, %v4633_v2  ;;  %v6549_v3 = vld [vmem:[%s6817_s11 + $0x1c8] sm:$0xff] }
 0x42c   : > { %v4635_v33 = vpop.f32.mrf.mxu1 }
 0x42d   : > { %4996 = vst [vmem:[%s8074_s21 + $0x170] sm:$0xff] %v4932_v9  ;;  %v4933_v44 = vmax.f32 %v4869_v11, 0.0  ;;  %v4870_v41 = vadd.f32 %v6540_v25, %v4806_v22  ;;  %v4807_v55 = vadd.f32 %v8062_v46, %v4731_v57  ;;  %v4732_v12 = vmul.f32 %v8055_v5, %v4635_v33  ;;  %v6550_v25 = vld [vmem:[%s6817_s11 + $0x1d0] sm:$0xff] }
 0x42e   : > { %v4637_v39 = vpop.f32.mrf.mxu1 }
 0x42f   : > { %4997 = vst [vmem:[%s8074_s21 + $0x178] sm:$0xff] %v4933_v44  ;;  %v4934_v17 = vmax.f32 %v4870_v41, 0.0  ;;  %v4871_v35 = vadd.f32 %v6541_v24, %v4807_v55  ;;  %v4808_v32 = vadd.f32 %v8057_v63, %v4732_v12  ;;  %v4733_v29 = vmul.f32 %v8059_v8, %v4637_v39  ;;  %v6551_v24 = vld [vmem:[%s6817_s11 + $0x1d8] sm:$0xff] }
 0x430   : > { %v4641_v40 = vpop.f32.mrf.mxu1 }
 0x431   : > { %4998 = vst [vmem:[%s8074_s21 + $0x180] sm:$0xff] %v4934_v17  ;;  %v4935_v18 = vmax.f32 %v4871_v35, 0.0  ;;  %v4872_v10 = vadd.f32 %v6542_v60, %v4808_v32  ;;  %v4809_v20 = vadd.f32 %v8062_v46, %v4733_v29  ;;  %v4734_v31 = vmul.f32 %v8055_v5, %v4641_v40  ;;  %v6552_v60 = vld [vmem:[%s6817_s11 + $0x1e0] sm:$0xff] }
 0x432   : > { %v4643_v37 = vpop.f32.mrf.mxu1 }
 0x433   : > { %4999 = vst [vmem:[%s8074_s21 + $0x188] sm:$0xff] %v4935_v18  ;;  %v4936_v28 = vmax.f32 %v4872_v10, 0.0  ;;  %v4873_v4 = vadd.f32 %v6543_v13, %v4809_v20  ;;  %v4810_v48 = vadd.f32 %v8057_v63, %v4734_v31  ;;  %v4735_v49 = vmul.f32 %v8059_v8, %v4643_v37  ;;  %v6553_v13 = vld [vmem:[%s6817_s11 + $0x1e8] sm:$0xff] }
 0x434   : > { %v4645_v6 = vpop.f32.mrf.mxu1 }
 0x435   : > { %5000 = vst [vmem:[%s8074_s21 + $0x190] sm:$0xff] %v4936_v28  ;;  %v4937_v47 = vmax.f32 %v4873_v4, 0.0  ;;  %v4874_v52 = vadd.f32 %v6544_v38, %v4810_v48  ;;  %v4811_v23 = vadd.f32 %v8062_v46, %v4735_v49  ;;  %v4736_v62 = vmul.f32 %v8055_v5, %v4645_v6 }
 0x436   : > { %v4647_v27 = vpop.f32.mrf.mxu1 }
 0x437   : > { %5001 = vst [vmem:[%s8074_s21 + $0x198] sm:$0xff] %v4937_v47  ;;  %v4938_v26 = vmax.f32 %v4874_v52, 0.0  ;;  %v4875_v0 = vadd.f32 %v6545_v30, %v4811_v23  ;;  %v4812_v15 = vadd.f32 %v8057_v63, %v4736_v62  ;;  %v4737_v36 = vmul.f32 %v8059_v8, %v4647_v27  ;;  %v6554_v47 = vld [vmem:[%s6817_s11 + $0x1f0] sm:$0xff]  ;;  %v6555_v23 = vld [vmem:[%s6817_s11 + $0x1f8] sm:$0xff]  ;;  %s6656_s11 = smov [#allocation7]  }
 0x438   : > { %v4651_v14 = vpop.f32.mrf.mxu1  ;;  %s6588_s30 = sshll.u32 %s6656_s11, 4  ;;  %s6589_s30 = int_to_ptr.vmem [resolvable:$false] %s6588_s30 }
 0x439   : > { %5002 = vst [vmem:[%s8074_s21 + $0x1a0] sm:$0xff] %v4938_v26  ;;  %v4939_v50 = vmax.f32 %v4875_v0, 0.0  ;;  %v4876_v54 = vadd.f32 %v6546_v56, %v4812_v15  ;;  %v4813_v58 = vadd.f32 %v8062_v46, %v4737_v36  ;;  %v4738_v59 = vmul.f32 %v8055_v5, %v4651_v14  ;;  %s6590_s22 = scalar_lea.vmem %s6589_s30, 16384  ;;  %p6591_p5 = scmp.lt.s32.totalorder %s8328_s27, %s6589_s30 }
 0x43a   : > { %v4653_v42 = vpop.f32.mrf.mxu1  ;;  %p6592_p7 = scmp.lt.s32.totalorder %s6590_s22, %s6584_s17 }
 0x43b   : > { %5003 = vst [vmem:[%s8074_s21 + $0x1a8] sm:$0xff] %v4939_v50  ;;  %v4940_v51 = vmax.f32 %v4876_v54, 0.0  ;;  %v4877_v43 = vadd.f32 %v6547_v19, %v4813_v58  ;;  %v4814_v21 = vadd.f32 %v8057_v63, %v4738_v59  ;;  %v4739_v7 = vmul.f32 %v8059_v8, %v4653_v42 }
 0x43c   : > { %v4655_v45 = vpop.f32.mrf.mxu1  ;;  %p6593_p8 = por %p6592_p7, %p6591_p5 }
 0x43d   : > { %5004 = vst [vmem:[%s8074_s21 + $0x1b0] sm:$0xff] %v4940_v51  ;;  %v4941_v34 = vmax.f32 %v4877_v43, 0.0  ;;  %v4878_v53 = vadd.f32 %v6548_v16, %v4814_v21  ;;  %v4815_v1 = vadd.f32 %v8062_v46, %v4739_v7  ;;  %v4740_v61 = vmul.f32 %v8055_v5, %v4655_v45 }
 0x43e   : > { %v4657_v2 = vpop.f32.mrf.mxu1  ;;  %p6594_p10 = pnand %p6593_p8, %p6587_p4 }
 0x43f   : > { %5005 = vst [vmem:[%s8074_s21 + $0x1b8] sm:$0xff] %v4941_v34  ;;  %v4942_v9 = vmax.f32 %v4878_v53, 0.0  ;;  %v4879_v11 = vadd.f32 %v6549_v3, %v4815_v1  ;;  %v4816_v22 = vadd.f32 %v8057_v63, %v4740_v61  ;;  %v4741_v57 = vmul.f32 %v8059_v8, %v4657_v2 }
 0x440   : > { %v4661_v33 = vpop.f32.mrf.mxu1 }
 0x441   : > { %5006 = vst [vmem:[%s8074_s21 + $0x1c0] sm:$0xff] %v4942_v9  ;;  %v4943_v44 = vmax.f32 %v4879_v11, 0.0  ;;  %v4880_v41 = vadd.f32 %v6550_v25, %v4816_v22  ;;  %v4817_v55 = vadd.f32 %v8062_v46, %v4741_v57  ;;  %v4742_v12 = vmul.f32 %v8055_v5, %v4661_v33 }
 0x442   : > { %v4663_v39 = vpop.f32.mrf.mxu1 }
 0x443   : > { %5007 = vst [vmem:[%s8074_s21 + $0x1c8] sm:$0xff] %v4943_v44  ;;  %v4944_v17 = vmax.f32 %v4880_v41, 0.0  ;;  %v4881_v35 = vadd.f32 %v6551_v24, %v4817_v55  ;;  %v4818_v32 = vadd.f32 %v8057_v63, %v4742_v12  ;;  %v4743_v29 = vmul.f32 %v8059_v8, %v4663_v39 }
 0x444   : > { %v4665_v40 = vpop.f32.mrf.mxu1 }
 0x445   : > { %5008 = vst [vmem:[%s8074_s21 + $0x1d0] sm:$0xff] %v4944_v17  ;;  %v4945_v18 = vmax.f32 %v4881_v35, 0.0  ;;  %v4882_v10 = vadd.f32 %v6552_v60, %v4818_v32  ;;  %v4819_v20 = vadd.f32 %v8062_v46, %v4743_v29  ;;  %v4744_v31 = vmul.f32 %v8055_v5, %v4665_v40 }
 0x446   : > { %v4667_v37 = vpop.f32.mrf.mxu1 }
 0x447   : > { %5009 = vst [vmem:[%s8074_s21 + $0x1d8] sm:$0xff] %v4945_v18  ;;  %v4946_v28 = vmax.f32 %v4882_v10, 0.0  ;;  %v4883_v4 = vadd.f32 %v6553_v13, %v4819_v20  ;;  %v4820_v48 = vadd.f32 %v8057_v63, %v4744_v31  ;;  %v4745_v49 = vmul.f32 %v8059_v8, %v4667_v37 }
 0x449   : > { %5010 = vst [vmem:[%s8074_s21 + $0x1e0] sm:$0xff] %v4946_v28  ;;  %v4947_v6 = vmax.f32 %v4883_v4, 0.0  ;;  %v4884_v38 = vadd.f32 %v6554_v47, %v4820_v48  ;;  %v4821_v5 = vadd.f32 %v8062_v46, %v4745_v49 }
 0x44b   : > { %5011 = vst [vmem:[%s8074_s21 + $0x1e8] sm:$0xff] %v4947_v6  ;;  %v4948_v52 = vmax.f32 %v4884_v38, 0.0  ;;  %v4885_v62 = vadd.f32 %v6555_v23, %v4821_v5 }
 0x44d   : > { %5012 = vst [vmem:[%s8074_s21 + $0x1f0] sm:$0xff] %v4948_v52  ;;  %v4949_v63 = vmax.f32 %v4885_v62, 0.0 }
 0x44f   : > { %5013 = vst [vmem:[%s8074_s21 + $0x1f8] sm:$0xff] %v4949_v63 }
 0x450   : > { %6597 = shalt.err (!%p6594_p10)
}
 0x451   : > { %s6598_s12 = scalar_lea.hbm %s8326_s15, 8192  ;;  %s6602_s21 = scalar_lea.hbm %s8383_s10, 16384 }
 0x452   : > { %p6599_p0 = scmp.ne.s32.totalorder %s8326_s15, %s6598_s12  ;;  %p6603_p1 = scmp.lt.s32.totalorder %s8326_s15, %s8383_s10 }
 0x453   : > { %p6604_p3 = scmp.lt.s32.totalorder %s6602_s21, %s6598_s12 }
 0x454   : > { %p6600_p2 = pnand %p6599_p0, %p8409_p12 }
 0x455   : > { %p6605_p6 = por %p6604_p3, %p6603_p1 }
 0x456   : > { %p6601_p9 = pneg %p6600_p2 }
 0x458   : > { %p6606_p11 = pnand %p6605_p6, %p6601_p9 }
 0x45a   : > { %6609 = shalt.err (!%p6606_p11)
}
 0x45b   : > { %s6657_s28 = smov 256   ;;  %s6658_s17 = smov 16  }
 0x45c   : > { %6283 = dma.vmem_to_hbm [thread:$0]  (%p8409_p12), %s8328_s27, 8192, %s8326_s15, %s5015_s24, %s6657_s28, %s6657_s28, %s6658_s17  }
 0x45d PF: > { %s5043_s11 = sand.u32 1, %s6636_s13   ;;  %p8410_p13 = scmp.ne.s32.totalorder %s8397_s26, 0 }
 0x45e   : > { %p8411_p4 = scmp.ge.s32.totalorder %s6648_s16, 2  ;;  %s5044_s30 = scalar_lea.sflag [#allocation6], %s5043_s11 }
 0x460   : > { %p6290_p5 = pnand %p8411_p4, %p8410_p13 }
 0x462   : > { %p6291_p7 = pneg %p6290_p5 }
 0x464   : > { %6631 = dma.done.wait (%p6291_p7), %s5044_s30, 8192  }
 0x465   : > { %6633 = vsyncadd (%p6291_p7), %s5044_s30, 4294959104  ;;  %s8412_s16 = sld [smem:[#allocation11_spill]]  ;;  %s8415_s13 = smov %s6640_s14 }
 0x466   : > { %s8413_s22 = sld [smem:[#allocation10_spill]] }
 0x467   : > { %s8414_s15 = sld [smem:[#allocation12_spill]] }
 0x46b   : > { %p23_p8 = scmp.ge.s32.totalorder %s8412_s16, 4  }
 0x46c   : > { %s8416_s14 = smov %s8413_s22 }
 0x46d   :  { %25 = sbr.rel (!%p23_p8) target bundleno = 5 (0x5), region = 108 }
 0x472   :  { %5049 = vsyncpa [#allocation5], 1 }
 0x473   :  { %5051 = vsyncpa [#allocation5 + $0x1], 1 }
 0x474   :  { %5052 = vsyncpa [#allocation6], 1 }
 0x475   :  { %5054 = vsyncpa [#allocation6 + $0x1], 1 }

</bundles_post_ra>
